<compile_context>
chip_gen: v6e
topology: v6e:2x2x1
jax: 0.10.0
libtpu: 0.0.40
codegen_flags: <defaults>
</compile_context>

<pallas_src>
import functools

import jax
import jax.numpy as jnp
from jax.experimental import pallas as pl
from jax.experimental.pallas import tpu as pltpu

_MXU_DTYPE = jnp.bfloat16        # matmul input dtype (f32 accumulation everywhere)
_VMEM_LIMIT = 48 * 1024 * 1024   # <= v7x 64 MiB physical, > 32 MiB default scoped limit


def _cp(*sems):
    return pltpu.CompilerParams(dimension_semantics=tuple(sems),
                                vmem_limit_bytes=_VMEM_LIMIT)


def _round_up(x, m):
    return ((x + m - 1) // m) * m


def _largest_divisor_leq(n, target):
    for d in range(min(n, target), 0, -1):
        if n % d == 0:
            return d
    return 1


# ------------------------------------------------------------------ packed 1x1 matmul

def _make_mm_stats_kernel(M, n_stats):
    """Row-tiled matmul + bias; also emits masked per-channel sum / sumsq of the last
    `n_stats` output columns (used for the BN batch statistics of down / residual)."""
    def kernel(a_ref, w_ref, b_ref, o_ref, ps_ref, pq_ref):
        o = (jnp.dot(a_ref[...].astype(_MXU_DTYPE), w_ref[...].astype(_MXU_DTYPE),
                     preferred_element_type=jnp.float32) + b_ref[...])
        o_ref[...] = o
        bm = o.shape[0]
        row = jax.lax.broadcasted_iota(jnp.int32, (bm, 1), 0) + pl.program_id(0) * bm
        valid = row < M                                  # mask padded rows out of stats
        tail = o[:, o.shape[1] - n_stats:]
        ps_ref[...] = jnp.sum(jnp.where(valid, tail, 0.0),
                              axis=0, keepdims=True).reshape(1, 1, n_stats)
        pq_ref[...] = jnp.sum(jnp.where(valid, tail * tail, 0.0),
                              axis=0, keepdims=True).reshape(1, 1, n_stats)
    return kernel


def pallas_mm_bias_stats(a, w, b, n_stats, bm=512):
    """Packed 1x1 convs as one row-tiled matmul + bias; returns (out, sum, sumsq)."""
    M, K = a.shape
    Kw, Nc = w.shape
    assert K == Kw
    bm = min(bm, _round_up(M, 8))
    Mp = _round_up(M, bm)
    if Mp != M:
        a = jnp.pad(a, ((0, Mp - M), (0, 0)))
    nt = Mp // bm
    out, ps, pq = pl.pallas_call(
        _make_mm_stats_kernel(M, n_stats),
        out_shape=(jax.ShapeDtypeStruct((Mp, Nc), jnp.float32),
                   jax.ShapeDtypeStruct((nt, 1, n_stats), jnp.float32),
                   jax.ShapeDtypeStruct((nt, 1, n_stats), jnp.float32)),
        grid=(nt,),
        in_specs=[pl.BlockSpec((bm, K), lambda i: (i, 0)),
                  pl.BlockSpec((K, Nc), lambda i: (0, 0)),
                  pl.BlockSpec((1, Nc), lambda i: (0, 0))],
        out_specs=(pl.BlockSpec((bm, Nc), lambda i: (i, 0)),
                   pl.BlockSpec((1, 1, n_stats), lambda i: (i, 0, 0)),
                   pl.BlockSpec((1, 1, n_stats), lambda i: (i, 0, 0))),
        compiler_params=_cp("parallel"),
    )(a, w, b.reshape(1, Nc).astype(jnp.float32))
    return out[:M], jnp.sum(ps, axis=(0, 1)), jnp.sum(pq, axis=(0, 1))


# -------------------------------------------------- fused adaptive GCN aggregation

def _make_gcn_kernel(ns):
    """Fused adaptive adjacency + graph aggregation, one batch element per grid step.

    refs = (alpha[SMEM], A^T, a_0.., b_0.., d_0.., bias_row, out, psum, psumsq)
      a_i, b_i : (1, V, T*inter)   embeddings from conv_a / conv_b
      d_i      : (1, V, T*Cout)    x already passed through conv_d (bias-free)
      psum/sq  : (1, 1, T*Cout)    partial BN statistics of the GCN output
    """
    def kernel(*refs):
        alpha_ref, at_ref = refs[0], refs[1]
        a_refs = refs[2:2 + ns]
        b_refs = refs[2 + ns:2 + 2 * ns]
        d_refs = refs[2 + 2 * ns:2 + 3 * ns]
        bd_ref = refs[2 + 3 * ns]
        o_ref, ps_ref, pq_ref = refs[3 + 3 * ns], refs[4 + 3 * ns], refs[5 + 3 * ns]

        alpha = alpha_ref[0]
        acc = jnp.zeros(o_ref.shape[1:], jnp.float32)
        for i in range(ns):
            a = a_refs[i][0]                                  # (V, T*inter)
            b = b_refs[i][0]                                  # (V, T*inter)
            d = d_refs[i][0]                                  # (V, T*Cout)
            inv = 1.0 / float(a.shape[-1])
            # S^T[u, v] = sum_{t,k} b[u, t*inter+k] * a[v, t*inter+k]
            s_t = jax.lax.dot_general(
                b.astype(_MXU_DTYPE), a.astype(_MXU_DTYPE),
                (((1,), (1,)), ((), ())),
                preferred_element_type=jnp.float32) * inv
            a1t = at_ref[i] + alpha * jnp.tanh(s_t)           # (A1)^T, shape (V, V)
            # out[u, :] = sum_v A1[v, u] * d[v, :]
            acc = acc + jnp.dot(a1t.astype(_MXU_DTYPE), d.astype(_MXU_DTYPE),
                                preferred_element_type=jnp.float32)
        o = acc + bd_ref[...]
        o_ref[0] = o
        ps_ref[0] = jnp.sum(o, axis=0, keepdims=True)         # BN partial stats
        pq_ref[0] = jnp.sum(o * o, axis=0, keepdims=True)
    return kernel


def gcn_adaptive_agg(a_list, b_list, d_list, A_T, alpha, bd_row):
    ns = len(a_list)
    N, V, TI = a_list[0].shape
    TC = d_list[0].shape[2]
    per_n = lambda shp: pl.BlockSpec((1,) + shp, lambda n: (n, 0, 0))
    in_specs = ([pl.BlockSpec(memory_space=pltpu.MemorySpace.SMEM),     # alpha scalar
                 pl.BlockSpec(A_T.shape, lambda n: (0, 0, 0))]
                + [per_n((V, TI))] * (2 * ns)
                + [per_n((V, TC))] * ns
                + [pl.BlockSpec((1, TC), lambda n: (0, 0))])
    return pl.pallas_call(
        _make_gcn_kernel(ns),
        out_shape=(jax.ShapeDtypeStruct((N, V, TC), jnp.float32),
                   jax.ShapeDtypeStruct((N, 1, TC), jnp.float32),
                   jax.ShapeDtypeStruct((N, 1, TC), jnp.float32)),
        grid=(N,),
        in_specs=in_specs,
        out_specs=(per_n((V, TC)),
                   pl.BlockSpec((1, 1, TC), lambda n: (n, 0, 0)),
                   pl.BlockSpec((1, 1, TC), lambda n: (n, 0, 0))),
        compiler_params=_cp("parallel"),
    )(alpha, A_T, *a_list, *b_list, *d_list, bd_row)


# ------------------------------------------------ fused BN + residual + ReLU kernels

def _bn2_add_relu_sumt_kernel(y_ref, d_ref, sy_ref, sd_ref, sh_ref, o_ref, r_ref):
    # out = relu(y*scale_y + d*scale_d + shift);  also emit sum over T for spatial attn.
    o = jnp.maximum(y_ref[...] * sy_ref[...] + d_ref[...] * sd_ref[...] + sh_ref[...], 0.0)
    o_ref[...] = o
    r_ref[...] = jnp.sum(o, axis=2, keepdims=True)


def bn2_add_relu_sum_t(y, d, sy, sd, sh):
    N, V, T, C = y.shape
    vec = lambda v: v.reshape(1, 1, 1, C).astype(jnp.float32)
    big = pl.BlockSpec((1, V, T, C), lambda n: (n, 0, 0, 0))
    small = pl.BlockSpec((1, 1, 1, C), lambda n: (0, 0, 0, 0))
    return pl.pallas_call(
        _bn2_add_relu_sumt_kernel,
        out_shape=(jax.ShapeDtypeStruct((N, V, T, C), jnp.float32),
                   jax.ShapeDtypeStruct((N, V, 1, C), jnp.float32)),
        grid=(N,),
        in_specs=[big, big, small, small, small],
        out_specs=(big, pl.BlockSpec((1, V, 1, C), lambda n: (n, 0, 0, 0))),
        compiler_params=_cp("parallel"),
    )(y, d, vec(sy), vec(sd), vec(sh))


def _bn2_add_relu_kernel(a_ref, b_ref, sa_ref, sb_ref, sh_ref, o_ref):
    o_ref[...] = jnp.maximum(
        a_ref[...] * sa_ref[...] + b_ref[...] * sb_ref[...] + sh_ref[...], 0.0)


def fused_bn2_add_relu(a, b, sa, sb, sh, bm=512):
    """relu(a*scale_a + b*scale_b + shift) over flat (M, C) rows."""
    M, C = a.shape
    bm = min(bm, _round_up(M, 8))
    Mp = _round_up(M, bm)
    if Mp != M:
        a = jnp.pad(a, ((0, Mp - M), (0, 0)))
        b = jnp.pad(b, ((0, Mp - M), (0, 0)))
    vec = lambda v: v.reshape(1, C).astype(jnp.float32)
    out = pl.pallas_call(
        _bn2_add_relu_kernel,
        out_shape=jax.ShapeDtypeStruct((Mp, C), jnp.float32),
        grid=(Mp // bm,),
        in_specs=[pl.BlockSpec((bm, C), lambda i: (i, 0)),
                  pl.BlockSpec((bm, C), lambda i: (i, 0)),
                  pl.BlockSpec((1, C), lambda i: (0, 0)),
                  pl.BlockSpec((1, C), lambda i: (0, 0)),
                  pl.BlockSpec((1, C), lambda i: (0, 0))],
        out_specs=pl.BlockSpec((bm, C), lambda i: (i, 0)),
        compiler_params=_cp("parallel"),
    )(a, b, vec(sa), vec(sb), vec(sh))
    return out[:M]


# -------------------------------------------------- attention helper reduction kernel

def _wvsum_kernel(y_ref, s_ref, o_ref):
    # o[t, c] = sum_v y[v, t, c] * s[v]  (weighted reduce over joints)
    o_ref[0] = jnp.sum(y_ref[0] * s_ref[0], axis=0)


def weighted_vsum(y, sv):
    N, V, T, C = y.shape
    return pl.pallas_call(
        _wvsum_kernel,
        out_shape=jax.ShapeDtypeStruct((N, T, C), jnp.float32),
        grid=(N,),
        in_specs=[pl.BlockSpec((1, V, T, C), lambda n: (n, 0, 0, 0)),
                  pl.BlockSpec((1, V, 1, 1), lambda n: (n, 0, 0, 0))],
        out_specs=pl.BlockSpec((1, T, C), lambda n: (n, 0, 0)),
        compiler_params=_cp("parallel"),
    )(y, sv)


# ------------------------------------------------ temporal conv (attention fused in)

def _make_tcn_kernel(pad):
    """(K,1) temporal conv with the separable attention scale (1+s_v)(1+s_t)(1+s_c)
    applied in-kernel, zero time-padding built in a VMEM scratch, and BN partial stats
    (per-channel sum / sumsq of the conv output) emitted as side outputs."""
    def kernel(x_ref, w_ref, b_ref, sv_ref, st_ref, sc_ref,
               o_ref, ps_ref, pq_ref, xp_ref):
        K, Ci, Co = w_ref.shape
        bv, Tout = o_ref.shape[1], o_ref.shape[2]
        T = x_ref.shape[2]
        scale = sv_ref[0] * st_ref[0] * sc_ref[0]          # (bv,1,1)*(1,T,1)*(1,1,C)
        if pad > 0:
            zer = jnp.zeros((bv, pad, Ci), jnp.float32)
            xp_ref[:, :pad, :] = zer
            xp_ref[:, pad + T:, :] = zer
        xp_ref[:, pad:pad + T, :] = x_ref[0] * scale
        acc = jnp.zeros((bv * Tout, Co), jnp.float32)
        for k in range(K):                                  # static unroll over taps
            xk = xp_ref[:, k:k + Tout, :]                   # (bv, Tout, Ci)
            acc = acc + jnp.dot(xk.reshape(bv * Tout, Ci).astype(_MXU_DTYPE),
                                w_ref[k].astype(_MXU_DTYPE),
                                preferred_element_type=jnp.float32)
        o = acc + b_ref[...]
        o_ref[0] = o.reshape(bv, Tout, Co)
        ps_ref[...] = jnp.sum(o, axis=0, keepdims=True).reshape(1, 1, 1, Co)
        pq_ref[...] = jnp.sum(o * o, axis=0, keepdims=True).reshape(1, 1, 1, Co)
    return kernel


def pallas_tcn_conv(y, w, b, sv, st, sc, pad):
    K, Ci, Co = w.shape
    N, V, T, _ = y.shape
    Tp = T + 2 * pad
    Tout = Tp - (K - 1)
    bv = _largest_divisor_leq(V, 8)   # joints are independent -> no halo needed
    nj = V // bv
    return pl.pallas_call(
        _make_tcn_kernel(pad),
        out_shape=(jax.ShapeDtypeStruct((N, V, Tout, Co), jnp.float32),
                   jax.ShapeDtypeStruct((N, nj, 1, Co), jnp.float32),
                   jax.ShapeDtypeStruct((N, nj, 1, Co), jnp.float32)),
        grid=(N, nj),
        in_specs=[pl.BlockSpec((1, bv, T, Ci), lambda n, j: (n, j, 0, 0)),
                  pl.BlockSpec((K, Ci, Co), lambda n, j: (0, 0, 0)),
                  pl.BlockSpec((1, Co), lambda n, j: (0, 0)),
                  pl.BlockSpec((1, bv, 1, 1), lambda n, j: (n, j, 0, 0)),
                  pl.BlockSpec((1, 1, T, 1), lambda n, j: (n, 0, 0, 0)),
                  pl.BlockSpec((1, 1, 1, Co), lambda n, j: (n, 0, 0, 0))],
        out_specs=(pl.BlockSpec((1, bv, Tout, Co), lambda n, j: (n, j, 0, 0)),
                   pl.BlockSpec((1, 1, 1, Co), lambda n, j: (n, j, 0, 0)),
                   pl.BlockSpec((1, 1, 1, Co), lambda n, j: (n, j, 0, 0))),
        scratch_shapes=[pltpu.VMEM((bv, Tp, Ci), jnp.float32)],
        compiler_params=_cp("parallel", "parallel"),
    )(y, w, b.reshape(1, Co), sv, st, sc)


# --------------------------------------------------------------------------- JAX glue

def bn_from_sums(s, sq, count, gamma, beta, eps=1e-5):
    # Training-mode BatchNorm2d (biased variance) from per-channel sum / sumsq.
    mean = s / count
    var = jnp.maximum(sq / count - mean * mean, 0.0)
    scale = gamma / jnp.sqrt(var + eps)
    shift = beta - mean * scale
    return scale, shift


def conv1d_out1(x, w, b):
    # x: (N, C, L), w: (1, C, K), b: (1,), stride 1, 'same' padding -> (N, 1, L)
    K = w.shape[-1]
    p_ = (K - 1) // 2
    L = x.shape[-1]
    xp = jnp.pad(x, ((0, 0), (0, 0), (p_, p_)))
    out = jnp.full((x.shape[0], L), b[0], jnp.float32)
    for k in range(K):
        out = out + jnp.einsum("ncl,c->nl", xp[:, :, k:k + L], w[0, :, k])
    return out[:, None, :]


# ------------------------------------------------------------------------- parameters

def init_params(key, C_in, C_out, V, num_subset=3, kernel_size=9, coff=4, rr=2):
    inter = max(C_out // coff, 1)
    ks = iter(jax.random.split(key, 64))
    nrm = lambda shape, s=0.1: s * jax.random.normal(next(ks), shape, jnp.float32)
    p = {
        "A": jax.random.uniform(next(ks), (num_subset, V, V), jnp.float32) / V,
        "alpha": jnp.float32(0.3),
        "Wa": nrm((num_subset, C_in, inter)), "ba": jnp.zeros((num_subset, inter)),
        "Wb": nrm((num_subset, C_in, inter)), "bb": jnp.zeros((num_subset, inter)),
        "Wd": nrm((num_subset, C_in, C_out)), "bd": jnp.zeros((num_subset, C_out)),
        "g_gcn": jnp.ones((C_out,)), "b_gcn": jnp.zeros((C_out,)),
        "W_down": nrm((C_in, C_out)), "b_down": jnp.zeros((C_out,)),
        "g_down": jnp.ones((C_out,)), "b_down_bn": jnp.zeros((C_out,)),
        # attention
        "w_sa": nrm((1, C_out, (V - 1) if V % 2 == 0 else V)), "b_sa": jnp.zeros((1,)),
        "w_ta": nrm((1, C_out, 9)), "b_ta": jnp.zeros((1,)),
        "W_fc1": nrm((C_out, C_out // rr)), "b_fc1": jnp.zeros((C_out // rr,)),
        "W_fc2": nrm((C_out // rr, C_out)), "b_fc2": jnp.zeros((C_out,)),
        # tcn1
        "W_tcn": nrm((kernel_size, C_out, C_out)), "b_tcn": jnp.zeros((C_out,)),
        "g_tcn": jnp.ones((C_out,)), "bt_tcn": jnp.zeros((C_out,)),
        # residual (1x1 TCNUnit, since C_in != C_out)
        "W_res": nrm((C_in, C_out)), "b_res": jnp.zeros((C_out,)),
        "g_res": jnp.ones((C_out,)), "b_res_bn": jnp.zeros((C_out,)),
        "inter": inter,
    }
    return p


# ----------------------------------------------------------------------------- forward

def tcn_gcn_unit_forward(x_nchw, p):
    N, C_in, T, V = x_nchw.shape
    ns = p["A"].shape[0]
    C_out = p["Wd"].shape[-1]
    inter = p["inter"]
    M = N * V * T

    # NCHW (N, C, T, V) -> joints-major channels-last (N, V, T, C)
    x = jnp.transpose(x_nchw, (0, 3, 2, 1))
    x_flat = x.reshape(M, C_in)

    # ---- one packed 1x1-conv matmul over x: conv_a, conv_b, conv_d (bias-free),
    #      GCN down-residual and the block residual (single HBM read of x); the last
    #      2*C_out columns (down, res) also emit their BN batch statistics.
    W_pack = jnp.concatenate([
        jnp.transpose(p["Wa"], (1, 0, 2)).reshape(C_in, ns * inter),
        jnp.transpose(p["Wb"], (1, 0, 2)).reshape(C_in, ns * inter),
        jnp.transpose(p["Wd"], (1, 0, 2)).reshape(C_in, ns * C_out),
        p["W_down"], p["W_res"]], axis=1)
    b_pack = jnp.concatenate([
        p["ba"].reshape(-1), p["bb"].reshape(-1),
        jnp.zeros((ns * C_out,), jnp.float32),       # conv_d bias added after aggregation
        p["b_down"], p["b_res"]])
    packed, dr_sum, dr_sq = pallas_mm_bias_stats(x_flat, W_pack, b_pack,
                                                 n_stats=2 * C_out)

    off = 0
    a_list = [packed[:, off + i * inter: off + (i + 1) * inter].reshape(N, V, T * inter)
              for i in range(ns)]
    off += ns * inter
    b_list = [packed[:, off + i * inter: off + (i + 1) * inter].reshape(N, V, T * inter)
              for i in range(ns)]
    off += ns * inter
    d_list = [packed[:, off + i * C_out: off + (i + 1) * C_out].reshape(N, V, T * C_out)
              for i in range(ns)]
    off += ns * C_out
    down = packed[:, off:off + C_out]
    off += C_out
    res = packed[:, off:off + C_out]

    # ---- fused adaptive adjacency + graph aggregation (conv_d already applied above,
    #      valid because a 1x1 conv commutes with the aggregation over V); also emits
    #      the per-sample BN partial statistics of the GCN output.
    A_T = jnp.transpose(p["A"], (0, 2, 1))
    bd_row = jnp.tile(jnp.sum(p["bd"], axis=0), T).reshape(1, T * C_out)
    alpha = jnp.asarray(p["alpha"], jnp.float32).reshape(1)
    y, y_sum_p, y_sq_p = gcn_adaptive_agg(a_list, b_list, d_list, A_T, alpha, bd_row)
    y = y.reshape(N, V, T, C_out)

    # ---- BN scale/shift from the in-kernel partial sums (all O(C) math)
    y_sum = jnp.sum(y_sum_p, axis=(0, 1)).reshape(T, C_out).sum(axis=0)
    y_sq = jnp.sum(y_sq_p, axis=(0, 1)).reshape(T, C_out).sum(axis=0)
    sy, shy = bn_from_sums(y_sum, y_sq, M, p["g_gcn"], p["b_gcn"])
    sd, shd = bn_from_sums(dr_sum[:C_out], dr_sq[:C_out], M, p["g_down"], p["b_down_bn"])
    sr, shr = bn_from_sums(dr_sum[C_out:], dr_sq[C_out:], M, p["g_res"], p["b_res_bn"])

    # ---- fused BN(gcn) + BN(down) + add + ReLU, also emits sum over T for spatial attn
    y1, sumT = bn2_add_relu_sum_t(y, down.reshape(N, V, T, C_out), sy, sd, shy + shd)

    # ---- attention: the (1+att_s)(1+att_t)(1+att_c) gains are separable, so only their
    #      reductions are computed; the scaling itself is fused into the TCN conv below.
    se = jnp.transpose(sumT[:, :, 0, :] / T, (0, 2, 1))                  # (N, C, V)
    att_s = jax.nn.sigmoid(conv1d_out1(se, p["w_sa"], p["b_sa"]))[:, 0]  # (N, V)
    sv = 1.0 + att_s
    r1 = weighted_vsum(y1, sv.reshape(N, V, 1, 1))                       # sum_v of y*(1+s)
    se_t = jnp.transpose(r1, (0, 2, 1)) / V                              # (N, C, T)
    att_t = jax.nn.sigmoid(conv1d_out1(se_t, p["w_ta"], p["b_ta"]))[:, 0]  # (N, T)
    st = 1.0 + att_t
    r2 = jnp.einsum("nt,ntc->nc", st, r1) / (V * T)                      # (N, C)
    h = jnp.maximum(jnp.dot(r2, p["W_fc1"]) + p["b_fc1"], 0.0)
    att_c = jax.nn.sigmoid(jnp.dot(h, p["W_fc2"]) + p["b_fc2"])          # (N, C)
    sc = 1.0 + att_c

    # ---- TCNUnit (9x1 temporal conv) with attention scale + zero-padding fused in;
    #      also emits the BN partial statistics of the conv output.
    K = p["W_tcn"].shape[0]
    t, t_sum_p, t_sq_p = pallas_tcn_conv(
        y1, p["W_tcn"], p["b_tcn"],
        sv.reshape(N, V, 1, 1), st.reshape(N, 1, T, 1), sc.reshape(N, 1, 1, C_out),
        pad=(K - 1) // 2)
    Tout = t.shape[2]
    t_sum = jnp.sum(t_sum_p, axis=(0, 1, 2))
    t_sq = jnp.sum(t_sq_p, axis=(0, 1, 2))
    st_bn, sht = bn_from_sums(t_sum, t_sq, N * V * Tout, p["g_tcn"], p["bt_tcn"])

    # ---- BN(tcn) + BN(res) + add + ReLU, fused elementwise
    out = fused_bn2_add_relu(t.reshape(N * V * Tout, C_out), res, st_bn, sr, sht + shr)

    # back to NCHW (N, C, T, V)
    return jnp.transpose(out.reshape(N, V, Tout, C_out), (0, 3, 2, 1))


# ----------------------------------------------------------------------------- main

if __name__ == "__main__":
    key = jax.random.PRNGKey(0)
    N, C_in, T, V = 2, 4, 16, 8
    C_out = 16
    kx, kp = jax.random.split(key)
    x = jax.random.normal(kx, (N, C_in, T, V), jnp.float32)            # NCHW = (N, C, T, V)
    params = init_params(kp, C_in, C_out, V)

    fwd = jax.jit(functools.partial(tcn_gcn_unit_forward, p=params))
    out = fwd(x)
    out = jax.block_until_ready(out)
    assert out.shape == (N, C_out, T, V)
    assert bool(jnp.all(jnp.isfinite(out)))
    print("KERNEL_OK")
</pallas_src>

<mosaic_0001>
module attributes {stable_mosaic.version = 11 : i64} {
  func.func @kernel(%arg0: i32, %arg1: memref<256x4xf32, #tpu.memory_space<vmem>>, %arg2: memref<4x104xf32, #tpu.memory_space<vmem>>, %arg3: memref<1x104xf32, #tpu.memory_space<vmem>>, %arg4: memref<256x104xf32, #tpu.memory_space<vmem>>, %arg5: memref<1x1x32xf32, #tpu.memory_space<vmem>>, %arg6: memref<1x1x32xf32, #tpu.memory_space<vmem>>) attributes {dimension_semantics = [#tpu.dimension_semantics<parallel>], iteration_bounds = array<i64: 1>, scalar_prefetch = 0 : i64, scratch_operands = 0 : i64, tpu.core_type = #tpu.core_type<tc>, window_params = [{transform_indices = @transform_0, window_bounds = array<i64: 256, 4>}, {pipeline_mode = #tpu.pipeline_mode<synchronous>, transform_indices = @transform_1, window_bounds = array<i64: 4, 104>}, {pipeline_mode = #tpu.pipeline_mode<synchronous>, transform_indices = @transform_2, window_bounds = array<i64: 1, 104>}, {transform_indices = @transform_3, window_bounds = array<i64: 256, 104>}, {transform_indices = @transform_4, window_bounds = array<i64: 1, 1, 32>}, {transform_indices = @transform_5, window_bounds = array<i64: 1, 1, 32>}]} {
    %c0 = arith.constant 0 : index
    %c0_0 = arith.constant 0 : index
    %0 = vector.load %arg1[%c0, %c0_0] : memref<256x4xf32, #tpu.memory_space<vmem>>, vector<256x4xf32>
    %1 = arith.truncf %0 : vector<256x4xf32> to vector<256x4xbf16>
    %c0_1 = arith.constant 0 : index
    %c0_2 = arith.constant 0 : index
    %2 = vector.load %arg2[%c0_1, %c0_2] : memref<4x104xf32, #tpu.memory_space<vmem>>, vector<4x104xf32>
    %3 = arith.truncf %2 : vector<4x104xf32> to vector<4x104xbf16>
    %cst = arith.constant dense<0.000000e+00> : vector<256x104xf32>
    %4 = tpu.matmul %1, %3, %cst {dimension_numbers = #tpu.dot_dimension_numbers<[1], [0], [0], [1], [0, 0, 1, 1], [], []>} : vector<256x4xbf16>, vector<4x104xbf16>, vector<256x104xf32> -> vector<256x104xf32>
    %c0_3 = arith.constant 0 : index
    %c0_4 = arith.constant 0 : index
    %5 = vector.load %arg3[%c0_3, %c0_4] : memref<1x104xf32, #tpu.memory_space<vmem>>, vector<1x104xf32>
    %6 = vector.broadcast %5 : vector<1x104xf32> to vector<256x104xf32>
    %7 = arith.addf %4, %6 : vector<256x104xf32>
    %c0_5 = arith.constant 0 : index
    %c0_6 = arith.constant 0 : index
    %8 = vector.load %arg4[%c0_5, %c0_6] : memref<256x104xf32, #tpu.memory_space<vmem>>, vector<256x104xf32>
    tpu.vector_store %arg4[%c0_5, %c0_6], %7 {strides = array<i32>} : memref<256x104xf32, #tpu.memory_space<vmem>>, vector<256x104xf32>,
    %9 = tpu.iota {dimensions = array<i32: 0>} : vector<256x1xi32>
    %c256_i32 = arith.constant 256 : i32
    %10 = arith.muli %arg0, %c256_i32 : i32
    %11 = vector.broadcast %10 : i32 to vector<256x1xi32>
    %12 = arith.addi %9, %11 : vector<256x1xi32>
    %c256_i32_7 = arith.constant 256 : i32
    %13 = vector.broadcast %c256_i32_7 : i32 to vector<256x1xi32>
    %14 = arith.cmpi slt, %12, %13 : vector<256x1xi32>
    %15 = vector.extract_strided_slice %7 {offsets = [0, 72], sizes = [256, 32], strides = [1, 1]} : vector<256x104xf32> to vector<256x32xf32>
    %cst_8 = arith.constant 0.000000e+00 : f32
    %16 = vector.shape_cast %14 : vector<256x1xi1> to vector<256x1xi1>
    %17 = vector.broadcast %16 : vector<256x1xi1> to vector<256x32xi1>
    %18 = vector.broadcast %cst_8 : f32 to vector<256x32xf32>
    %19 = arith.select %17, %15, %18 : vector<256x32xi1>, vector<256x32xf32>
    %cst_9 = arith.constant dense<0.000000e+00> : vector<32xf32>
    %20 = vector.multi_reduction <add>, %19, %cst_9 [0] : vector<256x32xf32> to vector<32xf32>
    %21 = vector.shape_cast %20 : vector<32xf32> to vector<1x32xf32>
    %22 = vector.shape_cast %21 : vector<1x32xf32> to vector<1x1x32xf32>
    %c0_10 = arith.constant 0 : index
    %c0_11 = arith.constant 0 : index
    %c0_12 = arith.constant 0 : index
    %23 = vector.load %arg5[%c0_10, %c0_11, %c0_12] : memref<1x1x32xf32, #tpu.memory_space<vmem>>, vector<1x1x32xf32>
    tpu.vector_store %arg5[%c0_10, %c0_11, %c0_12], %22 {strides = array<i32>} : memref<1x1x32xf32, #tpu.memory_space<vmem>>, vector<1x1x32xf32>,
    %24 = arith.mulf %15, %15 : vector<256x32xf32>
    %cst_13 = arith.constant 0.000000e+00 : f32
    %25 = vector.shape_cast %14 : vector<256x1xi1> to vector<256x1xi1>
    %26 = vector.broadcast %25 : vector<256x1xi1> to vector<256x32xi1>
    %27 = vector.broadcast %cst_13 : f32 to vector<256x32xf32>
    %28 = arith.select %26, %24, %27 : vector<256x32xi1>, vector<256x32xf32>
    %cst_14 = arith.constant dense<0.000000e+00> : vector<32xf32>
    %29 = vector.multi_reduction <add>, %28, %cst_14 [0] : vector<256x32xf32> to vector<32xf32>
    %30 = vector.shape_cast %29 : vector<32xf32> to vector<1x32xf32>
    %31 = vector.shape_cast %30 : vector<1x32xf32> to vector<1x1x32xf32>
    %c0_15 = arith.constant 0 : index
    %c0_16 = arith.constant 0 : index
    %c0_17 = arith.constant 0 : index
    %32 = vector.load %arg6[%c0_15, %c0_16, %c0_17] : memref<1x1x32xf32, #tpu.memory_space<vmem>>, vector<1x1x32xf32>
    tpu.vector_store %arg6[%c0_15, %c0_16, %c0_17], %31 {strides = array<i32>} : memref<1x1x32xf32, #tpu.memory_space<vmem>>, vector<1x1x32xf32>,
    return
  }
  func.func @transform_0(%arg0: i32) -> (i32, i32) {
    %c0_i32 = arith.constant 0 : i32
    %c0_i32_0 = arith.constant 0 : i32
    return %arg0, %c0_i32 : i32, i32
  }
  func.func @transform_1(%arg0: i32) -> (i32, i32) {
    %c0_i32 = arith.constant 0 : i32
    %c0_i32_0 = arith.constant 0 : i32
    %c0_i32_1 = arith.constant 0 : i32
    return %c0_i32, %c0_i32_0 : i32, i32
  }
  func.func @transform_2(%arg0: i32) -> (i32, i32) {
    %c0_i32 = arith.constant 0 : i32
    %c0_i32_0 = arith.constant 0 : i32
    %c0_i32_1 = arith.constant 0 : i32
    return %c0_i32, %c0_i32_0 : i32, i32
  }
  func.func @transform_3(%arg0: i32) -> (i32, i32) {
    %c0_i32 = arith.constant 0 : i32
    %c0_i32_0 = arith.constant 0 : i32
    return %arg0, %c0_i32 : i32, i32
  }
  func.func @transform_4(%arg0: i32) -> (i32, i32, i32) {
    %c0_i32 = arith.constant 0 : i32
    %c0_i32_0 = arith.constant 0 : i32
    %c0_i32_1 = arith.constant 0 : i32
    return %arg0, %c0_i32, %c0_i32_0 : i32, i32, i32
  }
  func.func @transform_5(%arg0: i32) -> (i32, i32, i32) {
    %c0_i32 = arith.constant 0 : i32
    %c0_i32_0 = arith.constant 0 : i32
    %c0_i32_1 = arith.constant 0 : i32
    return %arg0, %c0_i32, %c0_i32_0 : i32, i32, i32
  }
}

module attributes {stable_mosaic.version = 11 : i64} {
  func.func @kernel(%arg0: i32, %arg1: memref<1xf32, #tpu.memory_space<smem>>, %arg2: memref<3x8x8xf32, #tpu.memory_space<vmem>>, %arg3: memref<1x8x64xf32, #tpu.memory_space<vmem>>, %arg4: memref<1x8x64xf32, #tpu.memory_space<vmem>>, %arg5: memref<1x8x64xf32, #tpu.memory_space<vmem>>, %arg6: memref<1x8x64xf32, #tpu.memory_space<vmem>>, %arg7: memref<1x8x64xf32, #tpu.memory_space<vmem>>, %arg8: memref<1x8x64xf32, #tpu.memory_space<vmem>>, %arg9: memref<1x8x256xf32, #tpu.memory_space<vmem>>, %arg10: memref<1x8x256xf32, #tpu.memory_space<vmem>>, %arg11: memref<1x8x256xf32, #tpu.memory_space<vmem>>, %arg12: memref<1x256xf32, #tpu.memory_space<vmem>>, %arg13: memref<1x8x256xf32, #tpu.memory_space<vmem>>, %arg14: memref<1x1x256xf32, #tpu.memory_space<vmem>>, %arg15: memref<1x1x256xf32, #tpu.memory_space<vmem>>) attributes {dimension_semantics = [#tpu.dimension_semantics<parallel>], iteration_bounds = array<i64: 2>, scalar_prefetch = 0 : i64, scratch_operands = 0 : i64, tpu.core_type = #tpu.core_type<tc>, window_params = [{transform_indices = @transform_0, window_bounds = array<i64: 1>}, {pipeline_mode = #tpu.pipeline_mode<synchronous>, transform_indices = @transform_1, window_bounds = array<i64: 3, 8, 8>}, {transform_indices = @transform_2, window_bounds = array<i64: 1, 8, 64>}, {transform_indices = @transform_3, window_bounds = array<i64: 1, 8, 64>}, {transform_indices = @transform_4, window_bounds = array<i64: 1, 8, 64>}, {transform_indices = @transform_5, window_bounds = array<i64: 1, 8, 64>}, {transform_indices = @transform_6, window_bounds = array<i64: 1, 8, 64>}, {transform_indices = @transform_7, window_bounds = array<i64: 1, 8, 64>}, {transform_indices = @transform_8, window_bounds = array<i64: 1, 8, 256>}, {transform_indices = @transform_9, window_bounds = array<i64: 1, 8, 256>}, {transform_indices = @transform_10, window_bounds = array<i64: 1, 8, 256>}, {pipeline_mode = #tpu.pipeline_mode<synchronous>, transform_indices = @transform_11, window_bounds = array<i64: 1, 256>}, {transform_indices = @transform_12, window_bounds = array<i64: 1, 8, 256>}, {transform_indices = @transform_13, window_bounds = array<i64: 1, 1, 256>}, {transform_indices = @transform_14, window_bounds = array<i64: 1, 1, 256>}]} {
    %c0 = arith.constant 0 : index
    %0 = memref.load %arg1[%c0] : memref<1xf32, #tpu.memory_space<smem>>
    %cst = arith.constant 0.000000e+00 : f32
    %1 = vector.broadcast %cst : f32 to vector<8x256xf32>
    %c0_0 = arith.constant 0 : index
    %c0_1 = arith.constant 0 : index
    %c0_2 = arith.constant 0 : index
    %2 = vector.load %arg3[%c0_0, %c0_1, %c0_2] : memref<1x8x64xf32, #tpu.memory_space<vmem>>, vector<1x8x64xf32>
    %3 = vector.shape_cast %2 : vector<1x8x64xf32> to vector<8x64xf32>
    %c0_3 = arith.constant 0 : index
    %c0_4 = arith.constant 0 : index
    %c0_5 = arith.constant 0 : index
    %4 = vector.load %arg6[%c0_3, %c0_4, %c0_5] : memref<1x8x64xf32, #tpu.memory_space<vmem>>, vector<1x8x64xf32>
    %5 = vector.shape_cast %4 : vector<1x8x64xf32> to vector<8x64xf32>
    %c0_6 = arith.constant 0 : index
    %c0_7 = arith.constant 0 : index
    %c0_8 = arith.constant 0 : index
    %6 = vector.load %arg9[%c0_6, %c0_7, %c0_8] : memref<1x8x256xf32, #tpu.memory_space<vmem>>, vector<1x8x256xf32>
    %7 = vector.shape_cast %6 : vector<1x8x256xf32> to vector<8x256xf32>
    %8 = arith.truncf %5 : vector<8x64xf32> to vector<8x64xbf16>
    %9 = arith.truncf %3 : vector<8x64xf32> to vector<8x64xbf16>
    %cst_9 = arith.constant dense<0.000000e+00> : vector<8x8xf32>
    %10 = tpu.matmul %8, %9, %cst_9 {dimension_numbers = #tpu.dot_dimension_numbers<[1], [1], [0], [0], [0, 0, 1, 0], [], []>} : vector<8x64xbf16>, vector<8x64xbf16>, vector<8x8xf32> -> vector<8x8xf32>
    %cst_10 = arith.constant 1.562500e-02 : f32
    %11 = vector.broadcast %cst_10 : f32 to vector<8x8xf32>
    %12 = arith.mulf %10, %11 : vector<8x8xf32>
    %c0_11 = arith.constant 0 : index
    %c0_12 = arith.constant 0 : index
    %c0_13 = arith.constant 0 : index
    %13 = vector.load %arg2[%c0_11, %c0_12, %c0_13] : memref<3x8x8xf32, #tpu.memory_space<vmem>>, vector<1x8x8xf32>
    %14 = vector.shape_cast %13 : vector<1x8x8xf32> to vector<8x8xf32>
    %15 = math.tanh %12 : vector<8x8xf32>
    %16 = vector.broadcast %0 : f32 to vector<8x8xf32>
    %17 = arith.mulf %16, %15 : vector<8x8xf32>
    %18 = arith.addf %14, %17 : vector<8x8xf32>
    %19 = arith.truncf %18 : vector<8x8xf32> to vector<8x8xbf16>
    %20 = arith.truncf %7 : vector<8x256xf32> to vector<8x256xbf16>
    %cst_14 = arith.constant dense<0.000000e+00> : vector<8x256xf32>
    %21 = tpu.matmul %19, %20, %cst_14 {dimension_numbers = #tpu.dot_dimension_numbers<[1], [0], [0], [1], [0, 0, 1, 1], [], []>} : vector<8x8xbf16>, vector<8x256xbf16>, vector<8x256xf32> -> vector<8x256xf32>
    %22 = arith.addf %1, %21 : vector<8x256xf32>
    %c0_15 = arith.constant 0 : index
    %c0_16 = arith.constant 0 : index
    %c0_17 = arith.constant 0 : index
    %23 = vector.load %arg4[%c0_15, %c0_16, %c0_17] : memref<1x8x64xf32, #tpu.memory_space<vmem>>, vector<1x8x64xf32>
    %24 = vector.shape_cast %23 : vector<1x8x64xf32> to vector<8x64xf32>
    %c0_18 = arith.constant 0 : index
    %c0_19 = arith.constant 0 : index
    %c0_20 = arith.constant 0 : index
    %25 = vector.load %arg7[%c0_18, %c0_19, %c0_20] : memref<1x8x64xf32, #tpu.memory_space<vmem>>, vector<1x8x64xf32>
    %26 = vector.shape_cast %25 : vector<1x8x64xf32> to vector<8x64xf32>
    %c0_21 = arith.constant 0 : index
    %c0_22 = arith.constant 0 : index
    %c0_23 = arith.constant 0 : index
    %27 = vector.load %arg10[%c0_21, %c0_22, %c0_23] : memref<1x8x256xf32, #tpu.memory_space<vmem>>, vector<1x8x256xf32>
    %28 = vector.shape_cast %27 : vector<1x8x256xf32> to vector<8x256xf32>
    %29 = arith.truncf %26 : vector<8x64xf32> to vector<8x64xbf16>
    %30 = arith.truncf %24 : vector<8x64xf32> to vector<8x64xbf16>
    %cst_24 = arith.constant dense<0.000000e+00> : vector<8x8xf32>
    %31 = tpu.matmul %29, %30, %cst_24 {dimension_numbers = #tpu.dot_dimension_numbers<[1], [1], [0], [0], [0, 0, 1, 0], [], []>} : vector<8x64xbf16>, vector<8x64xbf16>, vector<8x8xf32> -> vector<8x8xf32>
    %cst_25 = arith.constant 1.562500e-02 : f32
    %32 = vector.broadcast %cst_25 : f32 to vector<8x8xf32>
    %33 = arith.mulf %31, %32 : vector<8x8xf32>
    %c1 = arith.constant 1 : index
    %c0_26 = arith.constant 0 : index
    %c0_27 = arith.constant 0 : index
    %34 = vector.load %arg2[%c1, %c0_26, %c0_27] : memref<3x8x8xf32, #tpu.memory_space<vmem>>, vector<1x8x8xf32>
    %35 = vector.shape_cast %34 : vector<1x8x8xf32> to vector<8x8xf32>
    %36 = math.tanh %33 : vector<8x8xf32>
    %37 = vector.broadcast %0 : f32 to vector<8x8xf32>
    %38 = arith.mulf %37, %36 : vector<8x8xf32>
    %39 = arith.addf %35, %38 : vector<8x8xf32>
    %40 = arith.truncf %39 : vector<8x8xf32> to vector<8x8xbf16>
    %41 = arith.truncf %28 : vector<8x256xf32> to vector<8x256xbf16>
    %cst_28 = arith.constant dense<0.000000e+00> : vector<8x256xf32>
    %42 = tpu.matmul %40, %41, %cst_28 {dimension_numbers = #tpu.dot_dimension_numbers<[1], [0], [0], [1], [0, 0, 1, 1], [], []>} : vector<8x8xbf16>, vector<8x256xbf16>, vector<8x256xf32> -> vector<8x256xf32>
    %43 = arith.addf %22, %42 : vector<8x256xf32>
    %c0_29 = arith.constant 0 : index
    %c0_30 = arith.constant 0 : index
    %c0_31 = arith.constant 0 : index
    %44 = vector.load %arg5[%c0_29, %c0_30, %c0_31] : memref<1x8x64xf32, #tpu.memory_space<vmem>>, vector<1x8x64xf32>
    %45 = vector.shape_cast %44 : vector<1x8x64xf32> to vector<8x64xf32>
    %c0_32 = arith.constant 0 : index
    %c0_33 = arith.constant 0 : index
    %c0_34 = arith.constant 0 : index
    %46 = vector.load %arg8[%c0_32, %c0_33, %c0_34] : memref<1x8x64xf32, #tpu.memory_space<vmem>>, vector<1x8x64xf32>
    %47 = vector.shape_cast %46 : vector<1x8x64xf32> to vector<8x64xf32>
    %c0_35 = arith.constant 0 : index
    %c0_36 = arith.constant 0 : index
    %c0_37 = arith.constant 0 : index
    %48 = vector.load %arg11[%c0_35, %c0_36, %c0_37] : memref<1x8x256xf32, #tpu.memory_space<vmem>>, vector<1x8x256xf32>
    %49 = vector.shape_cast %48 : vector<1x8x256xf32> to vector<8x256xf32>
    %50 = arith.truncf %47 : vector<8x64xf32> to vector<8x64xbf16>
    %51 = arith.truncf %45 : vector<8x64xf32> to vector<8x64xbf16>
    %cst_38 = arith.constant dense<0.000000e+00> : vector<8x8xf32>
    %52 = tpu.matmul %50, %51, %cst_38 {dimension_numbers = #tpu.dot_dimension_numbers<[1], [1], [0], [0], [0, 0, 1, 0], [], []>} : vector<8x64xbf16>, vector<8x64xbf16>, vector<8x8xf32> -> vector<8x8xf32>
    %cst_39 = arith.constant 1.562500e-02 : f32
    %53 = vector.broadcast %cst_39 : f32 to vector<8x8xf32>
    %54 = arith.mulf %52, %53 : vector<8x8xf32>
    %c2 = arith.constant 2 : index
    %c0_40 = arith.constant 0 : index
    %c0_41 = arith.constant 0 : index
    %55 = vector.load %arg2[%c2, %c0_40, %c0_41] : memref<3x8x8xf32, #tpu.memory_space<vmem>>, vector<1x8x8xf32>
    %56 = vector.shape_cast %55 : vector<1x8x8xf32> to vector<8x8xf32>
    %57 = math.tanh %54 : vector<8x8xf32>
    %58 = vector.broadcast %0 : f32 to vector<8x8xf32>
    %59 = arith.mulf %58, %57 : vector<8x8xf32>
    %60 = arith.addf %56, %59 : vector<8x8xf32>
    %61 = arith.truncf %60 : vector<8x8xf32> to vector<8x8xbf16>
    %62 = arith.truncf %49 : vector<8x256xf32> to vector<8x256xbf16>
    %cst_42 = arith.constant dense<0.000000e+00> : vector<8x256xf32>
    %63 = tpu.matmul %61, %62, %cst_42 {dimension_numbers = #tpu.dot_dimension_numbers<[1], [0], [0], [1], [0, 0, 1, 1], [], []>} : vector<8x8xbf16>, vector<8x256xbf16>, vector<8x256xf32> -> vector<8x256xf32>
    %64 = arith.addf %43, %63 : vector<8x256xf32>
    %c0_43 = arith.constant 0 : index
    %c0_44 = arith.constant 0 : index
    %65 = vector.load %arg12[%c0_43, %c0_44] : memref<1x256xf32, #tpu.memory_space<vmem>>, vector<1x256xf32>
    %66 = vector.broadcast %65 : vector<1x256xf32> to vector<8x256xf32>
    %67 = arith.addf %64, %66 : vector<8x256xf32>
    %c0_45 = arith.constant 0 : index
    %c0_46 = arith.constant 0 : index
    %c0_47 = arith.constant 0 : index
    %68 = vector.load %arg13[%c0_45, %c0_46, %c0_47] : memref<1x8x256xf32, #tpu.memory_space<vmem>>, vector<1x8x256xf32>
    %69 = vector.shape_cast %68 : vector<1x8x256xf32> to vector<8x256xf32>
    %70 = vector.shape_cast %67 : vector<8x256xf32> to vector<1x8x256xf32>
    tpu.vector_store %arg13[%c0_45, %c0_46, %c0_47], %70 {strides = array<i32>} : memref<1x8x256xf32, #tpu.memory_space<vmem>>, vector<1x8x256xf32>,
    %cst_48 = arith.constant dense<0.000000e+00> : vector<256xf32>
    %71 = vector.multi_reduction <add>, %67, %cst_48 [0] : vector<8x256xf32> to vector<256xf32>
    %72 = vector.shape_cast %71 : vector<256xf32> to vector<1x256xf32>
    %c0_49 = arith.constant 0 : index
    %c0_50 = arith.constant 0 : index
    %c0_51 = arith.constant 0 : index
    %73 = vector.load %arg14[%c0_49, %c0_50, %c0_51] : memref<1x1x256xf32, #tpu.memory_space<vmem>>, vector<1x1x256xf32>
    %74 = vector.shape_cast %73 : vector<1x1x256xf32> to vector<1x256xf32>
    %75 = vector.shape_cast %72 : vector<1x256xf32> to vector<1x1x256xf32>
    tpu.vector_store %arg14[%c0_49, %c0_50, %c0_51], %75 {strides = array<i32>} : memref<1x1x256xf32, #tpu.memory_space<vmem>>, vector<1x1x256xf32>,
    %76 = arith.mulf %67, %67 : vector<8x256xf32>
    %cst_52 = arith.constant dense<0.000000e+00> : vector<256xf32>
    %77 = vector.multi_reduction <add>, %76, %cst_52 [0] : vector<8x256xf32> to vector<256xf32>
    %78 = vector.shape_cast %77 : vector<256xf32> to vector<1x256xf32>
    %c0_53 = arith.constant 0 : index
    %c0_54 = arith.constant 0 : index
    %c0_55 = arith.constant 0 : index
    %79 = vector.load %arg15[%c0_53, %c0_54, %c0_55] : memref<1x1x256xf32, #tpu.memory_space<vmem>>, vector<1x1x256xf32>
    %80 = vector.shape_cast %79 : vector<1x1x256xf32> to vector<1x256xf32>
    %81 = vector.shape_cast %78 : vector<1x256xf32> to vector<1x1x256xf32>
    tpu.vector_store %arg15[%c0_53, %c0_54, %c0_55], %81 {strides = array<i32>} : memref<1x1x256xf32, #tpu.memory_space<vmem>>, vector<1x1x256xf32>,
    return
  }
  func.func @transform_0(%arg0: i32) -> i32 {
    %c0_i32 = arith.constant 0 : i32
    %c0_i32_0 = arith.constant 0 : i32
    return %c0_i32 : i32
  }
  func.func @transform_1(%arg0: i32) -> (i32, i32, i32) {
    %c0_i32 = arith.constant 0 : i32
    %c0_i32_0 = arith.constant 0 : i32
    %c0_i32_1 = arith.constant 0 : i32
    %c0_i32_2 = arith.constant 0 : i32
    return %c0_i32, %c0_i32_0, %c0_i32_1 : i32, i32, i32
  }
  func.func @transform_2(%arg0: i32) -> (i32, i32, i32) {
    %c0_i32 = arith.constant 0 : i32
    %c0_i32_0 = arith.constant 0 : i32
    %c0_i32_1 = arith.constant 0 : i32
    return %arg0, %c0_i32, %c0_i32_0 : i32, i32, i32
  }
  func.func @transform_3(%arg0: i32) -> (i32, i32, i32) {
    %c0_i32 = arith.constant 0 : i32
    %c0_i32_0 = arith.constant 0 : i32
    %c0_i32_1 = arith.constant 0 : i32
    return %arg0, %c0_i32, %c0_i32_0 : i32, i32, i32
  }
  func.func @transform_4(%arg0: i32) -> (i32, i32, i32) {
    %c0_i32 = arith.constant 0 : i32
    %c0_i32_0 = arith.constant 0 : i32
    %c0_i32_1 = arith.constant 0 : i32
    return %arg0, %c0_i32, %c0_i32_0 : i32, i32, i32
  }
  func.func @transform_5(%arg0: i32) -> (i32, i32, i32) {
    %c0_i32 = arith.constant 0 : i32
    %c0_i32_0 = arith.constant 0 : i32
    %c0_i32_1 = arith.constant 0 : i32
    return %arg0, %c0_i32, %c0_i32_0 : i32, i32, i32
  }
  func.func @transform_6(%arg0: i32) -> (i32, i32, i32) {
    %c0_i32 = arith.constant 0 : i32
    %c0_i32_0 = arith.constant 0 : i32
    %c0_i32_1 = arith.constant 0 : i32
    return %arg0, %c0_i32, %c0_i32_0 : i32, i32, i32
  }
  func.func @transform_7(%arg0: i32) -> (i32, i32, i32) {
    %c0_i32 = arith.constant 0 : i32
    %c0_i32_0 = arith.constant 0 : i32
    %c0_i32_1 = arith.constant 0 : i32
    return %arg0, %c0_i32, %c0_i32_0 : i32, i32, i32
  }
  func.func @transform_8(%arg0: i32) -> (i32, i32, i32) {
    %c0_i32 = arith.constant 0 : i32
    %c0_i32_0 = arith.constant 0 : i32
    %c0_i32_1 = arith.constant 0 : i32
    return %arg0, %c0_i32, %c0_i32_0 : i32, i32, i32
  }
  func.func @transform_9(%arg0: i32) -> (i32, i32, i32) {
    %c0_i32 = arith.constant 0 : i32
    %c0_i32_0 = arith.constant 0 : i32
    %c0_i32_1 = arith.constant 0 : i32
    return %arg0, %c0_i32, %c0_i32_0 : i32, i32, i32
  }
  func.func @transform_10(%arg0: i32) -> (i32, i32, i32) {
    %c0_i32 = arith.constant 0 : i32
    %c0_i32_0 = arith.constant 0 : i32
    %c0_i32_1 = arith.constant 0 : i32
    return %arg0, %c0_i32, %c0_i32_0 : i32, i32, i32
  }
  func.func @transform_11(%arg0: i32) -> (i32, i32) {
    %c0_i32 = arith.constant 0 : i32
    %c0_i32_0 = arith.constant 0 : i32
    %c0_i32_1 = arith.constant 0 : i32
    return %c0_i32, %c0_i32_0 : i32, i32
  }
  func.func @transform_12(%arg0: i32) -> (i32, i32, i32) {
    %c0_i32 = arith.constant 0 : i32
    %c0_i32_0 = arith.constant 0 : i32
    %c0_i32_1 = arith.constant 0 : i32
    return %arg0, %c0_i32, %c0_i32_0 : i32, i32, i32
  }
  func.func @transform_13(%arg0: i32) -> (i32, i32, i32) {
    %c0_i32 = arith.constant 0 : i32
    %c0_i32_0 = arith.constant 0 : i32
    %c0_i32_1 = arith.constant 0 : i32
    return %arg0, %c0_i32, %c0_i32_0 : i32, i32, i32
  }
  func.func @transform_14(%arg0: i32) -> (i32, i32, i32) {
    %c0_i32 = arith.constant 0 : i32
    %c0_i32_0 = arith.constant 0 : i32
    %c0_i32_1 = arith.constant 0 : i32
    return %arg0, %c0_i32, %c0_i32_0 : i32, i32, i32
  }
}

module attributes {stable_mosaic.version = 11 : i64} {
  func.func @_bn2_add_relu_sumt_kernel(%arg0: i32, %arg1: memref<1x8x16x16xf32, #tpu.memory_space<vmem>>, %arg2: memref<1x8x16x16xf32, #tpu.memory_space<vmem>>, %arg3: memref<1x1x1x16xf32, #tpu.memory_space<vmem>>, %arg4: memref<1x1x1x16xf32, #tpu.memory_space<vmem>>, %arg5: memref<1x1x1x16xf32, #tpu.memory_space<vmem>>, %arg6: memref<1x8x16x16xf32, #tpu.memory_space<vmem>>, %arg7: memref<1x8x1x16xf32, #tpu.memory_space<vmem>>) attributes {dimension_semantics = [#tpu.dimension_semantics<parallel>], iteration_bounds = array<i64: 2>, scalar_prefetch = 0 : i64, scratch_operands = 0 : i64, tpu.core_type = #tpu.core_type<tc>, window_params = [{transform_indices = @transform_0, window_bounds = array<i64: 1, 8, 16, 16>}, {transform_indices = @transform_1, window_bounds = array<i64: 1, 8, 16, 16>}, {pipeline_mode = #tpu.pipeline_mode<synchronous>, transform_indices = @transform_2, window_bounds = array<i64: 1, 1, 1, 16>}, {pipeline_mode = #tpu.pipeline_mode<synchronous>, transform_indices = @transform_3, window_bounds = array<i64: 1, 1, 1, 16>}, {pipeline_mode = #tpu.pipeline_mode<synchronous>, transform_indices = @transform_4, window_bounds = array<i64: 1, 1, 1, 16>}, {transform_indices = @transform_5, window_bounds = array<i64: 1, 8, 16, 16>}, {transform_indices = @transform_6, window_bounds = array<i64: 1, 8, 1, 16>}]} {
    %c0 = arith.constant 0 : index
    %c0_0 = arith.constant 0 : index
    %c0_1 = arith.constant 0 : index
    %c0_2 = arith.constant 0 : index
    %0 = vector.load %arg1[%c0, %c0_0, %c0_1, %c0_2] : memref<1x8x16x16xf32, #tpu.memory_space<vmem>>, vector<1x8x16x16xf32>
    %c0_3 = arith.constant 0 : index
    %c0_4 = arith.constant 0 : index
    %c0_5 = arith.constant 0 : index
    %c0_6 = arith.constant 0 : index
    %1 = vector.load %arg3[%c0_3, %c0_4, %c0_5, %c0_6] : memref<1x1x1x16xf32, #tpu.memory_space<vmem>>, vector<1x1x1x16xf32>
    %2 = vector.broadcast %1 : vector<1x1x1x16xf32> to vector<1x8x16x16xf32>
    %3 = arith.mulf %0, %2 : vector<1x8x16x16xf32>
    %c0_7 = arith.constant 0 : index
    %c0_8 = arith.constant 0 : index
    %c0_9 = arith.constant 0 : index
    %c0_10 = arith.constant 0 : index
    %4 = vector.load %arg2[%c0_7, %c0_8, %c0_9, %c0_10] : memref<1x8x16x16xf32, #tpu.memory_space<vmem>>, vector<1x8x16x16xf32>
    %c0_11 = arith.constant 0 : index
    %c0_12 = arith.constant 0 : index
    %c0_13 = arith.constant 0 : index
    %c0_14 = arith.constant 0 : index
    %5 = vector.load %arg4[%c0_11, %c0_12, %c0_13, %c0_14] : memref<1x1x1x16xf32, #tpu.memory_space<vmem>>, vector<1x1x1x16xf32>
    %6 = vector.broadcast %5 : vector<1x1x1x16xf32> to vector<1x8x16x16xf32>
    %7 = arith.mulf %4, %6 : vector<1x8x16x16xf32>
    %8 = arith.addf %3, %7 : vector<1x8x16x16xf32>
    %c0_15 = arith.constant 0 : index
    %c0_16 = arith.constant 0 : index
    %c0_17 = arith.constant 0 : index
    %c0_18 = arith.constant 0 : index
    %9 = vector.load %arg5[%c0_15, %c0_16, %c0_17, %c0_18] : memref<1x1x1x16xf32, #tpu.memory_space<vmem>>, vector<1x1x1x16xf32>
    %10 = vector.broadcast %9 : vector<1x1x1x16xf32> to vector<1x8x16x16xf32>
    %11 = arith.addf %8, %10 : vector<1x8x16x16xf32>
    %cst = arith.constant 0.000000e+00 : f32
    %12 = vector.broadcast %cst : f32 to vector<1x8x16x16xf32>
    %13 = arith.maximumf %11, %12 : vector<1x8x16x16xf32>
    %c0_19 = arith.constant 0 : index
    %c0_20 = arith.constant 0 : index
    %c0_21 = arith.constant 0 : index
    %c0_22 = arith.constant 0 : index
    %14 = vector.load %arg6[%c0_19, %c0_20, %c0_21, %c0_22] : memref<1x8x16x16xf32, #tpu.memory_space<vmem>>, vector<1x8x16x16xf32>
    tpu.vector_store %arg6[%c0_19, %c0_20, %c0_21, %c0_22], %13 {strides = array<i32>} : memref<1x8x16x16xf32, #tpu.memory_space<vmem>>, vector<1x8x16x16xf32>,
    %cst_23 = arith.constant dense<0.000000e+00> : vector<1x8x16xf32>
    %15 = vector.multi_reduction <add>, %13, %cst_23 [2] : vector<1x8x16x16xf32> to vector<1x8x16xf32>
    %16 = vector.shape_cast %15 : vector<1x8x16xf32> to vector<1x8x1x16xf32>
    %c0_24 = arith.constant 0 : index
    %c0_25 = arith.constant 0 : index
    %c0_26 = arith.constant 0 : index
    %c0_27 = arith.constant 0 : index
    %17 = vector.load %arg7[%c0_24, %c0_25, %c0_26, %c0_27] : memref<1x8x1x16xf32, #tpu.memory_space<vmem>>, vector<1x8x1x16xf32>
    tpu.vector_store %arg7[%c0_24, %c0_25, %c0_26, %c0_27], %16 {strides = array<i32>} : memref<1x8x1x16xf32, #tpu.memory_space<vmem>>, vector<1x8x1x16xf32>,
    return
  }
  func.func @transform_0(%arg0: i32) -> (i32, i32, i32, i32) {
    %c0_i32 = arith.constant 0 : i32
    %c0_i32_0 = arith.constant 0 : i32
    %c0_i32_1 = arith.constant 0 : i32
    %c0_i32_2 = arith.constant 0 : i32
    return %arg0, %c0_i32, %c0_i32_0, %c0_i32_1 : i32, i32, i32, i32
  }
  func.func @transform_1(%arg0: i32) -> (i32, i32, i32, i32) {
    %c0_i32 = arith.constant 0 : i32
    %c0_i32_0 = arith.constant 0 : i32
    %c0_i32_1 = arith.constant 0 : i32
    %c0_i32_2 = arith.constant 0 : i32
    return %arg0, %c0_i32, %c0_i32_0, %c0_i32_1 : i32, i32, i32, i32
  }
  func.func @transform_2(%arg0: i32) -> (i32, i32, i32, i32) {
    %c0_i32 = arith.constant 0 : i32
    %c0_i32_0 = arith.constant 0 : i32
    %c0_i32_1 = arith.constant 0 : i32
    %c0_i32_2 = arith.constant 0 : i32
    %c0_i32_3 = arith.constant 0 : i32
    return %c0_i32, %c0_i32_0, %c0_i32_1, %c0_i32_2 : i32, i32, i32, i32
  }
  func.func @transform_3(%arg0: i32) -> (i32, i32, i32, i32) {
    %c0_i32 = arith.constant 0 : i32
    %c0_i32_0 = arith.constant 0 : i32
    %c0_i32_1 = arith.constant 0 : i32
    %c0_i32_2 = arith.constant 0 : i32
    %c0_i32_3 = arith.constant 0 : i32
    return %c0_i32, %c0_i32_0, %c0_i32_1, %c0_i32_2 : i32, i32, i32, i32
  }
  func.func @transform_4(%arg0: i32) -> (i32, i32, i32, i32) {
    %c0_i32 = arith.constant 0 : i32
    %c0_i32_0 = arith.constant 0 : i32
    %c0_i32_1 = arith.constant 0 : i32
    %c0_i32_2 = arith.constant 0 : i32
    %c0_i32_3 = arith.constant 0 : i32
    return %c0_i32, %c0_i32_0, %c0_i32_1, %c0_i32_2 : i32, i32, i32, i32
  }
  func.func @transform_5(%arg0: i32) -> (i32, i32, i32, i32) {
    %c0_i32 = arith.constant 0 : i32
    %c0_i32_0 = arith.constant 0 : i32
    %c0_i32_1 = arith.constant 0 : i32
    %c0_i32_2 = arith.constant 0 : i32
    return %arg0, %c0_i32, %c0_i32_0, %c0_i32_1 : i32, i32, i32, i32
  }
  func.func @transform_6(%arg0: i32) -> (i32, i32, i32, i32) {
    %c0_i32 = arith.constant 0 : i32
    %c0_i32_0 = arith.constant 0 : i32
    %c0_i32_1 = arith.constant 0 : i32
    %c0_i32_2 = arith.constant 0 : i32
    return %arg0, %c0_i32, %c0_i32_0, %c0_i32_1 : i32, i32, i32, i32
  }
}

module attributes {stable_mosaic.version = 11 : i64} {
  func.func @_wvsum_kernel(%arg0: i32, %arg1: memref<1x8x16x16xf32, #tpu.memory_space<vmem>>, %arg2: memref<1x8x1x1xf32, #tpu.memory_space<vmem>>, %arg3: memref<1x16x16xf32, #tpu.memory_space<vmem>>) attributes {dimension_semantics = [#tpu.dimension_semantics<parallel>], iteration_bounds = array<i64: 2>, scalar_prefetch = 0 : i64, scratch_operands = 0 : i64, tpu.core_type = #tpu.core_type<tc>, window_params = [{transform_indices = @transform_0, window_bounds = array<i64: 1, 8, 16, 16>}, {transform_indices = @transform_1, window_bounds = array<i64: 1, 8, 1, 1>}, {transform_indices = @transform_2, window_bounds = array<i64: 1, 16, 16>}]} {
    %c0 = arith.constant 0 : index
    %c0_0 = arith.constant 0 : index
    %c0_1 = arith.constant 0 : index
    %c0_2 = arith.constant 0 : index
    %0 = vector.load %arg1[%c0, %c0_0, %c0_1, %c0_2] : memref<1x8x16x16xf32, #tpu.memory_space<vmem>>, vector<1x8x16x16xf32>
    %1 = vector.shape_cast %0 : vector<1x8x16x16xf32> to vector<8x16x16xf32>
    %c0_3 = arith.constant 0 : index
    %c0_4 = arith.constant 0 : index
    %c0_5 = arith.constant 0 : index
    %c0_6 = arith.constant 0 : index
    %2 = vector.load %arg2[%c0_3, %c0_4, %c0_5, %c0_6] : memref<1x8x1x1xf32, #tpu.memory_space<vmem>>, vector<1x8x1x1xf32>
    %3 = vector.shape_cast %2 : vector<1x8x1x1xf32> to vector<8x1x1xf32>
    %4 = vector.broadcast %3 : vector<8x1x1xf32> to vector<8x16x16xf32>
    %5 = arith.mulf %1, %4 : vector<8x16x16xf32>
    %cst = arith.constant dense<0.000000e+00> : vector<16x16xf32>
    %6 = vector.multi_reduction <add>, %5, %cst [0] : vector<8x16x16xf32> to vector<16x16xf32>
    %c0_7 = arith.constant 0 : index
    %c0_8 = arith.constant 0 : index
    %c0_9 = arith.constant 0 : index
    %7 = vector.load %arg3[%c0_7, %c0_8, %c0_9] : memref<1x16x16xf32, #tpu.memory_space<vmem>>, vector<1x16x16xf32>
    %8 = vector.shape_cast %7 : vector<1x16x16xf32> to vector<16x16xf32>
    %9 = vector.shape_cast %6 : vector<16x16xf32> to vector<1x16x16xf32>
    tpu.vector_store %arg3[%c0_7, %c0_8, %c0_9], %9 {strides = array<i32>} : memref<1x16x16xf32, #tpu.memory_space<vmem>>, vector<1x16x16xf32>,
    return
  }
  func.func @transform_0(%arg0: i32) -> (i32, i32, i32, i32) {
    %c0_i32 = arith.constant 0 : i32
    %c0_i32_0 = arith.constant 0 : i32
    %c0_i32_1 = arith.constant 0 : i32
    %c0_i32_2 = arith.constant 0 : i32
    return %arg0, %c0_i32, %c0_i32_0, %c0_i32_1 : i32, i32, i32, i32
  }
  func.func @transform_1(%arg0: i32) -> (i32, i32, i32, i32) {
    %c0_i32 = arith.constant 0 : i32
    %c0_i32_0 = arith.constant 0 : i32
    %c0_i32_1 = arith.constant 0 : i32
    %c0_i32_2 = arith.constant 0 : i32
    return %arg0, %c0_i32, %c0_i32_0, %c0_i32_1 : i32, i32, i32, i32
  }
  func.func @transform_2(%arg0: i32) -> (i32, i32, i32) {
    %c0_i32 = arith.constant 0 : i32
    %c0_i32_0 = arith.constant 0 : i32
    %c0_i32_1 = arith.constant 0 : i32
    return %arg0, %c0_i32, %c0_i32_0 : i32, i32, i32
  }
}

module attributes {stable_mosaic.version = 11 : i64} {
  func.func @_bn2_add_relu_kernel(%arg0: i32, %arg1: memref<256x16xf32, #tpu.memory_space<vmem>>, %arg2: memref<256x16xf32, #tpu.memory_space<vmem>>, %arg3: memref<1x16xf32, #tpu.memory_space<vmem>>, %arg4: memref<1x16xf32, #tpu.memory_space<vmem>>, %arg5: memref<1x16xf32, #tpu.memory_space<vmem>>, %arg6: memref<256x16xf32, #tpu.memory_space<vmem>>) attributes {dimension_semantics = [#tpu.dimension_semantics<parallel>], iteration_bounds = array<i64: 1>, scalar_prefetch = 0 : i64, scratch_operands = 0 : i64, tpu.core_type = #tpu.core_type<tc>, window_params = [{transform_indices = @transform_0, window_bounds = array<i64: 256, 16>}, {transform_indices = @transform_1, window_bounds = array<i64: 256, 16>}, {pipeline_mode = #tpu.pipeline_mode<synchronous>, transform_indices = @transform_2, window_bounds = array<i64: 1, 16>}, {pipeline_mode = #tpu.pipeline_mode<synchronous>, transform_indices = @transform_3, window_bounds = array<i64: 1, 16>}, {pipeline_mode = #tpu.pipeline_mode<synchronous>, transform_indices = @transform_4, window_bounds = array<i64: 1, 16>}, {transform_indices = @transform_5, window_bounds = array<i64: 256, 16>}]} {
    %c0 = arith.constant 0 : index
    %c0_0 = arith.constant 0 : index
    %0 = vector.load %arg1[%c0, %c0_0] : memref<256x16xf32, #tpu.memory_space<vmem>>, vector<256x16xf32>
    %c0_1 = arith.constant 0 : index
    %c0_2 = arith.constant 0 : index
    %1 = vector.load %arg3[%c0_1, %c0_2] : memref<1x16xf32, #tpu.memory_space<vmem>>, vector<1x16xf32>
    %2 = vector.broadcast %1 : vector<1x16xf32> to vector<256x16xf32>
    %3 = arith.mulf %0, %2 : vector<256x16xf32>
    %c0_3 = arith.constant 0 : index
    %c0_4 = arith.constant 0 : index
    %4 = vector.load %arg2[%c0_3, %c0_4] : memref<256x16xf32, #tpu.memory_space<vmem>>, vector<256x16xf32>
    %c0_5 = arith.constant 0 : index
    %c0_6 = arith.constant 0 : index
    %5 = vector.load %arg4[%c0_5, %c0_6] : memref<1x16xf32, #tpu.memory_space<vmem>>, vector<1x16xf32>
    %6 = vector.broadcast %5 : vector<1x16xf32> to vector<256x16xf32>
    %7 = arith.mulf %4, %6 : vector<256x16xf32>
    %8 = arith.addf %3, %7 : vector<256x16xf32>
    %c0_7 = arith.constant 0 : index
    %c0_8 = arith.constant 0 : index
    %9 = vector.load %arg5[%c0_7, %c0_8] : memref<1x16xf32, #tpu.memory_space<vmem>>, vector<1x16xf32>
    %10 = vector.broadcast %9 : vector<1x16xf32> to vector<256x16xf32>
    %11 = arith.addf %8, %10 : vector<256x16xf32>
    %cst = arith.constant 0.000000e+00 : f32
    %12 = vector.broadcast %cst : f32 to vector<256x16xf32>
    %13 = arith.maximumf %11, %12 : vector<256x16xf32>
    %c0_9 = arith.constant 0 : index
    %c0_10 = arith.constant 0 : index
    %14 = vector.load %arg6[%c0_9, %c0_10] : memref<256x16xf32, #tpu.memory_space<vmem>>, vector<256x16xf32>
    tpu.vector_store %arg6[%c0_9, %c0_10], %13 {strides = array<i32>} : memref<256x16xf32, #tpu.memory_space<vmem>>, vector<256x16xf32>,
    return
  }
  func.func @transform_0(%arg0: i32) -> (i32, i32) {
    %c0_i32 = arith.constant 0 : i32
    %c0_i32_0 = arith.constant 0 : i32
    return %arg0, %c0_i32 : i32, i32
  }
  func.func @transform_1(%arg0: i32) -> (i32, i32) {
    %c0_i32 = arith.constant 0 : i32
    %c0_i32_0 = arith.constant 0 : i32
    return %arg0, %c0_i32 : i32, i32
  }
  func.func @transform_2(%arg0: i32) -> (i32, i32) {
    %c0_i32 = arith.constant 0 : i32
    %c0_i32_0 = arith.constant 0 : i32
    %c0_i32_1 = arith.constant 0 : i32
    return %c0_i32, %c0_i32_0 : i32, i32
  }
  func.func @transform_3(%arg0: i32) -> (i32, i32) {
    %c0_i32 = arith.constant 0 : i32
    %c0_i32_0 = arith.constant 0 : i32
    %c0_i32_1 = arith.constant 0 : i32
    return %c0_i32, %c0_i32_0 : i32, i32
  }
  func.func @transform_4(%arg0: i32) -> (i32, i32) {
    %c0_i32 = arith.constant 0 : i32
    %c0_i32_0 = arith.constant 0 : i32
    %c0_i32_1 = arith.constant 0 : i32
    return %c0_i32, %c0_i32_0 : i32, i32
  }
  func.func @transform_5(%arg0: i32) -> (i32, i32) {
    %c0_i32 = arith.constant 0 : i32
    %c0_i32_0 = arith.constant 0 : i32
    return %arg0, %c0_i32 : i32, i32
  }
}

module attributes {stable_mosaic.version = 11 : i64} {
  func.func @kernel(%arg0: i32, %arg1: i32, %arg2: memref<1x8x16x16xf32, #tpu.memory_space<vmem>>, %arg3: memref<9x16x16xf32, #tpu.memory_space<vmem>>, %arg4: memref<1x16xf32, #tpu.memory_space<vmem>>, %arg5: memref<1x8x1x1xf32, #tpu.memory_space<vmem>>, %arg6: memref<1x1x16x1xf32, #tpu.memory_space<vmem>>, %arg7: memref<1x1x1x16xf32, #tpu.memory_space<vmem>>, %arg8: memref<1x8x16x16xf32, #tpu.memory_space<vmem>>, %arg9: memref<1x1x1x16xf32, #tpu.memory_space<vmem>>, %arg10: memref<1x1x1x16xf32, #tpu.memory_space<vmem>>, %arg11: memref<8x24x16xf32, #tpu.memory_space<vmem>>) attributes {dimension_semantics = [#tpu.dimension_semantics<parallel>, #tpu.dimension_semantics<parallel>], iteration_bounds = array<i64: 2, 1>, scalar_prefetch = 0 : i64, scratch_operands = 1 : i64, tpu.core_type = #tpu.core_type<tc>, window_params = [{transform_indices = @transform_0, window_bounds = array<i64: 1, 8, 16, 16>}, {pipeline_mode = #tpu.pipeline_mode<synchronous>, transform_indices = @transform_1, window_bounds = array<i64: 9, 16, 16>}, {pipeline_mode = #tpu.pipeline_mode<synchronous>, transform_indices = @transform_2, window_bounds = array<i64: 1, 16>}, {transform_indices = @transform_3, window_bounds = array<i64: 1, 8, 1, 1>}, {transform_indices = @transform_4, window_bounds = array<i64: 1, 1, 16, 1>}, {transform_indices = @transform_5, window_bounds = array<i64: 1, 1, 1, 16>}, {transform_indices = @transform_6, window_bounds = array<i64: 1, 8, 16, 16>}, {transform_indices = @transform_7, window_bounds = array<i64: 1, 1, 1, 16>}, {transform_indices = @transform_8, window_bounds = array<i64: 1, 1, 1, 16>}]} {
    %c0 = arith.constant 0 : index
    %c0_0 = arith.constant 0 : index
    %c0_1 = arith.constant 0 : index
    %c0_2 = arith.constant 0 : index
    %0 = vector.load %arg5[%c0, %c0_0, %c0_1, %c0_2] : memref<1x8x1x1xf32, #tpu.memory_space<vmem>>, vector<1x8x1x1xf32>
    %1 = vector.shape_cast %0 : vector<1x8x1x1xf32> to vector<8x1x1xf32>
    %c0_3 = arith.constant 0 : index
    %c0_4 = arith.constant 0 : index
    %c0_5 = arith.constant 0 : index
    %c0_6 = arith.constant 0 : index
    %2 = vector.load %arg6[%c0_3, %c0_4, %c0_5, %c0_6] : memref<1x1x16x1xf32, #tpu.memory_space<vmem>>, vector<1x1x16x1xf32>
    %3 = vector.shape_cast %2 : vector<1x1x16x1xf32> to vector<1x16x1xf32>
    %4 = vector.broadcast %1 : vector<8x1x1xf32> to vector<8x16x1xf32>
    %5 = vector.broadcast %3 : vector<1x16x1xf32> to vector<8x16x1xf32>
    %6 = arith.mulf %4, %5 : vector<8x16x1xf32>
    %c0_7 = arith.constant 0 : index
    %c0_8 = arith.constant 0 : index
    %c0_9 = arith.constant 0 : index
    %c0_10 = arith.constant 0 : index
    %7 = vector.load %arg7[%c0_7, %c0_8, %c0_9, %c0_10] : memref<1x1x1x16xf32, #tpu.memory_space<vmem>>, vector<1x1x1x16xf32>
    %8 = vector.shape_cast %7 : vector<1x1x1x16xf32> to vector<1x1x16xf32>
    %9 = vector.broadcast %6 : vector<8x16x1xf32> to vector<8x16x16xf32>
    %10 = vector.broadcast %8 : vector<1x1x16xf32> to vector<8x16x16xf32>
    %11 = arith.mulf %9, %10 : vector<8x16x16xf32>
    %cst = arith.constant 0.000000e+00 : f32
    %12 = vector.broadcast %cst : f32 to vector<8x4x16xf32>
    %c0_11 = arith.constant 0 : index
    %c0_12 = arith.constant 0 : index
    %c0_13 = arith.constant 0 : index
    %13 = vector.load %arg11[%c0_11, %c0_12, %c0_13] : memref<8x24x16xf32, #tpu.memory_space<vmem>>, vector<8x4x16xf32>
    tpu.vector_store %arg11[%c0_11, %c0_12, %c0_13], %12 {strides = array<i32>} : memref<8x24x16xf32, #tpu.memory_space<vmem>>, vector<8x4x16xf32>,
    %c0_14 = arith.constant 0 : index
    %c20 = arith.constant 20 : index
    %c0_15 = arith.constant 0 : index
    %14 = vector.load %arg11[%c0_14, %c20, %c0_15] : memref<8x24x16xf32, #tpu.memory_space<vmem>>, vector<8x4x16xf32>
    tpu.vector_store %arg11[%c0_14, %c20, %c0_15], %12 {strides = array<i32>} : memref<8x24x16xf32, #tpu.memory_space<vmem>>, vector<8x4x16xf32>,
    %c0_16 = arith.constant 0 : index
    %c0_17 = arith.constant 0 : index
    %c0_18 = arith.constant 0 : index
    %c0_19 = arith.constant 0 : index
    %15 = vector.load %arg2[%c0_16, %c0_17, %c0_18, %c0_19] : memref<1x8x16x16xf32, #tpu.memory_space<vmem>>, vector<1x8x16x16xf32>
    %16 = vector.shape_cast %15 : vector<1x8x16x16xf32> to vector<8x16x16xf32>
    %17 = arith.mulf %16, %11 : vector<8x16x16xf32>
    %c0_20 = arith.constant 0 : index
    %c4 = arith.constant 4 : index
    %c0_21 = arith.constant 0 : index
    %18 = vector.load %arg11[%c0_20, %c4, %c0_21] : memref<8x24x16xf32, #tpu.memory_space<vmem>>, vector<8x16x16xf32>
    tpu.vector_store %arg11[%c0_20, %c4, %c0_21], %17 {strides = array<i32>} : memref<8x24x16xf32, #tpu.memory_space<vmem>>, vector<8x16x16xf32>,
    %cst_22 = arith.constant 0.000000e+00 : f32
    %19 = vector.broadcast %cst_22 : f32 to vector<128x16xf32>
    %c0_23 = arith.constant 0 : index
    %c0_24 = arith.constant 0 : index
    %c0_25 = arith.constant 0 : index
    %20 = vector.load %arg11[%c0_23, %c0_24, %c0_25] : memref<8x24x16xf32, #tpu.memory_space<vmem>>, vector<8x16x16xf32>
    %21 = vector.shape_cast %20 : vector<8x16x16xf32> to vector<128x16xf32>
    %22 = arith.truncf %21 : vector<128x16xf32> to vector<128x16xbf16>
    %c0_26 = arith.constant 0 : index
    %c0_27 = arith.constant 0 : index
    %c0_28 = arith.constant 0 : index
    %23 = vector.load %arg3[%c0_26, %c0_27, %c0_28] : memref<9x16x16xf32, #tpu.memory_space<vmem>>, vector<1x16x16xf32>
    %24 = vector.shape_cast %23 : vector<1x16x16xf32> to vector<16x16xf32>
    %25 = arith.truncf %24 : vector<16x16xf32> to vector<16x16xbf16>
    %cst_29 = arith.constant dense<0.000000e+00> : vector<128x16xf32>
    %26 = tpu.matmul %22, %25, %cst_29 {dimension_numbers = #tpu.dot_dimension_numbers<[1], [0], [0], [1], [0, 0, 1, 1], [], []>} : vector<128x16xbf16>, vector<16x16xbf16>, vector<128x16xf32> -> vector<128x16xf32>
    %27 = arith.addf %19, %26 : vector<128x16xf32>
    %c0_30 = arith.constant 0 : index
    %c1 = arith.constant 1 : index
    %c0_31 = arith.constant 0 : index
    %28 = vector.load %arg11[%c0_30, %c1, %c0_31] : memref<8x24x16xf32, #tpu.memory_space<vmem>>, vector<8x16x16xf32>
    %29 = vector.shape_cast %28 : vector<8x16x16xf32> to vector<128x16xf32>
    %30 = arith.truncf %29 : vector<128x16xf32> to vector<128x16xbf16>
    %c1_32 = arith.constant 1 : index
    %c0_33 = arith.constant 0 : index
    %c0_34 = arith.constant 0 : index
    %31 = vector.load %arg3[%c1_32, %c0_33, %c0_34] : memref<9x16x16xf32, #tpu.memory_space<vmem>>, vector<1x16x16xf32>
    %32 = vector.shape_cast %31 : vector<1x16x16xf32> to vector<16x16xf32>
    %33 = arith.truncf %32 : vector<16x16xf32> to vector<16x16xbf16>
    %cst_35 = arith.constant dense<0.000000e+00> : vector<128x16xf32>
    %34 = tpu.matmul %30, %33, %cst_35 {dimension_numbers = #tpu.dot_dimension_numbers<[1], [0], [0], [1], [0, 0, 1, 1], [], []>} : vector<128x16xbf16>, vector<16x16xbf16>, vector<128x16xf32> -> vector<128x16xf32>
    %35 = arith.addf %27, %34 : vector<128x16xf32>
    %c0_36 = arith.constant 0 : index
    %c2 = arith.constant 2 : index
    %c0_37 = arith.constant 0 : index
    %36 = vector.load %arg11[%c0_36, %c2, %c0_37] : memref<8x24x16xf32, #tpu.memory_space<vmem>>, vector<8x16x16xf32>
    %37 = vector.shape_cast %36 : vector<8x16x16xf32> to vector<128x16xf32>
    %38 = arith.truncf %37 : vector<128x16xf32> to vector<128x16xbf16>
    %c2_38 = arith.constant 2 : index
    %c0_39 = arith.constant 0 : index
    %c0_40 = arith.constant 0 : index
    %39 = vector.load %arg3[%c2_38, %c0_39, %c0_40] : memref<9x16x16xf32, #tpu.memory_space<vmem>>, vector<1x16x16xf32>
    %40 = vector.shape_cast %39 : vector<1x16x16xf32> to vector<16x16xf32>
    %41 = arith.truncf %40 : vector<16x16xf32> to vector<16x16xbf16>
    %cst_41 = arith.constant dense<0.000000e+00> : vector<128x16xf32>
    %42 = tpu.matmul %38, %41, %cst_41 {dimension_numbers = #tpu.dot_dimension_numbers<[1], [0], [0], [1], [0, 0, 1, 1], [], []>} : vector<128x16xbf16>, vector<16x16xbf16>, vector<128x16xf32> -> vector<128x16xf32>
    %43 = arith.addf %35, %42 : vector<128x16xf32>
    %c0_42 = arith.constant 0 : index
    %c3 = arith.constant 3 : index
    %c0_43 = arith.constant 0 : index
    %44 = vector.load %arg11[%c0_42, %c3, %c0_43] : memref<8x24x16xf32, #tpu.memory_space<vmem>>, vector<8x16x16xf32>
    %45 = vector.shape_cast %44 : vector<8x16x16xf32> to vector<128x16xf32>
    %46 = arith.truncf %45 : vector<128x16xf32> to vector<128x16xbf16>
    %c3_44 = arith.constant 3 : index
    %c0_45 = arith.constant 0 : index
    %c0_46 = arith.constant 0 : index
    %47 = vector.load %arg3[%c3_44, %c0_45, %c0_46] : memref<9x16x16xf32, #tpu.memory_space<vmem>>, vector<1x16x16xf32>
    %48 = vector.shape_cast %47 : vector<1x16x16xf32> to vector<16x16xf32>
    %49 = arith.truncf %48 : vector<16x16xf32> to vector<16x16xbf16>
    %cst_47 = arith.constant dense<0.000000e+00> : vector<128x16xf32>
    %50 = tpu.matmul %46, %49, %cst_47 {dimension_numbers = #tpu.dot_dimension_numbers<[1], [0], [0], [1], [0, 0, 1, 1], [], []>} : vector<128x16xbf16>, vector<16x16xbf16>, vector<128x16xf32> -> vector<128x16xf32>
    %51 = arith.addf %43, %50 : vector<128x16xf32>
    %c0_48 = arith.constant 0 : index
    %c4_49 = arith.constant 4 : index
    %c0_50 = arith.constant 0 : index
    %52 = vector.load %arg11[%c0_48, %c4_49, %c0_50] : memref<8x24x16xf32, #tpu.memory_space<vmem>>, vector<8x16x16xf32>
    %53 = vector.shape_cast %52 : vector<8x16x16xf32> to vector<128x16xf32>
    %54 = arith.truncf %53 : vector<128x16xf32> to vector<128x16xbf16>
    %c4_51 = arith.constant 4 : index
    %c0_52 = arith.constant 0 : index
    %c0_53 = arith.constant 0 : index
    %55 = vector.load %arg3[%c4_51, %c0_52, %c0_53] : memref<9x16x16xf32, #tpu.memory_space<vmem>>, vector<1x16x16xf32>
    %56 = vector.shape_cast %55 : vector<1x16x16xf32> to vector<16x16xf32>
    %57 = arith.truncf %56 : vector<16x16xf32> to vector<16x16xbf16>
    %cst_54 = arith.constant dense<0.000000e+00> : vector<128x16xf32>
    %58 = tpu.matmul %54, %57, %cst_54 {dimension_numbers = #tpu.dot_dimension_numbers<[1], [0], [0], [1], [0, 0, 1, 1], [], []>} : vector<128x16xbf16>, vector<16x16xbf16>, vector<128x16xf32> -> vector<128x16xf32>
    %59 = arith.addf %51, %58 : vector<128x16xf32>
    %c0_55 = arith.constant 0 : index
    %c5 = arith.constant 5 : index
    %c0_56 = arith.constant 0 : index
    %60 = vector.load %arg11[%c0_55, %c5, %c0_56] : memref<8x24x16xf32, #tpu.memory_space<vmem>>, vector<8x16x16xf32>
    %61 = vector.shape_cast %60 : vector<8x16x16xf32> to vector<128x16xf32>
    %62 = arith.truncf %61 : vector<128x16xf32> to vector<128x16xbf16>
    %c5_57 = arith.constant 5 : index
    %c0_58 = arith.constant 0 : index
    %c0_59 = arith.constant 0 : index
    %63 = vector.load %arg3[%c5_57, %c0_58, %c0_59] : memref<9x16x16xf32, #tpu.memory_space<vmem>>, vector<1x16x16xf32>
    %64 = vector.shape_cast %63 : vector<1x16x16xf32> to vector<16x16xf32>
    %65 = arith.truncf %64 : vector<16x16xf32> to vector<16x16xbf16>
    %cst_60 = arith.constant dense<0.000000e+00> : vector<128x16xf32>
    %66 = tpu.matmul %62, %65, %cst_60 {dimension_numbers = #tpu.dot_dimension_numbers<[1], [0], [0], [1], [0, 0, 1, 1], [], []>} : vector<128x16xbf16>, vector<16x16xbf16>, vector<128x16xf32> -> vector<128x16xf32>
    %67 = arith.addf %59, %66 : vector<128x16xf32>
    %c0_61 = arith.constant 0 : index
    %c6 = arith.constant 6 : index
    %c0_62 = arith.constant 0 : index
    %68 = vector.load %arg11[%c0_61, %c6, %c0_62] : memref<8x24x16xf32, #tpu.memory_space<vmem>>, vector<8x16x16xf32>
    %69 = vector.shape_cast %68 : vector<8x16x16xf32> to vector<128x16xf32>
    %70 = arith.truncf %69 : vector<128x16xf32> to vector<128x16xbf16>
    %c6_63 = arith.constant 6 : index
    %c0_64 = arith.constant 0 : index
    %c0_65 = arith.constant 0 : index
    %71 = vector.load %arg3[%c6_63, %c0_64, %c0_65] : memref<9x16x16xf32, #tpu.memory_space<vmem>>, vector<1x16x16xf32>
    %72 = vector.shape_cast %71 : vector<1x16x16xf32> to vector<16x16xf32>
    %73 = arith.truncf %72 : vector<16x16xf32> to vector<16x16xbf16>
    %cst_66 = arith.constant dense<0.000000e+00> : vector<128x16xf32>
    %74 = tpu.matmul %70, %73, %cst_66 {dimension_numbers = #tpu.dot_dimension_numbers<[1], [0], [0], [1], [0, 0, 1, 1], [], []>} : vector<128x16xbf16>, vector<16x16xbf16>, vector<128x16xf32> -> vector<128x16xf32>
    %75 = arith.addf %67, %74 : vector<128x16xf32>
    %c0_67 = arith.constant 0 : index
    %c7 = arith.constant 7 : index
    %c0_68 = arith.constant 0 : index
    %76 = vector.load %arg11[%c0_67, %c7, %c0_68] : memref<8x24x16xf32, #tpu.memory_space<vmem>>, vector<8x16x16xf32>
    %77 = vector.shape_cast %76 : vector<8x16x16xf32> to vector<128x16xf32>
    %78 = arith.truncf %77 : vector<128x16xf32> to vector<128x16xbf16>
    %c7_69 = arith.constant 7 : index
    %c0_70 = arith.constant 0 : index
    %c0_71 = arith.constant 0 : index
    %79 = vector.load %arg3[%c7_69, %c0_70, %c0_71] : memref<9x16x16xf32, #tpu.memory_space<vmem>>, vector<1x16x16xf32>
    %80 = vector.shape_cast %79 : vector<1x16x16xf32> to vector<16x16xf32>
    %81 = arith.truncf %80 : vector<16x16xf32> to vector<16x16xbf16>
    %cst_72 = arith.constant dense<0.000000e+00> : vector<128x16xf32>
    %82 = tpu.matmul %78, %81, %cst_72 {dimension_numbers = #tpu.dot_dimension_numbers<[1], [0], [0], [1], [0, 0, 1, 1], [], []>} : vector<128x16xbf16>, vector<16x16xbf16>, vector<128x16xf32> -> vector<128x16xf32>
    %83 = arith.addf %75, %82 : vector<128x16xf32>
    %c0_73 = arith.constant 0 : index
    %c8 = arith.constant 8 : index
    %c0_74 = arith.constant 0 : index
    %84 = vector.load %arg11[%c0_73, %c8, %c0_74] : memref<8x24x16xf32, #tpu.memory_space<vmem>>, vector<8x16x16xf32>
    %85 = vector.shape_cast %84 : vector<8x16x16xf32> to vector<128x16xf32>
    %86 = arith.truncf %85 : vector<128x16xf32> to vector<128x16xbf16>
    %c8_75 = arith.constant 8 : index
    %c0_76 = arith.constant 0 : index
    %c0_77 = arith.constant 0 : index
    %87 = vector.load %arg3[%c8_75, %c0_76, %c0_77] : memref<9x16x16xf32, #tpu.memory_space<vmem>>, vector<1x16x16xf32>
    %88 = vector.shape_cast %87 : vector<1x16x16xf32> to vector<16x16xf32>
    %89 = arith.truncf %88 : vector<16x16xf32> to vector<16x16xbf16>
    %cst_78 = arith.constant dense<0.000000e+00> : vector<128x16xf32>
    %90 = tpu.matmul %86, %89, %cst_78 {dimension_numbers = #tpu.dot_dimension_numbers<[1], [0], [0], [1], [0, 0, 1, 1], [], []>} : vector<128x16xbf16>, vector<16x16xbf16>, vector<128x16xf32> -> vector<128x16xf32>
    %91 = arith.addf %83, %90 : vector<128x16xf32>
    %c0_79 = arith.constant 0 : index
    %c0_80 = arith.constant 0 : index
    %92 = vector.load %arg4[%c0_79, %c0_80] : memref<1x16xf32, #tpu.memory_space<vmem>>, vector<1x16xf32>
    %93 = vector.broadcast %92 : vector<1x16xf32> to vector<128x16xf32>
    %94 = arith.addf %91, %93 : vector<128x16xf32>
    %95 = vector.shape_cast %94 : vector<128x16xf32> to vector<8x16x16xf32>
    %c0_81 = arith.constant 0 : index
    %c0_82 = arith.constant 0 : index
    %c0_83 = arith.constant 0 : index
    %c0_84 = arith.constant 0 : index
    %96 = vector.load %arg8[%c0_81, %c0_82, %c0_83, %c0_84] : memref<1x8x16x16xf32, #tpu.memory_space<vmem>>, vector<1x8x16x16xf32>
    %97 = vector.shape_cast %96 : vector<1x8x16x16xf32> to vector<8x16x16xf32>
    %98 = vector.shape_cast %95 : vector<8x16x16xf32> to vector<1x8x16x16xf32>
    tpu.vector_store %arg8[%c0_81, %c0_82, %c0_83, %c0_84], %98 {strides = array<i32>} : memref<1x8x16x16xf32, #tpu.memory_space<vmem>>, vector<1x8x16x16xf32>,
    %cst_85 = arith.constant dense<0.000000e+00> : vector<16xf32>
    %99 = vector.multi_reduction <add>, %94, %cst_85 [0] : vector<128x16xf32> to vector<16xf32>
    %100 = vector.shape_cast %99 : vector<16xf32> to vector<1x16xf32>
    %101 = vector.shape_cast %100 : vector<1x16xf32> to vector<1x1x1x16xf32>
    %c0_86 = arith.constant 0 : index
    %c0_87 = arith.constant 0 : index
    %c0_88 = arith.constant 0 : index
    %c0_89 = arith.constant 0 : index
    %102 = vector.load %arg9[%c0_86, %c0_87, %c0_88, %c0_89] : memref<1x1x1x16xf32, #tpu.memory_space<vmem>>, vector<1x1x1x16xf32>
    tpu.vector_store %arg9[%c0_86, %c0_87, %c0_88, %c0_89], %101 {strides = array<i32>} : memref<1x1x1x16xf32, #tpu.memory_space<vmem>>, vector<1x1x1x16xf32>,
    %103 = arith.mulf %94, %94 : vector<128x16xf32>
    %cst_90 = arith.constant dense<0.000000e+00> : vector<16xf32>
    %104 = vector.multi_reduction <add>, %103, %cst_90 [0] : vector<128x16xf32> to vector<16xf32>
    %105 = vector.shape_cast %104 : vector<16xf32> to vector<1x16xf32>
    %106 = vector.shape_cast %105 : vector<1x16xf32> to vector<1x1x1x16xf32>
    %c0_91 = arith.constant 0 : index
    %c0_92 = arith.constant 0 : index
    %c0_93 = arith.constant 0 : index
    %c0_94 = arith.constant 0 : index
    %107 = vector.load %arg10[%c0_91, %c0_92, %c0_93, %c0_94] : memref<1x1x1x16xf32, #tpu.memory_space<vmem>>, vector<1x1x1x16xf32>
    tpu.vector_store %arg10[%c0_91, %c0_92, %c0_93, %c0_94], %106 {strides = array<i32>} : memref<1x1x1x16xf32, #tpu.memory_space<vmem>>, vector<1x1x1x16xf32>,
    return
  }
  func.func @transform_0(%arg0: i32, %arg1: i32) -> (i32, i32, i32, i32) {
    %c0_i32 = arith.constant 0 : i32
    %c0_i32_0 = arith.constant 0 : i32
    %c0_i32_1 = arith.constant 0 : i32
    return %arg0, %arg1, %c0_i32, %c0_i32_0 : i32, i32, i32, i32
  }
  func.func @transform_1(%arg0: i32, %arg1: i32) -> (i32, i32, i32) {
    %c0_i32 = arith.constant 0 : i32
    %c0_i32_0 = arith.constant 0 : i32
    %c0_i32_1 = arith.constant 0 : i32
    %c0_i32_2 = arith.constant 0 : i32
    return %c0_i32, %c0_i32_0, %c0_i32_1 : i32, i32, i32
  }
  func.func @transform_2(%arg0: i32, %arg1: i32) -> (i32, i32) {
    %c0_i32 = arith.constant 0 : i32
    %c0_i32_0 = arith.constant 0 : i32
    %c0_i32_1 = arith.constant 0 : i32
    return %c0_i32, %c0_i32_0 : i32, i32
  }
  func.func @transform_3(%arg0: i32, %arg1: i32) -> (i32, i32, i32, i32) {
    %c0_i32 = arith.constant 0 : i32
    %c0_i32_0 = arith.constant 0 : i32
    %c0_i32_1 = arith.constant 0 : i32
    return %arg0, %arg1, %c0_i32, %c0_i32_0 : i32, i32, i32, i32
  }
  func.func @transform_4(%arg0: i32, %arg1: i32) -> (i32, i32, i32, i32) {
    %c0_i32 = arith.constant 0 : i32
    %c0_i32_0 = arith.constant 0 : i32
    %c0_i32_1 = arith.constant 0 : i32
    %c0_i32_2 = arith.constant 0 : i32
    return %arg0, %c0_i32, %c0_i32_0, %c0_i32_1 : i32, i32, i32, i32
  }
  func.func @transform_5(%arg0: i32, %arg1: i32) -> (i32, i32, i32, i32) {
    %c0_i32 = arith.constant 0 : i32
    %c0_i32_0 = arith.constant 0 : i32
    %c0_i32_1 = arith.constant 0 : i32
    %c0_i32_2 = arith.constant 0 : i32
    return %arg0, %c0_i32, %c0_i32_0, %c0_i32_1 : i32, i32, i32, i32
  }
  func.func @transform_6(%arg0: i32, %arg1: i32) -> (i32, i32, i32, i32) {
    %c0_i32 = arith.constant 0 : i32
    %c0_i32_0 = arith.constant 0 : i32
    %c0_i32_1 = arith.constant 0 : i32
    return %arg0, %arg1, %c0_i32, %c0_i32_0 : i32, i32, i32, i32
  }
  func.func @transform_7(%arg0: i32, %arg1: i32) -> (i32, i32, i32, i32) {
    %c0_i32 = arith.constant 0 : i32
    %c0_i32_0 = arith.constant 0 : i32
    %c0_i32_1 = arith.constant 0 : i32
    return %arg0, %arg1, %c0_i32, %c0_i32_0 : i32, i32, i32, i32
  }
  func.func @transform_8(%arg0: i32, %arg1: i32) -> (i32, i32, i32, i32) {
    %c0_i32 = arith.constant 0 : i32
    %c0_i32_0 = arith.constant 0 : i32
    %c0_i32_1 = arith.constant 0 : i32
    return %arg0, %arg1, %c0_i32, %c0_i32_0 : i32, i32, i32, i32
  }
}

</mosaic_0001>

<bundles_post_ra>
// kernel: tcn_gcn_unit_forward.6
= control target key start
LH: loop header
LB: loop body
LE: loop exit
PB: predicated region body
PF: predicated region fallthrough
CT: control target
= control target key end

     0   :  { %vm124_vm0 = vcmask 1041408   ;;  %vm75_vm1 = vcmask 31744   ;;  %vm289_vm2 = vcmask 850944   ;;  %vm517_vm3 = vcmask 851520   ;;  %s1290_s1 = inlined_call_operand.vmem [shape: f32[4,104], index: 1, kind: input, shape index: {}]   ;;  %s1291_s0 = inlined_call_operand.vmem [shape: f32[256,4], index: 0, kind: input, shape index: {}]   ;;  %s1292_s2 = inlined_call_operand.vmem [shape: f32[1,104], index: 2, kind: input, shape index: {}]   ;;  %s1293_s3 = inlined_call_operand.vmem [shape: f32[256,104], index: 3, kind: output, shape index: {0}]   ;;  %s1294_s4 = inlined_call_operand.vmem [shape: f32[1,1,32], index: 4, kind: output, shape index: {1}]   ;;  %s1295_s5 = inlined_call_operand.vmem [shape: f32[1,1,32], index: 5, kind: output, shape index: {2}]  }
   0x1   :  { %v66_v0 = vld [vmem:[%s1290_s1] sm:$0xf]  ;;  %v19_v2 = vld [vmem:[%s1291_s0 + $0x8] sm:$0xff]  ;;  %v20_v5 = vld [vmem:[%s1291_s0 + $0x10] sm:$0xff]  ;;  %vm591_vm4 = vcmask 253952  }
   0x2   :  { %v18_v1 = vld [vmem:[%s1291_s0] sm:$0xff]  ;;  %v67_v3 = vpack.c.bf16 %v66_v0, %v66_v0  ;;  %v21_v6 = vld [vmem:[%s1291_s0 + $0x18] sm:$0xff]  ;;  %v23_v8 = vld [vmem:[%s1291_s0 + $0x28] sm:$0xff] }
   0x3   :  { %v50_v4 = vpack.c.bf16 %v19_v2, %v18_v1  ;;  %v22_v7 = vld [vmem:[%s1291_s0 + $0x20] sm:$0xff]  ;;  %v51_v10 = vpack.c.bf16 %v21_v6, %v20_v5  ;;  %v35_v13 = vld [vmem:[%s1291_s0 + $0x88] sm:$0xff]  ;;  %v36_v14 = vld [vmem:[%s1291_s0 + $0x90] sm:$0xff] }
   0x4   :  { %813 = vmatprep.subr.msk.bf16.mxu0 %vm124_vm0, %v67_v3  ;;  %v126_v9 = vsel %vm124_vm0, %v67_v3, 0  ;;  %v52_v11 = vpack.c.bf16 %v23_v8, %v22_v7  ;;  %814 = vmatprep.subr.msk.bf16.mxu1 %vm124_vm0, %v67_v3  ;;  %v34_v12 = vld [vmem:[%s1291_s0 + $0x80] sm:$0xff]  ;;  %v37_v15 = vld [vmem:[%s1291_s0 + $0x98] sm:$0xff]  ;;  %v39_v19 = vld [vmem:[%s1291_s0 + $0xa8] sm:$0xff] }
   0x5   :  { %779 = vmatprep.mubr.msk.bf16.mxu0 %vm75_vm1, %v50_v4  ;;  %778 = vmatpush3.bf16.msra.mxu0 %v126_v9  ;;  %v58_v16 = vpack.c.bf16 %v35_v13, %v34_v12  ;;  %v59_v17 = vpack.c.bf16 %v37_v15, %v36_v14  ;;  %v38_v18 = vld [vmem:[%s1291_s0 + $0xa0] sm:$0xff]  ;;  %v24_v20 = vld [vmem:[%s1291_s0 + $0x30] sm:$0xff]  ;;  %v25_v21 = vld [vmem:[%s1291_s0 + $0x38] sm:$0xff] }
   0x6   :  { %812 = vmatpush3.bf16.msra.mxu1 %v126_v9  ;;  %v60_v22 = vpack.c.bf16 %v39_v19, %v38_v18  ;;  %v26_v23 = vld [vmem:[%s1291_s0 + $0x40] sm:$0xff]  ;;  %v27_v24 = vld [vmem:[%s1291_s0 + $0x48] sm:$0xff]  ;;  %v53_v25 = vpack.c.bf16 %v25_v21, %v24_v20  ;;  %v40_v26 = vld [vmem:[%s1291_s0 + $0xb0] sm:$0xff] }
   0x7   :  { %795 = vmatprep.mubr.msk.bf16.mxu1 %vm75_vm1, %v58_v16  ;;  %v41_v27 = vld [vmem:[%s1291_s0 + $0xb8] sm:$0xff]  ;;  %v54_v28 = vpack.c.bf16 %v27_v24, %v26_v23  ;;  %v42_v29 = vld [vmem:[%s1291_s0 + $0xc0] sm:$0xff]  ;;  %v43_v30 = vld [vmem:[%s1291_s0 + $0xc8] sm:$0xff] }
   0x8   :  { %780 = vmatmul.mubr.msk.bf16.vlgmr.msra.gmra.mxu0 %vm75_vm1, %v51_v10  ;;  %v61_v31 = vpack.c.bf16 %v41_v27, %v40_v26  ;;  %v62_v32 = vpack.c.bf16 %v43_v30, %v42_v29  ;;  %v28_v33 = vld [vmem:[%s1291_s0 + $0x50] sm:$0xff]  ;;  %v29_v34 = vld [vmem:[%s1291_s0 + $0x58] sm:$0xff]  ;;  %v30_v35 = vld [vmem:[%s1291_s0 + $0x60] sm:$0xff] }
   0x9   :  { %783 = vmatprep.mubr.msk.bf16.mxu0 %vm75_vm1, %v52_v11  ;;  %796 = vmatmul.mubr.msk.bf16.vlgmr.msra.gmra.mxu1 %vm75_vm1, %v59_v17  ;;  %v31_v36 = vld [vmem:[%s1291_s0 + $0x68] sm:$0xff]  ;;  %v55_v37 = vpack.c.bf16 %v29_v34, %v28_v33  ;;  %v44_v38 = vld [vmem:[%s1291_s0 + $0xd0] sm:$0xff]  ;;  %v45_v39 = vld [vmem:[%s1291_s0 + $0xd8] sm:$0xff] }
   0xa   :  { %799 = vmatprep.mubr.msk.bf16.mxu1 %vm75_vm1, %v60_v22  ;;  %v56_v40 = vpack.c.bf16 %v31_v36, %v30_v35  ;;  %v46_v41 = vld [vmem:[%s1291_s0 + $0xe0] sm:$0xff]  ;;  %v47_v42 = vld [vmem:[%s1291_s0 + $0xe8] sm:$0xff]  ;;  %v63_v43 = vpack.c.bf16 %v45_v39, %v44_v38  ;;  %v32_v45 = vld [vmem:[%s1291_s0 + $0x70] sm:$0xff] }
   0xb   :  { %v64_v44 = vpack.c.bf16 %v47_v42, %v46_v41  ;;  %v33_v46 = vld [vmem:[%s1291_s0 + $0x78] sm:$0xff]  ;;  %v48_v48 = vld [vmem:[%s1291_s0 + $0xf0] sm:$0xff]  ;;  %v968_v51 = vld [vmem:[%s1292_s2] ss:$0 sm:$0xff] }
   0xc   :  { %v57_v47 = vpack.c.bf16 %v33_v46, %v32_v45  ;;  %v49_v49 = vld [vmem:[%s1291_s0 + $0xf8] sm:$0xff] }
   0xd   :  { %v65_v50 = vpack.c.bf16 %v49_v49, %v48_v48 }
  0x10   :  { %784 = vmatmul.mubr.msk.bf16.gmra.mxu0 %vm75_vm1, %v53_v25 }
  0x11   :  { %787 = vmatprep.mubr.msk.bf16.mxu0 %vm75_vm1, %v54_v28  ;;  %800 = vmatmul.mubr.msk.bf16.gmra.mxu1 %vm75_vm1, %v61_v31 }
  0x12   :  { %803 = vmatprep.mubr.msk.bf16.mxu1 %vm75_vm1, %v62_v32 }
  0x18   :  { %788 = vmatmul.mubr.msk.bf16.gmra.mxu0 %vm75_vm1, %v55_v37 }
  0x19   :  { %791 = vmatprep.mubr.msk.bf16.mxu0 %vm75_vm1, %v56_v40  ;;  %804 = vmatmul.mubr.msk.bf16.gmra.mxu1 %vm75_vm1, %v63_v43 }
  0x1a   :  { %807 = vmatprep.mubr.msk.bf16.mxu1 %vm75_vm1, %v64_v44 }
  0x20   :  { %792 = vmatmul.mubr.msk.bf16.gmra.mxu0 %vm75_vm1, %v57_v47 }
  0x21   :  { %808 = vmatmul.mubr.msk.bf16.gmra.mxu1 %vm75_vm1, %v65_v50 }
  0xc8   :  { %v781_v52 = vpop.f32.mrf.mxu0 }
  0xc9   :  { %v171_v53 = vadd.f32 %v781_v52, %v968_v51  ;;  %v797_v56 = vpop.f32.mrf.mxu1 }
  0xca   :  { %v162_v54 = vpop.f32.mrf.mxu0  ;;  %v977_v58 = vadd.f32 %v797_v56, %v968_v51 }
  0xcb   :  { %292 = vst.msk [vmem:[%s1293_s3 + $0x10] sm:$0xff] %vm289_vm2, %v171_v53  ;;  %v163_v55 = vadd.f32 %v968_v51, %v162_v54  ;;  %v226_v60 = vpop.f32.mrf.mxu1  ;;  %v595_v2 = vmul.f32 %v171_v53, %v171_v53  ;;  %v521_v10 = vsel %vm517_vm3, %v171_v53, 0.0 }
  0xcc   :  { %v782_v57 = vpop.f32.mrf.mxu0  ;;  %308 = vst.msk [vmem:[%s1293_s3 + $0x90] sm:$0xff] %vm289_vm2, %v977_v58  ;;  %v990_v62 = vadd.f32 %v968_v51, %v226_v60 }
  0xcd   :  { %290 = vst.msk [vmem:[%s1293_s3] sm:$0xff] %vm289_vm2, %v163_v55  ;;  %v174_v59 = vadd.f32 %v782_v57, %v968_v51  ;;  %v593_v63 = vmul.f32 %v163_v55, %v163_v55  ;;  %v798_v1 = vpop.f32.mrf.mxu1  ;;  %v518_v5 = vsel %vm517_vm3, %v163_v55, 0.0  ;;  %v660_v22 = vsel %vm517_vm3, %v595_v2, 0.0 }
  0xce   :  { %v165_v61 = vpop.f32.mrf.mxu0  ;;  %306 = vst.msk [vmem:[%s1293_s3 + $0x80] sm:$0xff] %vm289_vm2, %v990_v62  ;;  %v1003_v4 = vadd.f32 %v798_v1, %v968_v51 }
  0xcf   :  { %293 = vst.msk [vmem:[%s1293_s3 + $0x18] sm:$0xff] %vm289_vm2, %v174_v59  ;;  %v166_v0 = vadd.f32 %v968_v51, %v165_v61  ;;  %v229_v9 = vpop.f32.mrf.mxu1  ;;  %v657_v13 = vsel %vm517_vm3, %v593_v63, 0.0  ;;  %v596_v14 = vmul.f32 %v174_v59, %v174_v59  ;;  %v523_v23 = vsel %vm517_vm3, %v174_v59, 0.0 }
  0xd0   :  { %v785_v3 = vpop.f32.mrf.mxu0  ;;  %309 = vst.msk [vmem:[%s1293_s3 + $0x98] sm:$0xff] %vm289_vm2, %v1003_v4  ;;  %v1026_v21 = vadd.f32 %v968_v51, %v229_v9 }
  0xd1   :  { %291 = vst.msk [vmem:[%s1293_s3 + $0x8] sm:$0xff] %vm289_vm2, %v166_v0  ;;  %v519_v6 = vsel %vm517_vm3, %v166_v0, 0.0  ;;  %v594_v7 = vmul.f32 %v166_v0, %v166_v0  ;;  %v187_v8 = vadd.f32 %v785_v3, %v968_v51  ;;  %v801_v17 = vpop.f32.mrf.mxu1  ;;  %v662_v30 = vsel %vm517_vm3, %v596_v14, 0.0 }
  0xd2   :  { %v520_v11 = vadd.f32 %v519_v6, %v518_v5  ;;  %v178_v12 = vpop.f32.mrf.mxu0  ;;  %307 = vst.msk [vmem:[%s1293_s3 + $0x88] sm:$0xff] %vm289_vm2, %v1026_v21  ;;  %v1048_v38 = vadd.f32 %v801_v17, %v968_v51 }
  0xd3   :  { %v658_v15 = vsel %vm517_vm3, %v594_v7, 0.0  ;;  %296 = vst.msk [vmem:[%s1293_s3 + $0x30] sm:$0xff] %vm289_vm2, %v187_v8  ;;  %v179_v16 = vadd.f32 %v968_v51, %v178_v12  ;;  %v242_v26 = vpop.f32.mrf.mxu1  ;;  %v599_v34 = vmul.f32 %v187_v8, %v187_v8  ;;  %v529_v47 = vsel %vm517_vm3, %v187_v8, 0.0 }
  0xd4   :  { %v522_v18 = vadd.f32 %v521_v10, %v520_v11  ;;  %v659_v19 = vadd.f32 %v658_v15, %v657_v13  ;;  %v786_v20 = vpop.f32.mrf.mxu0  ;;  %312 = vst.msk [vmem:[%s1293_s3 + $0xb0] sm:$0xff] %vm289_vm2, %v1048_v38  ;;  %v1070_v56 = vadd.f32 %v968_v51, %v242_v26 }
  0xd5   :  { %294 = vst.msk [vmem:[%s1293_s3 + $0x20] sm:$0xff] %vm289_vm2, %v179_v16  ;;  %v597_v24 = vmul.f32 %v179_v16, %v179_v16  ;;  %v190_v25 = vadd.f32 %v786_v20, %v968_v51  ;;  %v525_v31 = vsel %vm517_vm3, %v179_v16, 0.0  ;;  %v802_v33 = vpop.f32.mrf.mxu1  ;;  %v668_v57 = vsel %vm517_vm3, %v599_v34, 0.0 }
  0xd6   :  { %v661_v27 = vadd.f32 %v660_v22, %v659_v19  ;;  %v524_v28 = vadd.f32 %v523_v23, %v522_v18  ;;  %v181_v29 = vpop.f32.mrf.mxu0  ;;  %310 = vst.msk [vmem:[%s1293_s3 + $0xa0] sm:$0xff] %vm289_vm2, %v1070_v56  ;;  %v1092_v12 = vadd.f32 %v802_v33, %v968_v51 }
  0xd7   :  { %297 = vst.msk [vmem:[%s1293_s3 + $0x38] sm:$0xff] %vm289_vm2, %v190_v25  ;;  %v182_v32 = vadd.f32 %v968_v51, %v181_v29  ;;  %v664_v39 = vsel %vm517_vm3, %v597_v24, 0.0  ;;  %v245_v43 = vpop.f32.mrf.mxu1  ;;  %v600_v48 = vmul.f32 %v190_v25, %v190_v25  ;;  %v531_v59 = vsel %vm517_vm3, %v190_v25, 0.0 }
  0xd8   :  { %v526_v35 = vadd.f32 %v525_v31, %v524_v28  ;;  %v663_v36 = vadd.f32 %v662_v30, %v661_v27  ;;  %v789_v37 = vpop.f32.mrf.mxu0  ;;  %313 = vst.msk [vmem:[%s1293_s3 + $0xb8] sm:$0xff] %vm289_vm2, %v1092_v12  ;;  %v1114_v30 = vadd.f32 %v968_v51, %v245_v43 }
  0xd9   :  { %295 = vst.msk [vmem:[%s1293_s3 + $0x28] sm:$0xff] %vm289_vm2, %v182_v32  ;;  %v527_v40 = vsel %vm517_vm3, %v182_v32, 0.0  ;;  %v598_v41 = vmul.f32 %v182_v32, %v182_v32  ;;  %v203_v42 = vadd.f32 %v789_v37, %v968_v51  ;;  %v805_v52 = vpop.f32.mrf.mxu1  ;;  %v670_v3 = vsel %vm517_vm3, %v600_v48, 0.0 }
  0xda   :  { %v665_v44 = vadd.f32 %v664_v39, %v663_v36  ;;  %v528_v45 = vadd.f32 %v527_v40, %v526_v35  ;;  %v194_v46 = vpop.f32.mrf.mxu0  ;;  %311 = vst.msk [vmem:[%s1293_s3 + $0xa8] sm:$0xff] %vm289_vm2, %v1114_v30 }
  0xdb   :  { %v666_v49 = vsel %vm517_vm3, %v598_v41, 0.0  ;;  %300 = vst.msk [vmem:[%s1293_s3 + $0x50] sm:$0xff] %vm289_vm2, %v203_v42  ;;  %v195_v50 = vadd.f32 %v968_v51, %v194_v46  ;;  %v258_v63 = vpop.f32.mrf.mxu1  ;;  %v603_v8 = vmul.f32 %v203_v42, %v203_v42  ;;  %v537_v22 = vsel %vm517_vm3, %v203_v42, 0.0 }
  0xdc   :  { %v530_v53 = vadd.f32 %v529_v47, %v528_v45  ;;  %v667_v54 = vadd.f32 %v666_v49, %v665_v44  ;;  %v790_v55 = vpop.f32.mrf.mxu0  ;;  %v1136_v46 = vadd.f32 %v805_v52, %v968_v51 }
  0xdd   :  { %298 = vst.msk [vmem:[%s1293_s3 + $0x40] sm:$0xff] %vm289_vm2, %v195_v50  ;;  %v601_v60 = vmul.f32 %v195_v50, %v195_v50  ;;  %v206_v61 = vadd.f32 %v790_v55, %v968_v51  ;;  %v533_v5 = vsel %vm517_vm3, %v195_v50, 0.0  ;;  %v806_v7 = vpop.f32.mrf.mxu1  ;;  %v676_v31 = vsel %vm517_vm3, %v603_v8, 0.0 }
  0xde   :  { %v669_v0 = vadd.f32 %v668_v57, %v667_v54  ;;  %v532_v1 = vadd.f32 %v531_v59, %v530_v53  ;;  %v197_v2 = vpop.f32.mrf.mxu0  ;;  %v1145_v50 = vadd.f32 %v968_v51, %v258_v63  ;;  %316 = vst.msk [vmem:[%s1293_s3 + $0xd0] sm:$0xff] %vm289_vm2, %v1136_v46 }
  0xdf   :  { %301 = vst.msk [vmem:[%s1293_s3 + $0x58] sm:$0xff] %vm289_vm2, %v206_v61  ;;  %v198_v6 = vadd.f32 %v968_v51, %v197_v2  ;;  %v672_v13 = vsel %vm517_vm3, %v601_v60, 0.0  ;;  %v261_v17 = vpop.f32.mrf.mxu1  ;;  %v604_v23 = vmul.f32 %v206_v61, %v206_v61  ;;  %v539_v32 = vsel %vm517_vm3, %v206_v61, 0.0 }
  0xe0   :  { %v534_v9 = vadd.f32 %v533_v5, %v532_v1  ;;  %v671_v10 = vadd.f32 %v670_v3, %v669_v0  ;;  %v793_v11 = vpop.f32.mrf.mxu0  ;;  %314 = vst.msk [vmem:[%s1293_s3 + $0xc0] sm:$0xff] %vm289_vm2, %v1145_v50  ;;  %v1160_v60 = vadd.f32 %v806_v7, %v968_v51  ;;  %v1163_v0 = vadd.f32 %v968_v51, %v261_v17 }
  0xe1   :  { %299 = vst.msk [vmem:[%s1293_s3 + $0x48] sm:$0xff] %vm289_vm2, %v198_v6  ;;  %v535_v14 = vsel %vm517_vm3, %v198_v6, 0.0  ;;  %v602_v15 = vmul.f32 %v198_v6, %v198_v6  ;;  %v219_v16 = vadd.f32 %v793_v11, %v968_v51  ;;  %v809_v26 = vpop.f32.mrf.mxu1  ;;  %v678_v40 = vsel %vm517_vm3, %v604_v23, 0.0 }
  0xe2   :  { %v673_v18 = vadd.f32 %v672_v13, %v671_v10  ;;  %v536_v19 = vadd.f32 %v535_v14, %v534_v9  ;;  %v210_v20 = vpop.f32.mrf.mxu0  ;;  %v609_v3 = vmul.f32 %v990_v62, %v990_v62  ;;  %317 = vst.msk [vmem:[%s1293_s3 + $0xd8] sm:$0xff] %vm289_vm2, %v1160_v60  ;;  %v1175_v5 = vadd.f32 %v809_v26, %v968_v51 }
  0xe3   :  { %v674_v24 = vsel %vm517_vm3, %v602_v15, 0.0  ;;  %304 = vst.msk [vmem:[%s1293_s3 + $0x70] sm:$0xff] %vm289_vm2, %v219_v16  ;;  %v211_v25 = vadd.f32 %v968_v51, %v210_v20  ;;  %v274_v39 = vpop.f32.mrf.mxu1  ;;  %v607_v43 = vmul.f32 %v219_v16, %v219_v16  ;;  %v545_v55 = vsel %vm517_vm3, %v219_v16, 0.0  ;;  %315 = vst.msk [vmem:[%s1293_s3 + $0xc8] sm:$0xff] %vm289_vm2, %v1163_v0 }
  0xe4   :  { %v538_v27 = vadd.f32 %v537_v22, %v536_v19  ;;  %v675_v28 = vadd.f32 %v674_v24, %v673_v18  ;;  %v794_v29 = vpop.f32.mrf.mxu0  ;;  %v549_v10 = vsel %vm517_vm3, %v990_v62, 0.0  ;;  %v610_v11 = vmul.f32 %v1026_v21, %v1026_v21  ;;  %320 = vst.msk [vmem:[%s1293_s3 + $0xf0] sm:$0xff] %vm289_vm2, %v1175_v5 }
  0xe5   :  { %302 = vst.msk [vmem:[%s1293_s3 + $0x60] sm:$0xff] %vm289_vm2, %v211_v25  ;;  %v605_v33 = vmul.f32 %v211_v25, %v211_v25  ;;  %v222_v34 = vadd.f32 %v794_v29, %v968_v51  ;;  %v541_v41 = vsel %vm517_vm3, %v211_v25, 0.0  ;;  %v810_v52 = vpop.f32.mrf.mxu1  ;;  %v684_v1 = vsel %vm517_vm3, %v607_v43, 0.0 }
  0xe6   :  { %v677_v35 = vadd.f32 %v676_v31, %v675_v28  ;;  %v540_v36 = vadd.f32 %v539_v32, %v538_v27  ;;  %v213_v37 = vpop.f32.mrf.mxu0  ;;  %v1193_v13 = vadd.f32 %v968_v51, %v274_v39  ;;  %v1196_v16 = vadd.f32 %v810_v52, %v968_v51 }
  0xe7   :  { %305 = vst.msk [vmem:[%s1293_s3 + $0x78] sm:$0xff] %vm289_vm2, %v222_v34  ;;  %v214_v42 = vadd.f32 %v968_v51, %v213_v37  ;;  %v680_v47 = vsel %vm517_vm3, %v605_v33, 0.0  ;;  %v608_v57 = vmul.f32 %v222_v34, %v222_v34  ;;  %v547_v2 = vsel %vm517_vm3, %v222_v34, 0.0  ;;  %v277_v8 = vpop.f32.mrf.mxu1 }
  0xe8   :  { %v542_v44 = vadd.f32 %v541_v41, %v540_v36  ;;  %v679_v45 = vadd.f32 %v678_v40, %v677_v35  ;;  %v611_v62 = vmul.f32 %v977_v58, %v977_v58  ;;  %v688_v17 = vsel %vm517_vm3, %v609_v3, 0.0  ;;  %318 = vst.msk [vmem:[%s1293_s3 + $0xe0] sm:$0xff] %vm289_vm2, %v1193_v13  ;;  %321 = vst.msk [vmem:[%s1293_s3 + $0xf8] sm:$0xff] %vm289_vm2, %v1196_v16 }
  0xe9   :  { %303 = vst.msk [vmem:[%s1293_s3 + $0x68] sm:$0xff] %vm289_vm2, %v214_v42  ;;  %v543_v48 = vsel %vm517_vm3, %v214_v42, 0.0  ;;  %v606_v49 = vmul.f32 %v214_v42, %v214_v42  ;;  %v686_v9 = vsel %vm517_vm3, %v608_v57, 0.0  ;;  %v551_v18 = vsel %vm517_vm3, %v1026_v21, 0.0 }
  0xea   :  { %v681_v53 = vadd.f32 %v680_v47, %v679_v45  ;;  %v544_v54 = vadd.f32 %v543_v48, %v542_v44  ;;  %v278_v19 = vadd.f32 %v968_v51, %v277_v8  ;;  %v553_v23 = vsel %vm517_vm3, %v977_v58, 0.0 }
  0xeb   :  { %v682_v59 = vsel %vm517_vm3, %v606_v49, 0.0  ;;  %v612_v21 = vmul.f32 %v1003_v4, %v1003_v4  ;;  %v690_v24 = vsel %vm517_vm3, %v610_v11, 0.0  ;;  %v692_v26 = vsel %vm517_vm3, %v611_v62, 0.0 }
  0xec   :  { %v546_v61 = vadd.f32 %v545_v55, %v544_v54  ;;  %v683_v63 = vadd.f32 %v682_v59, %v681_v53  ;;  %319 = vst.msk [vmem:[%s1293_s3 + $0xe8] sm:$0xff] %vm289_vm2, %v278_v19  ;;  %v555_v27 = vsel %vm517_vm3, %v1003_v4, 0.0  ;;  %v613_v58 = vmul.f32 %v1070_v56, %v1070_v56  ;;  %s816_s3 = smov 56  }
  0xed   :  { %v694_v31 = vsel %vm517_vm3, %v612_v21, 0.0  ;;  %v557_v32 = vsel %vm517_vm3, %v1070_v56, 0.0  ;;  %v614_v33 = vmul.f32 %v1114_v30, %v1114_v30  ;;  %v615_v36 = vmul.f32 %v1048_v38, %v1048_v38 }
  0xee   :  { %v685_v6 = vadd.f32 %v684_v1, %v683_v63  ;;  %v548_v7 = vadd.f32 %v547_v2, %v546_v61  ;;  %v696_v4 = vsel %vm517_vm3, %v613_v58, 0.0  ;;  %v559_v37 = vsel %vm517_vm3, %v1114_v30, 0.0 }
  0xef   :  { %v561_v41 = vsel %vm517_vm3, %v1048_v38, 0.0  ;;  %v616_v56 = vmul.f32 %v1092_v12, %v1092_v12  ;;  %v698_v42 = vsel %vm517_vm3, %v614_v33, 0.0  ;;  %v700_v45 = vsel %vm517_vm3, %v615_v36, 0.0 }
  0xf0   :  { %v550_v14 = vadd.f32 %v549_v10, %v548_v7  ;;  %v687_v15 = vadd.f32 %v686_v9, %v685_v6  ;;  %v563_v47 = vsel %vm517_vm3, %v1092_v12, 0.0  ;;  %v617_v30 = vmul.f32 %v1145_v50, %v1145_v50 }
  0xf1   :  { %v702_v53 = vsel %vm517_vm3, %v616_v56, 0.0  ;;  %v565_v38 = vsel %vm517_vm3, %v1145_v50, 0.0  ;;  %v618_v54 = vmul.f32 %v1163_v0, %v1163_v0  ;;  %v619_v57 = vmul.f32 %v1136_v46, %v1136_v46 }
  0xf2   :  { %v552_v20 = vadd.f32 %v551_v18, %v550_v14  ;;  %v689_v22 = vadd.f32 %v688_v17, %v687_v15  ;;  %v704_v12 = vsel %vm517_vm3, %v617_v30, 0.0  ;;  %v567_v59 = vsel %vm517_vm3, %v1163_v0, 0.0 }
  0xf3   :  { %v569_v1 = vsel %vm517_vm3, %v1136_v46, 0.0  ;;  %v620_v50 = vmul.f32 %v1160_v60, %v1160_v60  ;;  %v706_v2 = vsel %vm517_vm3, %v618_v54, 0.0  ;;  %v708_v7 = vsel %vm517_vm3, %v619_v57, 0.0 }
  0xf4   :  { %v554_v51 = vadd.f32 %v553_v23, %v552_v20  ;;  %v691_v25 = vadd.f32 %v690_v24, %v689_v22  ;;  %v571_v8 = vsel %vm517_vm3, %v1160_v60, 0.0  ;;  %v621_v0 = vmul.f32 %v1193_v13, %v1193_v13 }
  0xf5   :  { %v710_v11 = vsel %vm517_vm3, %v620_v50, 0.0  ;;  %v573_v46 = vsel %vm517_vm3, %v1193_v13, 0.0  ;;  %v622_v14 = vmul.f32 %v278_v19, %v278_v19  ;;  %v623_v17 = vmul.f32 %v1175_v5, %v1175_v5 }
  0xf6   :  { %v693_v28 = vadd.f32 %v692_v26, %v691_v25  ;;  %v556_v29 = vadd.f32 %v555_v27, %v554_v51  ;;  %v712_v18 = vsel %vm517_vm3, %v621_v0, 0.0  ;;  %v575_v60 = vsel %vm517_vm3, %v278_v19, 0.0 }
  0xf7   :  { %v577_v23 = vsel %vm517_vm3, %v1175_v5, 0.0  ;;  %v624_v21 = vmul.f32 %v1196_v16, %v1196_v16  ;;  %v714_v13 = vsel %vm517_vm3, %v622_v14, 0.0  ;;  %v716_v25 = vsel %vm517_vm3, %v623_v17, 0.0 }
  0xf8   :  { %v558_v34 = vadd.f32 %v557_v32, %v556_v29  ;;  %v695_v35 = vadd.f32 %v694_v31, %v693_v28  ;;  %v579_v26 = vsel %vm517_vm3, %v1196_v16, 0.0 }
  0xf9   :  { %v718_v19 = vsel %vm517_vm3, %v624_v21, 0.0 }
  0xfa   :  { %v697_v39 = vadd.f32 %v696_v4, %v695_v35  ;;  %v560_v40 = vadd.f32 %v559_v37, %v558_v34 }
  0xfc   :  { %v562_v43 = vadd.f32 %v561_v41, %v560_v40  ;;  %v699_v44 = vadd.f32 %v698_v42, %v697_v39 }
  0xfe   :  { %v701_v48 = vadd.f32 %v700_v45, %v699_v44  ;;  %v564_v49 = vadd.f32 %v563_v47, %v562_v43 }
 0x100   :  { %v566_v52 = vadd.f32 %v565_v38, %v564_v49  ;;  %v703_v55 = vadd.f32 %v702_v53, %v701_v48 }
 0x102   :  { %v705_v61 = vadd.f32 %v704_v12, %v703_v55  ;;  %v568_v63 = vadd.f32 %v567_v59, %v566_v52 }
 0x104   :  { %v570_v3 = vadd.f32 %v569_v1, %v568_v63  ;;  %v707_v6 = vadd.f32 %v706_v2, %v705_v61 }
 0x106   :  { %v709_v9 = vadd.f32 %v708_v7, %v707_v6  ;;  %v572_v10 = vadd.f32 %v571_v8, %v570_v3 }
 0x108   :  { %v574_v15 = vadd.f32 %v573_v46, %v572_v10  ;;  %v711_v62 = vadd.f32 %v710_v11, %v709_v9 }
 0x10a   :  { %v713_v20 = vadd.f32 %v712_v18, %v711_v62  ;;  %v576_v22 = vadd.f32 %v575_v60, %v574_v15 }
 0x10c   :  { %v578_v24 = vadd.f32 %v577_v23, %v576_v22  ;;  %v715_v51 = vadd.f32 %v714_v13, %v713_v20 }
 0x10e   :  { %v717_v27 = vadd.f32 %v716_v25, %v715_v51  ;;  %v580_v58 = vadd.f32 %v579_v26, %v578_v24 }
 0x110   :  { %v581_v28 = vrot.slane %v580_v58, 4  ;;  %v719_v29 = vadd.f32 %v718_v19, %v717_v27 }
 0x112   :  { %v582_v31 = vadd.f32 %v581_v28, %v580_v58  ;;  %v720_v5 = vrot.slane %v719_v29, 4 }
 0x114   :  { %v583_v32 = vrot.slane %v582_v31, 2  ;;  %v721_v33 = vadd.f32 %v720_v5, %v719_v29 }
 0x116   :  { %v584_v34 = vadd.f32 %v583_v32, %v582_v31  ;;  %v722_v35 = vrot.slane %v721_v33, 2 }
 0x118   :  { %v585_v36 = vrot.slane %v584_v34, 1  ;;  %v723_v4 = vadd.f32 %v722_v35, %v721_v33 }
 0x11a   :  { %v586_v37 = vadd.f32 %v585_v36, %v584_v34  ;;  %v724_v39 = vrot.slane %v723_v4, 1 }
 0x11c   :  { %588 = vrot.lane.b32.xlu0 %v586_v37, %s816_s3  ;;  %v725_v40 = vadd.f32 %v724_v39, %v723_v4 }
 0x120   :  { %727 = vrot.lane.b32.xlu0 %v725_v40, %s816_s3 }
 0x18e   :  { %v589_v16 = vpop.permute.xlu0 %588 }
 0x18f   :  { %592 = vst.msk [vmem:[%s1294_s4] sm:$0x1] %vm591_vm4, %v589_v16 }
 0x192   :  { %v728_v41 = vpop.permute.xlu0 %727 }
 0x193   :  { %730 = vst.msk [vmem:[%s1295_s5] sm:$0x1] %vm591_vm4, %v728_v41 }

// kernel: tcn_gcn_unit_forward.7
= control target key start
LH: loop header
LB: loop body
LE: loop exit
PB: predicated region body
PF: predicated region fallthrough
CT: control target
= control target key end

     0   :  { %s1439_s15 = smov 0   ;;  %s1541_s0 = inlined_call_operand.<no memory space> [shape: f32[1], index: 0, kind: input, shape index: {}]   ;;  %s1542_s1 = inlined_call_operand.vmem [shape: f32[3,8,8], index: 1, kind: input, shape index: {}]   ;;  %s1543_s2 = inlined_call_operand.vmem [shape: f32[2,8,64], index: 2, kind: input, shape index: {}]   ;;  %s1544_s3 = inlined_call_operand.vmem [shape: f32[2,8,64], index: 3, kind: input, shape index: {}]   ;;  %s1545_s4 = inlined_call_operand.vmem [shape: f32[2,8,64], index: 4, kind: input, shape index: {}]   ;;  %s1546_s5 = inlined_call_operand.vmem [shape: f32[2,8,64], index: 5, kind: input, shape index: {}]   ;;  %s1547_s6 = inlined_call_operand.vmem [shape: f32[2,8,64], index: 6, kind: input, shape index: {}]   ;;  %s1548_s7 = inlined_call_operand.vmem [shape: f32[2,8,64], index: 7, kind: input, shape index: {}]   ;;  %s1549_s8 = inlined_call_operand.vmem [shape: f32[2,8,256], index: 8, kind: input, shape index: {}]   ;;  %s1550_s9 = inlined_call_operand.vmem [shape: f32[2,8,256], index: 9, kind: input, shape index: {}]   ;;  %s1551_s10 = inlined_call_operand.vmem [shape: f32[2,8,256], index: 10, kind: input, shape index: {}]   ;;  %s1552_s11 = inlined_call_operand.vmem [shape: f32[1,256], index: 11, kind: input, shape index: {}]   ;;  %s1553_s12 = inlined_call_operand.vmem [shape: f32[2,8,256], index: 12, kind: output, shape index: {0}]   ;;  %s1554_s13 = inlined_call_operand.vmem [shape: f32[2,1,256], index: 13, kind: output, shape index: {1}]   ;;  %s1555_s14 = inlined_call_operand.vmem [shape: f32[2,1,256], index: 14, kind: output, shape index: {2}]  }
   0x1   :  { %20 = sst [smem:[#allocation2]] %s1541_s0 }
   0x2 LB: > { %s1269_s16 = sadd.s32 4294967295, %s1355_s15   ;;  %p1273_p0 = scmp.ge.s32.totalorder %s1355_s15, 1  ;;  %s1355_s15 = sphi %s1439_s15, %s26_s15  }
   0x3   : > { %p492_p1 = scmp.lt.s32.totalorder %s1355_s15, 3 }
   0x5   : > { %p493_p2 = pnand %p1273_p0, %p492_p1 }
   0x6   : > { %p580_p3 = scmp.lt.s32.totalorder (!%p493_p2), %s1269_s16, 1 }
   0x7   : > { %496 = sbr.rel (%p493_p2) target bundleno = 685 (0x2ad), region = 68 }
   0xc   : > { %v1357_v0 = vmov 0.0   ;;  %s1557_s16 = smov (!%p580_p3, %s1269_s16), 1  ;;  %vm1358_vm0 = vmmov 0   ;;  %vm640_vm1 = vcmask 523264   ;;  %v1359_v11 = vmov 0   ;;  %v688_v35 = vld [vmem:[%s1542_s1] sm:$0xff] }
   0xd   : > { %1313 = vmatprep.subr.bf16.mxu0 %v1357_v0  ;;  %1319 = vmatprep.subr.bf16.mxu1 %v1357_v0  ;;  %s1456_s0 = sshll.u32 %s1557_s16, 3  ;;  %s1479_s29 = sshll.u32 %s1557_s16, 4  ;;  %vm761_vm2 = vcmask 1043456   ;;  %v1292_v37 = vld [vmem:[%s1542_s1 + $0x8] sm:$0xff]  ;;  %vm757_vm3 = vcmask 64512  }
   0xe   : > { %1315 = vmatprep.mubr.msk.bf16.mxu0 %vm1358_vm0, %v1357_v0  ;;  %1321 = vmatprep.mubr.msk.bf16.mxu1 %vm1358_vm0, %v1357_v0  ;;  %s583_s19 = scalar_lea.vmem %s1543_s2, %s1456_s0  ;;  %s587_s22 = scalar_lea.vmem %s1544_s3, %s1456_s0 }
   0xf   : > { %v634_v1 = vld [vmem:[%s583_s19] sm:$0xff]  ;;  %s595_s25 = scalar_lea.vmem %s1546_s5, %s1456_s0  ;;  %s599_s28 = scalar_lea.vmem %s1547_s6, %s1456_s0 }
  0x10   : > { %v639_v2 = vpack.c.bf16 %v634_v1, %v634_v1  ;;  %v696_v3 = vld [vmem:[%s587_s22] sm:$0xff]  ;;  %s613_s18 = scalar_lea.vmem %s1550_s9, %s1479_s29  ;;  %s608_s21 = scalar_lea.vmem %s1549_s8, %s1479_s29 }
  0x11   : > { %v701_v4 = vpack.c.bf16 %v696_v3, %v696_v3  ;;  %v635_v7 = vld [vmem:[%s595_s25] sm:$0xff]  ;;  %v699_v12 = vld [vmem:[%s613_s18 + $0x8] sm:$0xff]  ;;  %s633_s22 = sld [smem:[#allocation2]]  ;;  %s591_s25 = scalar_lea.vmem %s1545_s4, %s1456_s0 }
  0x12   : > { %v645_v5 = vsel %vm640_vm1, %v639_v2, 0  ;;  %v697_v8 = vld [vmem:[%s599_s28] sm:$0xff]  ;;  %v638_v9 = vpack.c.bf16 %v635_v7, %v635_v7  ;;  %v637_v14 = vld [vmem:[%s608_s21 + $0x8] sm:$0xff]  ;;  %v756_v15 = vpack.c.bf16 %v699_v12, %v699_v12  ;;  %s603_s19 = scalar_lea.vmem %s1548_s7, %s1456_s0  ;;  %s623_s28 = scalar_lea.vmem %s1553_s12, %s1479_s29 }
  0x13   : > { %1314 = vmatpush3.bf16.xpose.msra.mxu0 %v645_v5  ;;  %v706_v6 = vsel %vm640_vm1, %v701_v4, 0  ;;  %v700_v10 = vpack.c.bf16 %v697_v8, %v697_v8  ;;  %v698_v13 = vld [vmem:[%s613_s18] sm:$0xff]  ;;  %v695_v17 = vpack.c.bf16 %v637_v14, %v637_v14  ;;  %v1298_v5 = vld [vmem:[%s1542_s1 + $0x10] sm:$0xff] }
  0x14   : > { %1320 = vmatpush3.bf16.xpose.msra.mxu1 %v706_v6  ;;  %v755_v16 = vpack.c.bf16 %v698_v13, %v698_v13  ;;  %v636_v18 = vld [vmem:[%s608_s21] sm:$0xff]  ;;  %1293 = vmatprep.subr.msk.bf16.mxu0 %vm761_vm2, %v756_v15 }
  0x15   : > { %v694_v19 = vpack.c.bf16 %v636_v18, %v636_v18  ;;  %1295 = vmatprep.subr.msk.bf16.mxu1 %vm761_vm2, %v695_v17  ;;  %v859_v33 = vld [vmem:[%s591_s25] sm:$0xff] }
  0x16   : > { %v763_v20 = vsel %vm761_vm2, %v755_v16, 0  ;;  %v864_v40 = vpack.c.bf16 %v859_v33, %v859_v33  ;;  %v860_v46 = vld [vmem:[%s603_s19] sm:$0xff] }
  0x17   : > { %v813_v21 = vsel %vm761_vm2, %v694_v19, 0  ;;  %v690_v32 = vstv %s633_s22  ;;  %v863_v47 = vpack.c.bf16 %v860_v46, %v860_v46  ;;  %s618_s22 = scalar_lea.vmem %s1551_s10, %s1479_s29  ;;  %v972_v12 = vld [vmem:[%s1552_s11] sm:$0x3]  ;;  %s1288_s29 = sshll.u32 %s1557_s16, 1 }
  0x18   : > { %v869_v45 = vsel %vm640_vm1, %v864_v40, 0  ;;  %v862_v48 = vld [vmem:[%s618_s22 + $0x8] sm:$0xff]  ;;  %v861_v49 = vld [vmem:[%s618_s22] sm:$0xff]  ;;  %s627_s18 = scalar_lea.vmem %s1554_s13, %s1288_s29  ;;  %s631_s21 = scalar_lea.vmem %s1555_s14, %s1288_s29 }
  0x19   : > { %v919_v50 = vpack.c.bf16 %v862_v48, %v862_v48  ;;  %v918_v51 = vpack.c.bf16 %v861_v49, %v861_v49 }
  0x1a   : > { %1316 = vmatmul.mubr.msk.bf16.vlgmr.msra.gmra.mxu0 %vm640_vm1, %v638_v9  ;;  %v974_v9 = vlaneseq }
  0x1b   : > { %1322 = vmatmul.mubr.msk.bf16.vlgmr.msra.gmra.mxu1 %vm640_vm1, %v700_v10  ;;  %800 = vmatprep.mubr.bf16.mxu0 %v1359_v11  ;;  %v924_v52 = vsel %vm761_vm2, %v918_v51, 0 }
  0x1c   : > { %850 = vmatprep.mubr.bf16.mxu1 %v1359_v11  ;;  %783 = vmatpush1.bf16.msra.mxu0 %v763_v20  ;;  %v975_v10 = vshrl.u32 %v974_v9, 7  ;;  %vm1020_vm4 = vcmp.lt.s32.totalorder %v974_v9, 256 }
  0x1d   : > { %833 = vmatpush1.bf16.msra.mxu1 %v813_v21  ;;  %1325 = vmatprep.subr.bf16.mxu0 %v1357_v0 }
  0x1e   : > { %1299 = vmatprep.subr.msk.bf16.mxu1 %vm761_vm2, %v919_v50  ;;  %v980_v13 = vsub.s32 1, %v975_v10 }
  0x20   : > { %v981_v17 = vrot.slane %v972_v12, %v980_v13 }
  0xda   : > { %v681_v22 = vpop.f32.mrf.mxu0 }
  0xdb   : > { %v687_v23 = vmul.f32 0.015625, %v681_v22  ;;  %v742_v24 = vpop.f32.mrf.mxu1 }
  0xdc   : > { %v748_v25 = vmul.f32 0.015625, %v742_v24  ;;  %v1317_v26 = vpop.f32.mrf.mxu0 }
  0xdd   : > { %1343 = vtanh.f32 %v687_v23  ;;  %v1323_v27 = vpop.f32.mrf.mxu1 }
  0xde   : > { %1345 = vtanh.f32 %v748_v25  ;;  %v684_v28 = vpop.f32.mrf.mxu0 }
  0xdf   : > { %v745_v29 = vpop.f32.mrf.mxu1 }
  0xe0   : > { %v1318_v30 = vpop.f32.mrf.mxu0 }
  0xe1   : > { %v1324_v31 = vpop.f32.mrf.mxu1  ;;  %v1360_v30 = vmov 1966171168  }
  0xe2   : > { %v1004_v31 = vunpack.c.l.s4 %v1360_v30 }
  0xe4   : > { %v1005_v40 = vunpack.c.0.s8 %v1004_v31 }
  0xe6   : > { %v1008_v49 = vsub.s32 %v1005_v40, %v975_v10 }
  0xea   : > { %v1344_v34 = vpop.eup %1343 }
  0xeb   : > { %v1346_v36 = vpop.eup %1345  ;;  %v691_v38 = vmul.f32 %v1344_v34, %v690_v32 }
  0xec   : > { %v752_v39 = vmul.f32 %v1346_v36, %v690_v32 }
  0xed   : > { %v692_v41 = vadd.f32 %v691_v38, %v688_v35 }
  0xee   : > { %v753_v42 = vadd.f32 %v1292_v37, %v752_v39 }
  0xef   : > { %v693_v43 = vpack.c.bf16 %v692_v41, %v692_v41 }
  0xf0   : > { %v754_v44 = vpack.c.bf16 %v753_v42, %v753_v42 }
  0xf1   : > { %1296 = vmatmul.mubr.msk.bf16.vlgmr.msra.gmra.mxu1 %vm757_vm3, %v693_v43 }
  0xf2   : > { %1294 = vmatmul.mubr.msk.bf16.vlgmr.msra.gmra.mxu0 %vm757_vm3, %v754_v44  ;;  %961 = vmatprep.mubr.bf16.mxu1 %v1359_v11  ;;  %v976_v11 = vsub.s32 0, %v975_v10 }
  0xf3   : > { %1326 = vmatpush3.bf16.xpose.msra.mxu0 %v869_v45  ;;  %1327 = vmatprep.mubr.msk.bf16.mxu0 %vm1358_vm0, %v1357_v0 }
  0xf4   : > { %944 = vmatpush1.bf16.msra.mxu1 %v924_v52  ;;  %v977_v14 = vrot.slane %v972_v12, %v976_v11 }
  0xfa   : > { %1328 = vmatmul.mubr.msk.bf16.vlgmr.msra.gmra.mxu0 %vm640_vm1, %v863_v47 }
 0x1b1   : > { %v852_v53 = vpop.f32.mrf.mxu1 }
 0x1b2   : > { %v802_v54 = vpop.f32.mrf.mxu0 }
 0x1b3   : > { %v853_v55 = vadd.f32 %v852_v53, %v802_v54  ;;  %v854_v56 = vpop.f32.mrf.mxu1 }
 0x1b4   : > { %v804_v57 = vpop.f32.mrf.mxu0 }
 0x1b5   : > { %v855_v58 = vadd.f32 %v854_v56, %v804_v57  ;;  %v856_v59 = vpop.f32.mrf.mxu1 }
 0x1b6   : > { %v806_v60 = vpop.f32.mrf.mxu0 }
 0x1b7   : > { %v857_v61 = vpop.f32.mrf.mxu1 }
 0x1b8   : > { %v807_v62 = vpop.f32.mrf.mxu0 }
 0x1ba   : > { %v905_v63 = vpop.f32.mrf.mxu0 }
 0x1bb   : > { %v911_v0 = vmul.f32 0.015625, %v905_v63 }
 0x1bc   : > { %v1329_v1 = vpop.f32.mrf.mxu0 }
 0x1bd   : > { %1347 = vtanh.f32 %v911_v0 }
 0x1be   : > { %v908_v2 = vpop.f32.mrf.mxu0 }
 0x1c0   : > { %v1330_v3 = vpop.f32.mrf.mxu0 }
 0x1ca   : > { %v1348_v4 = vpop.eup %1347 }
 0x1cb   : > { %v915_v6 = vmul.f32 %v1348_v4, %v690_v32 }
 0x1cd   : > { %v916_v7 = vadd.f32 %v1298_v5, %v915_v6 }
 0x1cf   : > { %v917_v8 = vpack.c.bf16 %v916_v7, %v916_v7 }
 0x1d1   : > { %1300 = vmatmul.mubr.msk.bf16.vlgmr.msra.gmra.mxu1 %vm757_vm3, %v917_v8 }
 0x291   : > { %v963_v15 = vpop.f32.mrf.mxu1 }
 0x292   : > { %v970_v16 = vadd.f32 %v963_v15, %v853_v55 }
 0x293   : > { %v965_v18 = vpop.f32.mrf.mxu1 }
 0x294   : > { %v984_v19 = vadd.f32 %v977_v14, %v970_v16  ;;  %v971_v20 = vadd.f32 %v965_v18, %v855_v58 }
 0x295   : > { %v967_v21 = vpop.f32.mrf.mxu1 }
 0x296   : > { %986 = vst [vmem:[%s623_s28] sm:$0xff] %v984_v19  ;;  %v988_v22 = vrot.slane %v984_v19, 4  ;;  %v1023_v23 = vmul.f32 %v984_v19, %v984_v19  ;;  %v985_v24 = vadd.f32 %v981_v17, %v971_v20 }
 0x297   : > { %v968_v25 = vpop.f32.mrf.mxu1 }
 0x298   : > { %v989_v26 = vadd.f32 %v988_v22, %v984_v19  ;;  %v1025_v27 = vrot.slane %v1023_v23, 4  ;;  %987 = vst [vmem:[%s623_s28 + $0x8] sm:$0xff] %v985_v24  ;;  %v994_v28 = vrot.slane %v985_v24, 4  ;;  %v1024_v29 = vmul.f32 %v985_v24, %v985_v24 }
 0x29a   : > { %v990_v32 = vrot.slane %v989_v26, 2  ;;  %v1026_v33 = vadd.f32 %v1025_v27, %v1023_v23  ;;  %v995_v34 = vadd.f32 %v994_v28, %v985_v24  ;;  %v1031_v35 = vrot.slane %v1024_v29, 4 }
 0x29c   : > { %v991_v36 = vadd.f32 %v990_v32, %v989_v26  ;;  %v1027_v37 = vrot.slane %v1026_v33, 2  ;;  %v996_v38 = vrot.slane %v995_v34, 2  ;;  %v1032_v39 = vadd.f32 %v1031_v35, %v1024_v29 }
 0x29e   : > { %v992_v41 = vrot.slane %v991_v36, 1  ;;  %v1028_v42 = vadd.f32 %v1027_v37, %v1026_v33  ;;  %v997_v43 = vadd.f32 %v996_v38, %v995_v34  ;;  %v1033_v44 = vrot.slane %v1032_v39, 2 }
 0x2a0   : > { %v1029_v45 = vrot.slane %v1028_v42, 1  ;;  %v998_v46 = vrot.slane %v997_v43, 1  ;;  %v1034_v47 = vadd.f32 %v1033_v44, %v1032_v39  ;;  %v993_v48 = vadd.f32 %v992_v41, %v991_v36 }
 0x2a2   : > { %v999_v50 = vadd.f32 %v998_v46, %v997_v43  ;;  %v1035_v51 = vrot.slane %v1034_v47, 1  ;;  %v1030_v52 = vadd.f32 %v1029_v45, %v1028_v42 }
 0x2a4   : > { %v1002_v53 = vcombine.low %v993_v48, %v999_v50  ;;  %v1036_v54 = vadd.f32 %v1035_v51, %v1034_v47 }
 0x2a6   : > { %v1009_v55 = vrot.slane %v1002_v53, %v1008_v49  ;;  %v1039_v56 = vcombine.low %v1030_v52, %v1036_v54 }
 0x2a8   : > { %v1016_v57 = vrot.slane %v1009_v55, %v1008_v49  ;;  %v1046_v58 = vrot.slane %v1039_v56, %v1008_v49 }
 0x2aa   : > { %1022 = vst.msk [vmem:[%s627_s18] sm:$0x3] %vm1020_vm4, %v1016_v57  ;;  %v1053_v59 = vrot.slane %v1046_v58, %v1008_v49 }
 0x2ac   : > { %1055 = vst.msk [vmem:[%s631_s21] sm:$0x3] %vm1020_vm4, %v1053_v59 }
 0x2ad PF: > { %s26_s15 = sadd.s32 1, %s1355_s15  }
 0x2ae   : > { %p23_p4 = scmp.ge.s32.totalorder %s26_s15, 4  }
 0x2b0   :  { %25 = sbr.rel (!%p23_p4) target bundleno = 2 (0x2), region = 148 }

// kernel: tcn_gcn_unit_forward.8
= control target key start
LH: loop header
LB: loop body
LE: loop exit
PB: predicated region body
PF: predicated region fallthrough
CT: control target
= control target key end

     0   :  { %s683_s21 = smov 0   ;;  %s900_s0 = inlined_call_operand.vmem [shape: f32[2,8,16,16], index: 0, kind: input, shape index: {}]   ;;  %s901_s1 = inlined_call_operand.vmem [shape: f32[2,8,16,16], index: 1, kind: input, shape index: {}]   ;;  %s902_s2 = inlined_call_operand.vmem [shape: f32[1,1,1,16], index: 2, kind: input, shape index: {}]   ;;  %s903_s3 = inlined_call_operand.vmem [shape: f32[1,1,1,16], index: 3, kind: input, shape index: {}]   ;;  %s904_s4 = inlined_call_operand.vmem [shape: f32[1,1,1,16], index: 4, kind: input, shape index: {}]   ;;  %s905_s5 = inlined_call_operand.vmem [shape: f32[2,8,16,16], index: 5, kind: output, shape index: {0}]   ;;  %s906_s6 = inlined_call_operand.vmem [shape: f32[2,8,1,16], index: 6, kind: output, shape index: {1}]  }
   0x1 LB: > { %s612_s22 = sadd.s32 4294967295, %s646_s21   ;;  %p616_p0 = scmp.ge.s32.totalorder %s646_s21, 1  ;;  %s646_s21 = sphi %s683_s21, %s17_s21  }
   0x2   : > { %p225_p1 = scmp.lt.s32.totalorder %s646_s21, 3 }
   0x4   : > { %p226_p2 = pnand %p616_p0, %p225_p1 }
   0x5   : > { %p264_p3 = scmp.lt.s32.totalorder (!%p226_p2), %s612_s22, 1 }
   0x6   : > { %229 = sbr.rel (%p226_p2) target bundleno = 61 (0x3d), region = 40 }
   0xb   : > { %s908_s22 = smov (!%p264_p3, %s612_s22), 1  ;;  %v699_v0 = vld [vmem:[%s902_s2] ss:$0 sm:$0xff]  ;;  %vm416_vm0 = vcmask 130048   ;;  %vm505_vm1 = vcmask 122880  }
   0xc   : > { %s694_s23 = sshll.u32 %s908_s22, 7  ;;  %v704_v1 = vld [vmem:[%s903_s3] ss:$0 sm:$0xff]  ;;  %s623_s15 = sshll.u32 %s908_s22, 3 }
   0xd   : > { %s710_s30 = scalar_lea.vmem %s900_s0, %s694_s23  ;;  %s716_s9 = scalar_lea.vmem %s901_s1, %s694_s23  ;;  %v723_v4 = vld [vmem:[%s904_s4] ss:$0 sm:$0xff] }
   0xe   : > { %v283_v2 = vld [vmem:[%s710_s30] sm:$0xff]  ;;  %v284_v5 = vld [vmem:[%s710_s30 + $0x8] sm:$0xff]  ;;  %v285_v10 = vld [vmem:[%s710_s30 + $0x10] sm:$0xff]  ;;  %s756_s14 = scalar_lea.vmem %s905_s5, %s694_s23  ;;  %s879_s18 = scalar_lea.vmem %s906_s6, %s623_s15 }
   0xf   : > { %v322_v3 = vld [vmem:[%s716_s9] sm:$0xff]  ;;  %v306_v6 = vmul.f32 %v699_v0, %v283_v2  ;;  %v307_v8 = vmul.f32 %v699_v0, %v284_v5  ;;  %v323_v9 = vld [vmem:[%s716_s9 + $0x8] sm:$0xff]  ;;  %v324_v11 = vld [vmem:[%s716_s9 + $0x10] sm:$0xff]  ;;  %v308_v13 = vmul.f32 %v699_v0, %v285_v10 }
  0x10   : > { %v345_v7 = vmul.f32 %v704_v1, %v322_v3  ;;  %v346_v12 = vmul.f32 %v704_v1, %v323_v9  ;;  %v347_v14 = vmul.f32 %v704_v1, %v324_v11  ;;  %v286_v15 = vld [vmem:[%s710_s30 + $0x18] sm:$0xff]  ;;  %v287_v17 = vld [vmem:[%s710_s30 + $0x20] sm:$0xff]  ;;  %v288_v23 = vld [vmem:[%s710_s30 + $0x28] sm:$0xff] }
  0x11   : > { %v325_v16 = vld [vmem:[%s716_s9 + $0x18] sm:$0xff]  ;;  %v309_v19 = vmul.f32 %v699_v0, %v286_v15  ;;  %v310_v21 = vmul.f32 %v699_v0, %v287_v17  ;;  %v326_v22 = vld [vmem:[%s716_s9 + $0x20] sm:$0xff]  ;;  %v327_v24 = vld [vmem:[%s716_s9 + $0x28] sm:$0xff]  ;;  %v311_v28 = vmul.f32 %v699_v0, %v288_v23 }
  0x12   : > { %v361_v18 = vadd.f32 %v345_v7, %v306_v6  ;;  %v348_v20 = vmul.f32 %v704_v1, %v325_v16  ;;  %v362_v25 = vadd.f32 %v346_v12, %v307_v8  ;;  %v363_v26 = vadd.f32 %v347_v14, %v308_v13  ;;  %v289_v29 = vld [vmem:[%s710_s30 + $0x30] sm:$0xff]  ;;  %v290_v31 = vld [vmem:[%s710_s30 + $0x38] sm:$0xff]  ;;  %v291_v53 = vld [vmem:[%s710_s30 + $0x40] sm:$0xff] }
  0x13   : > { %v349_v27 = vmul.f32 %v704_v1, %v326_v22  ;;  %v328_v30 = vld [vmem:[%s716_s9 + $0x30] sm:$0xff]  ;;  %v350_v34 = vmul.f32 %v704_v1, %v327_v24  ;;  %v312_v35 = vmul.f32 %v699_v0, %v289_v29  ;;  %v329_v40 = vld [vmem:[%s716_s9 + $0x38] sm:$0xff]  ;;  %v313_v44 = vmul.f32 %v699_v0, %v290_v31  ;;  %v330_v58 = vld [vmem:[%s716_s9 + $0x40] sm:$0xff] }
  0x14   : > { %v384_v32 = vadd.f32 %v723_v4, %v361_v18  ;;  %v364_v33 = vadd.f32 %v348_v20, %v309_v19  ;;  %v385_v36 = vadd.f32 %v723_v4, %v362_v25  ;;  %v386_v37 = vadd.f32 %v723_v4, %v363_v26  ;;  %v292_v63 = vld [vmem:[%s710_s30 + $0x48] sm:$0xff]  ;;  %v293_v8 = vld [vmem:[%s710_s30 + $0x50] sm:$0xff]  ;;  %v294_v14 = vld [vmem:[%s710_s30 + $0x58] sm:$0xff] }
  0x15   : > { %v365_v38 = vadd.f32 %v349_v27, %v310_v21  ;;  %v351_v39 = vmul.f32 %v704_v1, %v328_v30  ;;  %v366_v43 = vadd.f32 %v350_v34, %v311_v28  ;;  %v352_v52 = vmul.f32 %v704_v1, %v329_v40  ;;  %v331_v7 = vld [vmem:[%s716_s9 + $0x48] sm:$0xff]  ;;  %v332_v13 = vld [vmem:[%s716_s9 + $0x50] sm:$0xff]  ;;  %v333_v15 = vld [vmem:[%s716_s9 + $0x58] sm:$0xff] }
  0x16   : > { %v400_v41 = vmax.f32 %v384_v32, 0.0  ;;  %v387_v42 = vadd.f32 %v723_v4, %v364_v33  ;;  %v401_v45 = vmax.f32 %v385_v36, 0.0  ;;  %v402_v46 = vmax.f32 %v386_v37, 0.0  ;;  %v295_v20 = vld [vmem:[%s710_s30 + $0x60] sm:$0xff]  ;;  %v296_v30 = vld [vmem:[%s710_s30 + $0x68] sm:$0xff]  ;;  %v297_v40 = vld [vmem:[%s710_s30 + $0x70] sm:$0xff] }
  0x17   : > { %v388_v47 = vadd.f32 %v723_v4, %v365_v38  ;;  %v367_v48 = vadd.f32 %v351_v39, %v312_v35  ;;  %v389_v51 = vadd.f32 %v723_v4, %v366_v43  ;;  %v368_v62 = vadd.f32 %v352_v52, %v313_v44  ;;  %v334_v25 = vld [vmem:[%s716_s9 + $0x60] sm:$0xff]  ;;  %v335_v31 = vld [vmem:[%s716_s9 + $0x68] sm:$0xff] }
  0x18   : > { %417 = vst.msk [vmem:[%s756_s14] sm:$0xff] %vm416_vm0, %v400_v41  ;;  %v433_v49 = vsel %vm416_vm0, %v400_v41, 0.0  ;;  %v403_v50 = vmax.f32 %v387_v42, 0.0  ;;  %418 = vst.msk [vmem:[%s756_s14 + $0x8] sm:$0xff] %vm416_vm0, %v401_v45  ;;  %v434_v54 = vsel %vm416_vm0, %v401_v45, 0.0  ;;  %v442_v55 = vsel %vm416_vm0, %v402_v46, 0.0 }
  0x19   : > { %419 = vst.msk [vmem:[%s756_s14 + $0x10] sm:$0xff] %vm416_vm0, %v402_v46  ;;  %v404_v56 = vmax.f32 %v388_v47, 0.0  ;;  %v390_v57 = vadd.f32 %v723_v4, %v367_v48  ;;  %v779_v59 = vadd.f32 %v434_v54, %v433_v49  ;;  %v405_v61 = vmax.f32 %v389_v51, 0.0  ;;  %v336_v45 = vld [vmem:[%s716_s9 + $0x70] sm:$0xff]  ;;  %v337_v51 = vld [vmem:[%s716_s9 + $0x78] sm:$0xff] }
  0x1a   : > { %420 = vst.msk [vmem:[%s756_s14 + $0x18] sm:$0xff] %vm416_vm0, %v403_v50  ;;  %v443_v60 = vsel %vm416_vm0, %v403_v50, 0.0  ;;  %v314_v6 = vmul.f32 %v699_v0, %v291_v53  ;;  %v391_v11 = vadd.f32 %v723_v4, %v368_v62  ;;  %v353_v12 = vmul.f32 %v704_v1, %v330_v58  ;;  %v298_v50 = vld [vmem:[%s710_s30 + $0x78] sm:$0xff] }
  0x1b   : > { %v785_v2 = vadd.f32 %v443_v60, %v442_v55  ;;  %421 = vst.msk [vmem:[%s756_s14 + $0x20] sm:$0xff] %vm416_vm0, %v404_v56  ;;  %v451_v3 = vsel %vm416_vm0, %v404_v56, 0.0  ;;  %v406_v5 = vmax.f32 %v390_v57, 0.0  ;;  %v436_v9 = vrot.slane %v779_v59, 4  ;;  %422 = vst.msk [vmem:[%s756_s14 + $0x28] sm:$0xff] %vm416_vm0, %v405_v61 }
  0x1c   : > { %v452_v10 = vsel %vm416_vm0, %v405_v61, 0.0  ;;  %v315_v19 = vmul.f32 %v699_v0, %v292_v63  ;;  %v407_v21 = vmax.f32 %v391_v11, 0.0  ;;  %v369_v22 = vadd.f32 %v353_v12, %v314_v6 }
  0x1d   : > { %v445_v16 = vrot.slane %v785_v2, 4  ;;  %v803_v17 = vadd.f32 %v452_v10, %v451_v3  ;;  %423 = vst.msk [vmem:[%s756_s14 + $0x30] sm:$0xff] %vm416_vm0, %v406_v5  ;;  %v460_v18 = vsel %vm416_vm0, %v406_v5, 0.0  ;;  %v354_v23 = vmul.f32 %v704_v1, %v331_v7 }
  0x1e   : > { %v316_v24 = vmul.f32 %v699_v0, %v293_v8  ;;  %v355_v27 = vmul.f32 %v704_v1, %v332_v13  ;;  %v317_v28 = vmul.f32 %v699_v0, %v294_v14  ;;  %v356_v29 = vmul.f32 %v704_v1, %v333_v15  ;;  %424 = vst.msk [vmem:[%s756_s14 + $0x38] sm:$0xff] %vm416_vm0, %v407_v21 }
  0x1f   : > { %v454_v26 = vrot.slane %v803_v17, 4  ;;  %v461_v32 = vsel %vm416_vm0, %v407_v21, 0.0  ;;  %v392_v33 = vadd.f32 %v723_v4, %v369_v22  ;;  %v370_v34 = vadd.f32 %v354_v23, %v315_v19 }
  0x20   : > { %v318_v35 = vmul.f32 %v699_v0, %v295_v20  ;;  %v462_v36 = vadd.f32 %v461_v32, %v460_v18  ;;  %v371_v37 = vadd.f32 %v355_v27, %v316_v24  ;;  %v372_v38 = vadd.f32 %v356_v29, %v317_v28 }
  0x21   : > { %v357_v39 = vmul.f32 %v704_v1, %v334_v25  ;;  %v408_v41 = vmax.f32 %v392_v33, 0.0  ;;  %v393_v42 = vadd.f32 %v723_v4, %v370_v34  ;;  %v319_v43 = vmul.f32 %v699_v0, %v296_v30 }
  0x22   : > { %v358_v44 = vmul.f32 %v704_v1, %v335_v31  ;;  %v463_v46 = vrot.slane %v462_v36, 4  ;;  %v394_v47 = vadd.f32 %v723_v4, %v371_v37  ;;  %v395_v48 = vadd.f32 %v723_v4, %v372_v38 }
  0x23   : > { %v373_v49 = vadd.f32 %v357_v39, %v318_v35  ;;  %425 = vst.msk [vmem:[%s756_s14 + $0x40] sm:$0xff] %vm416_vm0, %v408_v41  ;;  %v469_v52 = vsel %vm416_vm0, %v408_v41, 0.0  ;;  %v409_v53 = vmax.f32 %v393_v42, 0.0  ;;  %v320_v55 = vmul.f32 %v699_v0, %v297_v40 }
  0x24   : > { %v374_v54 = vadd.f32 %v358_v44, %v319_v43  ;;  %v410_v56 = vmax.f32 %v394_v47, 0.0  ;;  %v411_v57 = vmax.f32 %v395_v48, 0.0  ;;  %v359_v60 = vmul.f32 %v704_v1, %v336_v45 }
  0x25   : > { %v396_v58 = vadd.f32 %v723_v4, %v373_v49  ;;  %426 = vst.msk [vmem:[%s756_s14 + $0x48] sm:$0xff] %vm416_vm0, %v409_v53  ;;  %v470_v61 = vsel %vm416_vm0, %v409_v53, 0.0  ;;  %v321_v63 = vmul.f32 %v699_v0, %v298_v50  ;;  %v360_v3 = vmul.f32 %v704_v1, %v337_v51 }
  0x26   : > { %v397_v62 = vadd.f32 %v723_v4, %v374_v54  ;;  %v471_v5 = vadd.f32 %v470_v61, %v469_v52  ;;  %427 = vst.msk [vmem:[%s756_s14 + $0x50] sm:$0xff] %vm416_vm0, %v410_v56  ;;  %v478_v6 = vsel %vm416_vm0, %v410_v56, 0.0  ;;  %428 = vst.msk [vmem:[%s756_s14 + $0x58] sm:$0xff] %vm416_vm0, %v411_v57  ;;  %v479_v7 = vsel %vm416_vm0, %v411_v57, 0.0 }
  0x27   : > { %v412_v8 = vmax.f32 %v396_v58, 0.0  ;;  %v480_v10 = vadd.f32 %v479_v7, %v478_v6  ;;  %v375_v12 = vadd.f32 %v359_v60, %v320_v55  ;;  %v376_v13 = vadd.f32 %v360_v3, %v321_v63 }
  0x28   : > { %v413_v11 = vmax.f32 %v397_v62, 0.0  ;;  %v472_v14 = vrot.slane %v471_v5, 4  ;;  %v437_v1 = vadd.f32 %v436_v9, %v779_v59  ;;  %v446_v15 = vadd.f32 %v445_v16, %v785_v2 }
  0x29   : > { %429 = vst.msk [vmem:[%s756_s14 + $0x60] sm:$0xff] %vm416_vm0, %v412_v8  ;;  %v487_v0 = vsel %vm416_vm0, %v412_v8, 0.0  ;;  %v481_v18 = vrot.slane %v480_v10, 4  ;;  %v398_v20 = vadd.f32 %v723_v4, %v375_v12  ;;  %v399_v21 = vadd.f32 %v723_v4, %v376_v13 }
  0x2a   : > { %430 = vst.msk [vmem:[%s756_s14 + $0x68] sm:$0xff] %vm416_vm0, %v413_v11  ;;  %v488_v19 = vsel %vm416_vm0, %v413_v11, 0.0  ;;  %v438_v23 = vrot.slane %v437_v1, 2  ;;  %v447_v24 = vrot.slane %v446_v15, 2  ;;  %v455_v59 = vadd.f32 %v454_v26, %v803_v17 }
  0x2b   : > { %v489_v22 = vadd.f32 %v488_v19, %v487_v0  ;;  %v414_v9 = vmax.f32 %v398_v20, 0.0  ;;  %v415_v2 = vmax.f32 %v399_v21, 0.0  ;;  %v464_v16 = vadd.f32 %v463_v46, %v462_v36 }
  0x2c   : > { %v473_v25 = vadd.f32 %v472_v14, %v471_v5  ;;  %v439_v28 = vadd.f32 %v438_v23, %v437_v1  ;;  %v448_v29 = vadd.f32 %v447_v24, %v446_v15  ;;  %v456_v30 = vrot.slane %v455_v59, 2 }
  0x2d   : > { %v490_v27 = vrot.slane %v489_v22, 4  ;;  %431 = vst.msk [vmem:[%s756_s14 + $0x70] sm:$0xff] %vm416_vm0, %v414_v9  ;;  %v496_v4 = vsel %vm416_vm0, %v414_v9, 0.0  ;;  %432 = vst.msk [vmem:[%s756_s14 + $0x78] sm:$0xff] %vm416_vm0, %v415_v2  ;;  %v497_v31 = vsel %vm416_vm0, %v415_v2, 0.0  ;;  %v465_v32 = vrot.slane %v464_v16, 2 }
  0x2e   : > { %v474_v33 = vrot.slane %v473_v25, 2  ;;  %v498_v17 = vadd.f32 %v497_v31, %v496_v4  ;;  %v440_v26 = vrot.slane %v439_v28, 1  ;;  %v449_v34 = vrot.slane %v448_v29, 1 }
  0x2f   : > { %v457_v35 = vadd.f32 %v456_v30, %v455_v59  ;;  %v466_v36 = vadd.f32 %v465_v32, %v464_v16  ;;  %v482_v38 = vadd.f32 %v481_v18, %v480_v10  ;;  %v491_v39 = vadd.f32 %v490_v27, %v489_v22 }
  0x30   : > { %v475_v37 = vadd.f32 %v474_v33, %v473_v25  ;;  %v499_v40 = vrot.slane %v498_v17, 4  ;;  %v441_v41 = vadd.f32 %v440_v26, %v439_v28  ;;  %v450_v42 = vadd.f32 %v449_v34, %v448_v29 }
  0x31   : > { %v458_v43 = vrot.slane %v457_v35, 1  ;;  %v467_v44 = vrot.slane %v466_v36, 1  ;;  %v483_v46 = vrot.slane %v482_v38, 2  ;;  %v492_v47 = vrot.slane %v491_v39, 2 }
  0x32   : > { %v476_v45 = vrot.slane %v475_v37, 1  ;;  %506 = vst.msk [vmem:[%s879_s18] sm:$0x1] %vm505_vm1, %v441_v41  ;;  %507 = vst.msk [vmem:[%s879_s18 + $0x1] sm:$0x1] %vm505_vm1, %v450_v42  ;;  %v500_v49 = vadd.f32 %v499_v40, %v498_v17 }
  0x33   : > { %v459_v48 = vadd.f32 %v458_v43, %v457_v35  ;;  %v468_v50 = vadd.f32 %v467_v44, %v466_v36  ;;  %v484_v52 = vadd.f32 %v483_v46, %v482_v38  ;;  %v493_v53 = vadd.f32 %v492_v47, %v491_v39 }
  0x34   : > { %v477_v51 = vadd.f32 %v476_v45, %v475_v37  ;;  %v501_v54 = vrot.slane %v500_v49, 2 }
  0x35   : > { %508 = vst.msk [vmem:[%s879_s18 + $0x2] sm:$0x1] %vm505_vm1, %v459_v48  ;;  %509 = vst.msk [vmem:[%s879_s18 + $0x3] sm:$0x1] %vm505_vm1, %v468_v50  ;;  %v485_v55 = vrot.slane %v484_v52, 1  ;;  %v494_v56 = vrot.slane %v493_v53, 1 }
  0x36   : > { %510 = vst.msk [vmem:[%s879_s18 + $0x4] sm:$0x1] %vm505_vm1, %v477_v51  ;;  %v502_v57 = vadd.f32 %v501_v54, %v500_v49 }
  0x37   : > { %v486_v58 = vadd.f32 %v485_v55, %v484_v52  ;;  %v495_v60 = vadd.f32 %v494_v56, %v493_v53 }
  0x38   : > { %v503_v61 = vrot.slane %v502_v57, 1 }
  0x39   : > { %511 = vst.msk [vmem:[%s879_s18 + $0x5] sm:$0x1] %vm505_vm1, %v486_v58  ;;  %512 = vst.msk [vmem:[%s879_s18 + $0x6] sm:$0x1] %vm505_vm1, %v495_v60 }
  0x3a   : > { %v504_v62 = vadd.f32 %v503_v61, %v502_v57 }
  0x3c   : > { %513 = vst.msk [vmem:[%s879_s18 + $0x7] sm:$0x1] %vm505_vm1, %v504_v62 }
  0x3d PF: > { %s17_s21 = sadd.s32 1, %s646_s21  }
  0x3e   : > { %p14_p4 = scmp.ge.s32.totalorder %s17_s21, 4  }
  0x40   :  { %16 = sbr.rel (!%p14_p4) target bundleno = 1 (0x1), region = 85 }

// kernel: tcn_gcn_unit_forward.9
= control target key start
LH: loop header
LB: loop body
LE: loop exit
PB: predicated region body
PF: predicated region fallthrough
CT: control target
= control target key end

     0   :  { %s430_s9 = smov 0   ;;  %s491_s0 = inlined_call_operand.vmem [shape: f32[2,8,16,16], index: 0, kind: input, shape index: {}]   ;;  %s492_s1 = inlined_call_operand.vmem [shape: f32[2,8,1,1], index: 1, kind: input, shape index: {}]   ;;  %s493_s2 = inlined_call_operand.vmem [shape: f32[2,16,16], index: 2, kind: output, shape index: {}]  }
   0x1 LB: > { %s373_s10 = sadd.s32 4294967295, %s412_s9   ;;  %p377_p0 = scmp.ge.s32.totalorder %s412_s9, 1  ;;  %s412_s9 = sphi %s430_s9, %s12_s9  }
   0x2   : > { %p121_p1 = scmp.lt.s32.totalorder %s412_s9, 3 }
   0x4   : > { %p122_p2 = pnand %p377_p0, %p121_p1 }
   0x5   : > { %p147_p3 = scmp.lt.s32.totalorder (!%p122_p2), %s373_s10, 1 }
   0x6   : > { %125 = sbr.rel (%p122_p2) target bundleno = 161 (0xa1), region = 28 }
   0xb   : > { %v414_v0 = vmov 0   ;;  %s495_s10 = smov (!%p147_p3, %s373_s10), 1  ;;  %vm273_vm0 = vcmask 130048  }
   0xc   : > { %405 = vset.pattern.permute.xlu1 %v414_v0  ;;  %404 = vset.pattern.permute.xlu0 %v414_v0  ;;  %s380_s11 = sshll.u32 %s495_s10, 3  ;;  %s393_s15 = sshll.u32 %s495_s10, 7 }
   0xd   : > { %s155_s14 = scalar_lea.vmem %s492_s1, %s380_s11  ;;  %s448_s18 = scalar_lea.vmem %s491_s0, %s393_s15 }
   0xe   : > { %v385_v1 = vld [vmem:[%s155_s14 + $0x2] ss:$0 sm:$0xff]  ;;  %v383_v2 = vld [vmem:[%s155_s14] ss:$0 sm:$0xff]  ;;  %v386_v3 = vld [vmem:[%s155_s14 + $0x3] ss:$0 sm:$0xff] }
   0xf   : > { %234 = vperm.xlu1 %405, %v385_v1   ;;  %226 = vperm.xlu0 %404, %v383_v2   ;;  %v384_v4 = vld [vmem:[%s155_s14 + $0x1] ss:$0 sm:$0xff]  ;;  %v388_v5 = vld [vmem:[%s155_s14 + $0x5] ss:$0 sm:$0xff]  ;;  %v387_v6 = vld [vmem:[%s155_s14 + $0x4] ss:$0 sm:$0xff] }
  0x10   : > { %v390_v7 = vld [vmem:[%s155_s14 + $0x7] ss:$0 sm:$0xff]  ;;  %v389_v8 = vld [vmem:[%s155_s14 + $0x6] ss:$0 sm:$0xff]  ;;  %v162_v10 = vld [vmem:[%s448_s18 + $0x8] sm:$0xff]  ;;  %s394_s19 = sshll.u32 %s495_s10, 4 }
  0x11   : > { %v161_v9 = vld [vmem:[%s448_s18] sm:$0xff]  ;;  %v166_v14 = vld [vmem:[%s448_s18 + $0x28] sm:$0xff]  ;;  %v163_v17 = vld [vmem:[%s448_s18 + $0x10] sm:$0xff]  ;;  %s160_s22 = scalar_lea.vmem %s493_s2, %s394_s19 }
  0x12   : > { %v165_v13 = vld [vmem:[%s448_s18 + $0x20] sm:$0xff]  ;;  %v164_v18 = vld [vmem:[%s448_s18 + $0x18] sm:$0xff]  ;;  %v167_v20 = vld [vmem:[%s448_s18 + $0x30] sm:$0xff] }
  0x13   : > { %238 = vperm.xlu1 %405, %v386_v3   ;;  %230 = vperm.xlu0 %404, %v384_v4   ;;  %v168_v21 = vld [vmem:[%s448_s18 + $0x38] sm:$0xff]  ;;  %v169_v29 = vld [vmem:[%s448_s18 + $0x40] sm:$0xff]  ;;  %v170_v30 = vld [vmem:[%s448_s18 + $0x48] sm:$0xff] }
  0x14   : > { %v171_v38 = vld [vmem:[%s448_s18 + $0x50] sm:$0xff]  ;;  %v172_v39 = vld [vmem:[%s448_s18 + $0x58] sm:$0xff]  ;;  %v173_v47 = vld [vmem:[%s448_s18 + $0x60] sm:$0xff] }
  0x15   : > { %v174_v48 = vld [vmem:[%s448_s18 + $0x68] sm:$0xff]  ;;  %v175_v56 = vld [vmem:[%s448_s18 + $0x70] sm:$0xff]  ;;  %v176_v57 = vld [vmem:[%s448_s18 + $0x78] sm:$0xff] }
  0x17   : > { %246 = vperm.xlu1 %405, %v388_v5   ;;  %242 = vperm.xlu0 %404, %v387_v6  }
  0x1b   : > { %254 = vperm.xlu1 %405, %v390_v7   ;;  %250 = vperm.xlu0 %404, %v389_v8  }
  0x8a   : > { %v235_v11 = vpop.permute.xlu1 %234  ;;  %v227_v12 = vpop.permute.xlu0 %226 }
  0x8b   : > { %v257_v15 = vmul.f32 %v227_v12, %v161_v9  ;;  %v258_v16 = vmul.f32 %v227_v12, %v162_v10  ;;  %v261_v23 = vmul.f32 %v235_v11, %v165_v13  ;;  %v262_v24 = vmul.f32 %v235_v11, %v166_v14 }
  0x8d   : > { %v274_v27 = vsel %vm273_vm0, %v257_v15, 0.0  ;;  %v289_v28 = vsel %vm273_vm0, %v258_v16, 0.0  ;;  %v277_v41 = vsel %vm273_vm0, %v261_v23, 0.0  ;;  %v292_v42 = vsel %vm273_vm0, %v262_v24, 0.0 }
  0x8e   : > { %v239_v19 = vpop.permute.xlu1 %238  ;;  %v231_v22 = vpop.permute.xlu0 %230 }
  0x8f   : > { %v259_v25 = vmul.f32 %v231_v22, %v163_v17  ;;  %v260_v26 = vmul.f32 %v231_v22, %v164_v18  ;;  %v263_v31 = vmul.f32 %v239_v19, %v167_v20  ;;  %v264_v32 = vmul.f32 %v239_v19, %v168_v21 }
  0x91   : > { %v275_v33 = vsel %vm273_vm0, %v259_v25, 0.0  ;;  %v290_v34 = vsel %vm273_vm0, %v260_v26, 0.0  ;;  %v279_v49 = vsel %vm273_vm0, %v263_v31, 0.0  ;;  %v294_v50 = vsel %vm273_vm0, %v264_v32, 0.0 }
  0x92   : > { %v276_v35 = vadd.f32 %v275_v33, %v274_v27  ;;  %v291_v36 = vadd.f32 %v290_v34, %v289_v28  ;;  %v247_v37 = vpop.permute.xlu1 %246  ;;  %v243_v40 = vpop.permute.xlu0 %242 }
  0x93   : > { %v265_v43 = vmul.f32 %v243_v40, %v169_v29  ;;  %v266_v44 = vmul.f32 %v243_v40, %v170_v30  ;;  %v267_v51 = vmul.f32 %v247_v37, %v171_v38  ;;  %v268_v52 = vmul.f32 %v247_v37, %v172_v39 }
  0x94   : > { %v278_v45 = vadd.f32 %v277_v41, %v276_v35  ;;  %v293_v46 = vadd.f32 %v292_v42, %v291_v36 }
  0x95   : > { %v281_v59 = vsel %vm273_vm0, %v265_v43, 0.0  ;;  %v296_v60 = vsel %vm273_vm0, %v266_v44, 0.0  ;;  %v283_v1 = vsel %vm273_vm0, %v267_v51, 0.0  ;;  %v298_v2 = vsel %vm273_vm0, %v268_v52, 0.0 }
  0x96   : > { %v280_v53 = vadd.f32 %v279_v49, %v278_v45  ;;  %v295_v54 = vadd.f32 %v294_v50, %v293_v46  ;;  %v255_v55 = vpop.permute.xlu1 %254  ;;  %v251_v58 = vpop.permute.xlu0 %250 }
  0x97   : > { %v269_v61 = vmul.f32 %v251_v58, %v173_v47  ;;  %v270_v62 = vmul.f32 %v251_v58, %v174_v48  ;;  %v271_v3 = vmul.f32 %v255_v55, %v175_v56  ;;  %v272_v4 = vmul.f32 %v255_v55, %v176_v57 }
  0x98   : > { %v282_v63 = vadd.f32 %v281_v59, %v280_v53  ;;  %v297_v0 = vadd.f32 %v296_v60, %v295_v54 }
  0x99   : > { %v285_v7 = vsel %vm273_vm0, %v269_v61, 0.0  ;;  %v300_v8 = vsel %vm273_vm0, %v270_v62, 0.0  ;;  %v287_v11 = vsel %vm273_vm0, %v271_v3, 0.0  ;;  %v302_v12 = vsel %vm273_vm0, %v272_v4, 0.0 }
  0x9a   : > { %v284_v5 = vadd.f32 %v283_v1, %v282_v63  ;;  %v299_v6 = vadd.f32 %v298_v2, %v297_v0 }
  0x9c   : > { %v286_v9 = vadd.f32 %v285_v7, %v284_v5  ;;  %v301_v10 = vadd.f32 %v300_v8, %v299_v6 }
  0x9e   : > { %v288_v13 = vadd.f32 %v287_v11, %v286_v9  ;;  %v303_v14 = vadd.f32 %v302_v12, %v301_v10 }
  0xa0   : > { %304 = vst.msk [vmem:[%s160_s22] sm:$0xff] %vm273_vm0, %v288_v13  ;;  %305 = vst.msk [vmem:[%s160_s22 + $0x8] sm:$0xff] %vm273_vm0, %v303_v14 }
  0xa1 PF: > { %s12_s9 = sadd.s32 1, %s412_s9  }
  0xa2   : > { %p9_p4 = scmp.ge.s32.totalorder %s12_s9, 4  }
  0xa4   :  { %11 = sbr.rel (!%p9_p4) target bundleno = 1 (0x1), region = 61 }

// kernel: tcn_gcn_unit_forward.11
= control target key start
LH: loop header
LB: loop body
LE: loop exit
PB: predicated region body
PF: predicated region fallthrough
CT: control target
= control target key end

     0   :  { %vm265_vm0 = vcmask 130048   ;;  %s766_s0 = inlined_call_operand.vmem [shape: f32[256,16], index: 0, kind: input, shape index: {}]   ;;  %s767_s1 = inlined_call_operand.vmem [shape: f32[256,16], index: 1, kind: input, shape index: {}]   ;;  %s768_s2 = inlined_call_operand.vmem [shape: f32[1,16], index: 2, kind: input, shape index: {}]   ;;  %s769_s3 = inlined_call_operand.vmem [shape: f32[1,16], index: 3, kind: input, shape index: {}]   ;;  %s770_s4 = inlined_call_operand.vmem [shape: f32[1,16], index: 4, kind: input, shape index: {}]   ;;  %s771_s5 = inlined_call_operand.vmem [shape: f32[256,16], index: 5, kind: output, shape index: {}]  }
   0x1   :  { %v20_v0 = vld [vmem:[%s766_s0] sm:$0xff]  ;;  %v21_v6 = vld [vmem:[%s766_s0 + $0x8] sm:$0xff]  ;;  %v22_v10 = vld [vmem:[%s766_s0 + $0x10] sm:$0xff] }
   0x2   :  { %v341_v1 = vld [vmem:[%s768_s2] ss:$0 sm:$0xff]  ;;  %v92_v9 = vld [vmem:[%s767_s1 + $0x8] sm:$0xff]  ;;  %v93_v11 = vld [vmem:[%s767_s1 + $0x10] sm:$0xff] }
   0x3   :  { %v91_v2 = vld [vmem:[%s767_s1] sm:$0xff]  ;;  %v59_v3 = vmul.f32 %v341_v1, %v20_v0  ;;  %v60_v8 = vmul.f32 %v341_v1, %v21_v6  ;;  %v61_v13 = vmul.f32 %v341_v1, %v22_v10  ;;  %v23_v15 = vld [vmem:[%s766_s0 + $0x18] sm:$0xff]  ;;  %v25_v23 = vld [vmem:[%s766_s0 + $0x28] sm:$0xff] }
   0x4   :  { %v350_v4 = vld [vmem:[%s769_s3] ss:$0 sm:$0xff]  ;;  %v94_v16 = vld [vmem:[%s767_s1 + $0x18] sm:$0xff]  ;;  %v62_v19 = vmul.f32 %v341_v1, %v23_v15  ;;  %v96_v24 = vld [vmem:[%s767_s1 + $0x28] sm:$0xff]  ;;  %v64_v28 = vmul.f32 %v341_v1, %v25_v23 }
   0x5   :  { %v355_v5 = vld [vmem:[%s770_s4] ss:$0 sm:$0xff]  ;;  %v130_v7 = vmul.f32 %v350_v4, %v91_v2  ;;  %v131_v12 = vmul.f32 %v350_v4, %v92_v9  ;;  %v132_v14 = vmul.f32 %v350_v4, %v93_v11  ;;  %v133_v20 = vmul.f32 %v350_v4, %v94_v16  ;;  %v26_v29 = vld [vmem:[%s766_s0 + $0x30] sm:$0xff]  ;;  %v27_v31 = vld [vmem:[%s766_s0 + $0x38] sm:$0xff] }
   0x6   :  { %v24_v17 = vld [vmem:[%s766_s0 + $0x20] sm:$0xff]  ;;  %v97_v30 = vld [vmem:[%s767_s1 + $0x30] sm:$0xff]  ;;  %v135_v34 = vmul.f32 %v350_v4, %v96_v24  ;;  %v65_v35 = vmul.f32 %v341_v1, %v26_v29  ;;  %v98_v40 = vld [vmem:[%s767_s1 + $0x38] sm:$0xff]  ;;  %v66_v45 = vmul.f32 %v341_v1, %v27_v31 }
   0x7   :  { %v162_v18 = vadd.f32 %v130_v7, %v59_v3  ;;  %v63_v21 = vmul.f32 %v341_v1, %v24_v17  ;;  %v95_v22 = vld [vmem:[%s767_s1 + $0x20] sm:$0xff]  ;;  %v163_v25 = vadd.f32 %v131_v12, %v60_v8  ;;  %v164_v26 = vadd.f32 %v132_v14, %v61_v13  ;;  %v29_v47 = vld [vmem:[%s766_s0 + $0x48] sm:$0xff]  ;;  %v30_v53 = vld [vmem:[%s766_s0 + $0x50] sm:$0xff] }
   0x8   :  { %v134_v27 = vmul.f32 %v350_v4, %v95_v22  ;;  %v165_v33 = vadd.f32 %v133_v20, %v62_v19  ;;  %v136_v39 = vmul.f32 %v350_v4, %v97_v30  ;;  %v28_v41 = vld [vmem:[%s766_s0 + $0x40] sm:$0xff]  ;;  %v167_v44 = vadd.f32 %v135_v34, %v64_v28  ;;  %v100_v52 = vld [vmem:[%s767_s1 + $0x48] sm:$0xff]  ;;  %v101_v58 = vld [vmem:[%s767_s1 + $0x50] sm:$0xff] }
   0x9   :  { %v201_v32 = vadd.f32 %v355_v5, %v162_v18  ;;  %v202_v36 = vadd.f32 %v355_v5, %v163_v25  ;;  %v203_v37 = vadd.f32 %v355_v5, %v164_v26  ;;  %v99_v46 = vld [vmem:[%s767_s1 + $0x40] sm:$0xff]  ;;  %v137_v56 = vmul.f32 %v350_v4, %v98_v40  ;;  %v31_v59 = vld [vmem:[%s766_s0 + $0x58] sm:$0xff]  ;;  %v33_v10 = vld [vmem:[%s766_s0 + $0x68] sm:$0xff] }
   0xa   :  { %v166_v38 = vadd.f32 %v134_v27, %v63_v21  ;;  %v204_v43 = vadd.f32 %v355_v5, %v165_v33  ;;  %v168_v51 = vadd.f32 %v136_v39, %v65_v35  ;;  %v206_v55 = vadd.f32 %v355_v5, %v167_v44  ;;  %v102_v0 = vld [vmem:[%s767_s1 + $0x58] sm:$0xff]  ;;  %v32_v2 = vld [vmem:[%s766_s0 + $0x60] sm:$0xff]  ;;  %v104_v15 = vld [vmem:[%s767_s1 + $0x68] sm:$0xff] }
   0xb   :  { %v233_v42 = vmax.f32 %v201_v32, 0.0  ;;  %v234_v48 = vmax.f32 %v202_v36, 0.0  ;;  %v235_v49 = vmax.f32 %v203_v37, 0.0  ;;  %v67_v57 = vmul.f32 %v341_v1, %v28_v41  ;;  %v103_v9 = vld [vmem:[%s767_s1 + $0x60] sm:$0xff]  ;;  %v34_v20 = vld [vmem:[%s766_s0 + $0x70] sm:$0xff]  ;;  %v35_v30 = vld [vmem:[%s766_s0 + $0x78] sm:$0xff] }
   0xc   :  { %v205_v50 = vadd.f32 %v355_v5, %v166_v38  ;;  %v236_v54 = vmax.f32 %v204_v43, 0.0  ;;  %v207_v61 = vadd.f32 %v355_v5, %v168_v51  ;;  %v138_v62 = vmul.f32 %v350_v4, %v99_v46  ;;  %v105_v25 = vld [vmem:[%s767_s1 + $0x70] sm:$0xff]  ;;  %v106_v31 = vld [vmem:[%s767_s1 + $0x78] sm:$0xff]  ;;  %v36_v36 = vld [vmem:[%s766_s0 + $0x80] sm:$0xff] }
   0xd   :  { %266 = vst.msk [vmem:[%s771_s5] sm:$0xff] %vm265_vm0, %v233_v42  ;;  %267 = vst.msk [vmem:[%s771_s5 + $0x8] sm:$0xff] %vm265_vm0, %v234_v48  ;;  %v68_v63 = vmul.f32 %v341_v1, %v29_v47  ;;  %v238_v3 = vmax.f32 %v206_v55, 0.0  ;;  %v169_v6 = vadd.f32 %v137_v56, %v66_v45  ;;  %v139_v7 = vmul.f32 %v350_v4, %v100_v52  ;;  %v107_v41 = vld [vmem:[%s767_s1 + $0x80] sm:$0xff]  ;;  %v37_v42 = vld [vmem:[%s766_s0 + $0x88] sm:$0xff] }
   0xe   :  { %268 = vst.msk [vmem:[%s771_s5 + $0x10] sm:$0xff] %vm265_vm0, %v235_v49  ;;  %v237_v60 = vmax.f32 %v205_v50, 0.0  ;;  %269 = vst.msk [vmem:[%s771_s5 + $0x18] sm:$0xff] %vm265_vm0, %v236_v54  ;;  %v69_v8 = vmul.f32 %v341_v1, %v30_v53  ;;  %v239_v11 = vmax.f32 %v207_v61, 0.0  ;;  %v170_v12 = vadd.f32 %v138_v62, %v67_v57  ;;  %v108_v47 = vld [vmem:[%s767_s1 + $0x88] sm:$0xff]  ;;  %v38_v48 = vld [vmem:[%s766_s0 + $0x90] sm:$0xff] }
   0xf   :  { %v140_v13 = vmul.f32 %v350_v4, %v101_v58  ;;  %v70_v14 = vmul.f32 %v341_v1, %v31_v59  ;;  %271 = vst.msk [vmem:[%s771_s5 + $0x28] sm:$0xff] %vm265_vm0, %v238_v3  ;;  %v208_v16 = vadd.f32 %v355_v5, %v169_v6  ;;  %v171_v17 = vadd.f32 %v139_v7, %v68_v63  ;;  %v109_v53 = vld [vmem:[%s767_s1 + $0x90] sm:$0xff]  ;;  %v39_v54 = vld [vmem:[%s766_s0 + $0x98] sm:$0xff] }
  0x10   :  { %270 = vst.msk [vmem:[%s771_s5 + $0x20] sm:$0xff] %vm265_vm0, %v237_v60  ;;  %v141_v18 = vmul.f32 %v350_v4, %v102_v0  ;;  %v71_v19 = vmul.f32 %v341_v1, %v32_v2  ;;  %272 = vst.msk [vmem:[%s771_s5 + $0x30] sm:$0xff] %vm265_vm0, %v239_v11  ;;  %v209_v21 = vadd.f32 %v355_v5, %v170_v12  ;;  %v110_v59 = vld [vmem:[%s767_s1 + $0x98] sm:$0xff]  ;;  %v40_v60 = vld [vmem:[%s766_s0 + $0xa0] sm:$0xff] }
  0x11   :  { %v172_v22 = vadd.f32 %v140_v13, %v69_v8  ;;  %v142_v23 = vmul.f32 %v350_v4, %v103_v9  ;;  %v72_v24 = vmul.f32 %v341_v1, %v33_v10  ;;  %v240_v26 = vmax.f32 %v208_v16, 0.0  ;;  %v111_v2 = vld [vmem:[%s767_s1 + $0xa0] sm:$0xff]  ;;  %v41_v9 = vld [vmem:[%s766_s0 + $0xa8] sm:$0xff] }
  0x12   :  { %v210_v27 = vadd.f32 %v355_v5, %v171_v17  ;;  %v173_v28 = vadd.f32 %v141_v18, %v70_v14  ;;  %v143_v29 = vmul.f32 %v350_v4, %v104_v15  ;;  %v241_v32 = vmax.f32 %v209_v21, 0.0  ;;  %v112_v10 = vld [vmem:[%s767_s1 + $0xa8] sm:$0xff]  ;;  %v42_v15 = vld [vmem:[%s766_s0 + $0xb0] sm:$0xff] }
  0x13   :  { %v211_v33 = vadd.f32 %v355_v5, %v172_v22  ;;  %v174_v34 = vadd.f32 %v142_v23, %v71_v19  ;;  %v73_v35 = vmul.f32 %v341_v1, %v34_v20  ;;  %273 = vst.msk [vmem:[%s771_s5 + $0x38] sm:$0xff] %vm265_vm0, %v240_v26  ;;  %v144_v40 = vmul.f32 %v350_v4, %v105_v25  ;;  %v113_v20 = vld [vmem:[%s767_s1 + $0xb0] sm:$0xff]  ;;  %v43_v25 = vld [vmem:[%s766_s0 + $0xb8] sm:$0xff] }
  0x14   :  { %v242_v37 = vmax.f32 %v210_v27, 0.0  ;;  %v212_v38 = vadd.f32 %v355_v5, %v173_v28  ;;  %v175_v39 = vadd.f32 %v143_v29, %v72_v24  ;;  %274 = vst.msk [vmem:[%s771_s5 + $0x40] sm:$0xff] %vm265_vm0, %v241_v32  ;;  %v74_v45 = vmul.f32 %v341_v1, %v35_v30  ;;  %v114_v26 = vld [vmem:[%s767_s1 + $0xb8] sm:$0xff] }
  0x15   :  { %v243_v43 = vmax.f32 %v211_v33, 0.0  ;;  %v213_v44 = vadd.f32 %v355_v5, %v174_v34  ;;  %v145_v46 = vmul.f32 %v350_v4, %v106_v31  ;;  %v176_v51 = vadd.f32 %v144_v40, %v73_v35  ;;  %v44_v31 = vld [vmem:[%s766_s0 + $0xc0] sm:$0xff] }
  0x16   :  { %275 = vst.msk [vmem:[%s771_s5 + $0x48] sm:$0xff] %vm265_vm0, %v242_v37  ;;  %v244_v49 = vmax.f32 %v212_v38, 0.0  ;;  %v214_v50 = vadd.f32 %v355_v5, %v175_v39  ;;  %v75_v52 = vmul.f32 %v341_v1, %v36_v36  ;;  %v146_v57 = vmul.f32 %v350_v4, %v107_v41  ;;  %v115_v36 = vld [vmem:[%s767_s1 + $0xc0] sm:$0xff]  ;;  %v45_v37 = vld [vmem:[%s766_s0 + $0xc8] sm:$0xff] }
  0x17   :  { %276 = vst.msk [vmem:[%s771_s5 + $0x50] sm:$0xff] %vm265_vm0, %v243_v43  ;;  %v245_v55 = vmax.f32 %v213_v44, 0.0  ;;  %v177_v56 = vadd.f32 %v145_v46, %v74_v45  ;;  %v76_v58 = vmul.f32 %v341_v1, %v37_v42  ;;  %v215_v62 = vadd.f32 %v355_v5, %v176_v51  ;;  %v116_v42 = vld [vmem:[%s767_s1 + $0xc8] sm:$0xff]  ;;  %v46_v43 = vld [vmem:[%s766_s0 + $0xd0] sm:$0xff] }
  0x18   :  { %277 = vst.msk [vmem:[%s771_s5 + $0x58] sm:$0xff] %vm265_vm0, %v244_v49  ;;  %v246_v61 = vmax.f32 %v214_v50, 0.0  ;;  %v147_v63 = vmul.f32 %v350_v4, %v108_v47  ;;  %v77_v0 = vmul.f32 %v341_v1, %v38_v48  ;;  %v178_v6 = vadd.f32 %v146_v57, %v75_v52  ;;  %v117_v48 = vld [vmem:[%s767_s1 + $0xd0] sm:$0xff]  ;;  %v47_v49 = vld [vmem:[%s766_s0 + $0xd8] sm:$0xff] }
  0x19   :  { %278 = vst.msk [vmem:[%s771_s5 + $0x60] sm:$0xff] %vm265_vm0, %v245_v55  ;;  %v216_v3 = vadd.f32 %v355_v5, %v177_v56  ;;  %v148_v7 = vmul.f32 %v350_v4, %v109_v53  ;;  %v78_v8 = vmul.f32 %v341_v1, %v39_v54  ;;  %v247_v11 = vmax.f32 %v215_v62, 0.0  ;;  %v118_v54 = vld [vmem:[%s767_s1 + $0xd8] sm:$0xff]  ;;  %v48_v55 = vld [vmem:[%s766_s0 + $0xe0] sm:$0xff] }
  0x1a   :  { %279 = vst.msk [vmem:[%s771_s5 + $0x68] sm:$0xff] %vm265_vm0, %v246_v61  ;;  %v179_v12 = vadd.f32 %v147_v63, %v76_v58  ;;  %v149_v13 = vmul.f32 %v350_v4, %v110_v59  ;;  %v79_v14 = vmul.f32 %v341_v1, %v40_v60  ;;  %v217_v17 = vadd.f32 %v355_v5, %v178_v6  ;;  %v119_v60 = vld [vmem:[%s767_s1 + $0xe0] sm:$0xff] }
  0x1b   :  { %v248_v16 = vmax.f32 %v216_v3, 0.0  ;;  %v180_v18 = vadd.f32 %v148_v7, %v77_v0  ;;  %v150_v19 = vmul.f32 %v350_v4, %v111_v2  ;;  %280 = vst.msk [vmem:[%s771_s5 + $0x70] sm:$0xff] %vm265_vm0, %v247_v11  ;;  %v80_v23 = vmul.f32 %v341_v1, %v41_v9  ;;  %v49_v2 = vld [vmem:[%s766_s0 + $0xe8] sm:$0xff] }
  0x1c   :  { %v218_v21 = vadd.f32 %v355_v5, %v179_v12  ;;  %v181_v22 = vadd.f32 %v149_v13, %v78_v8  ;;  %v151_v24 = vmul.f32 %v350_v4, %v112_v10  ;;  %v249_v27 = vmax.f32 %v217_v17, 0.0  ;;  %v120_v3 = vld [vmem:[%s767_s1 + $0xe8] sm:$0xff]  ;;  %v50_v10 = vld [vmem:[%s766_s0 + $0xf0] sm:$0xff] }
  0x1d   :  { %281 = vst.msk [vmem:[%s771_s5 + $0x78] sm:$0xff] %vm265_vm0, %v248_v16  ;;  %v219_v28 = vadd.f32 %v355_v5, %v180_v18  ;;  %v182_v29 = vadd.f32 %v150_v19, %v79_v14  ;;  %v81_v30 = vmul.f32 %v341_v1, %v42_v15  ;;  %v152_v35 = vmul.f32 %v350_v4, %v113_v20  ;;  %v121_v15 = vld [vmem:[%s767_s1 + $0xf0] sm:$0xff]  ;;  %v51_v20 = vld [vmem:[%s766_s0 + $0xf8] sm:$0xff] }
  0x1e   :  { %v250_v32 = vmax.f32 %v218_v21, 0.0  ;;  %v220_v33 = vadd.f32 %v355_v5, %v181_v22  ;;  %v183_v34 = vadd.f32 %v151_v24, %v80_v23  ;;  %282 = vst.msk [vmem:[%s771_s5 + $0x80] sm:$0xff] %vm265_vm0, %v249_v27  ;;  %v82_v40 = vmul.f32 %v341_v1, %v43_v25  ;;  %v122_v21 = vld [vmem:[%s767_s1 + $0xf8] sm:$0xff] }
  0x1f   :  { %v251_v38 = vmax.f32 %v219_v28, 0.0  ;;  %v221_v39 = vadd.f32 %v355_v5, %v182_v29  ;;  %v153_v41 = vmul.f32 %v350_v4, %v114_v26  ;;  %v184_v46 = vadd.f32 %v152_v35, %v81_v30 }
  0x20   :  { %283 = vst.msk [vmem:[%s771_s5 + $0x88] sm:$0xff] %vm265_vm0, %v250_v32  ;;  %v252_v44 = vmax.f32 %v220_v33, 0.0  ;;  %v222_v45 = vadd.f32 %v355_v5, %v183_v34  ;;  %v83_v47 = vmul.f32 %v341_v1, %v44_v31  ;;  %v154_v52 = vmul.f32 %v350_v4, %v115_v36 }
  0x21   :  { %284 = vst.msk [vmem:[%s771_s5 + $0x90] sm:$0xff] %vm265_vm0, %v251_v38  ;;  %v253_v50 = vmax.f32 %v221_v39, 0.0  ;;  %v185_v51 = vadd.f32 %v153_v41, %v82_v40  ;;  %v84_v53 = vmul.f32 %v341_v1, %v45_v37  ;;  %v223_v57 = vadd.f32 %v355_v5, %v184_v46 }
  0x22   :  { %285 = vst.msk [vmem:[%s771_s5 + $0x98] sm:$0xff] %vm265_vm0, %v252_v44  ;;  %v254_v56 = vmax.f32 %v222_v45, 0.0  ;;  %v155_v58 = vmul.f32 %v350_v4, %v116_v42  ;;  %v85_v59 = vmul.f32 %v341_v1, %v46_v43  ;;  %v186_v62 = vadd.f32 %v154_v52, %v83_v47 }
  0x23   :  { %286 = vst.msk [vmem:[%s771_s5 + $0xa0] sm:$0xff] %vm265_vm0, %v253_v50  ;;  %v224_v61 = vadd.f32 %v355_v5, %v185_v51  ;;  %v156_v63 = vmul.f32 %v350_v4, %v117_v48  ;;  %v86_v0 = vmul.f32 %v341_v1, %v47_v49  ;;  %v255_v6 = vmax.f32 %v223_v57, 0.0 }
  0x24   :  { %287 = vst.msk [vmem:[%s771_s5 + $0xa8] sm:$0xff] %vm265_vm0, %v254_v56  ;;  %v187_v7 = vadd.f32 %v155_v58, %v84_v53  ;;  %v157_v8 = vmul.f32 %v350_v4, %v118_v54  ;;  %v87_v9 = vmul.f32 %v341_v1, %v48_v55  ;;  %v225_v12 = vadd.f32 %v355_v5, %v186_v62 }
  0x25   :  { %v256_v11 = vmax.f32 %v224_v61, 0.0  ;;  %v188_v13 = vadd.f32 %v156_v63, %v85_v59  ;;  %v158_v14 = vmul.f32 %v350_v4, %v119_v60  ;;  %288 = vst.msk [vmem:[%s771_s5 + $0xb0] sm:$0xff] %vm265_vm0, %v255_v6  ;;  %v88_v18 = vmul.f32 %v341_v1, %v49_v2 }
  0x26   :  { %v226_v16 = vadd.f32 %v355_v5, %v187_v7  ;;  %v189_v17 = vadd.f32 %v157_v8, %v86_v0  ;;  %v159_v19 = vmul.f32 %v350_v4, %v120_v3  ;;  %v257_v22 = vmax.f32 %v225_v12, 0.0 }
  0x27   :  { %289 = vst.msk [vmem:[%s771_s5 + $0xb8] sm:$0xff] %vm265_vm0, %v256_v11  ;;  %v227_v23 = vadd.f32 %v355_v5, %v188_v13  ;;  %v190_v24 = vadd.f32 %v158_v14, %v87_v9  ;;  %v89_v25 = vmul.f32 %v341_v1, %v50_v10  ;;  %v160_v29 = vmul.f32 %v350_v4, %v121_v15 }
  0x28   :  { %v258_v26 = vmax.f32 %v226_v16, 0.0  ;;  %v228_v27 = vadd.f32 %v355_v5, %v189_v17  ;;  %v191_v28 = vadd.f32 %v159_v19, %v88_v18  ;;  %290 = vst.msk [vmem:[%s771_s5 + $0xc0] sm:$0xff] %vm265_vm0, %v257_v22  ;;  %v90_v32 = vmul.f32 %v341_v1, %v51_v20 }
  0x29   :  { %v259_v30 = vmax.f32 %v227_v23, 0.0  ;;  %v229_v31 = vadd.f32 %v355_v5, %v190_v24  ;;  %v161_v33 = vmul.f32 %v350_v4, %v122_v21  ;;  %v192_v36 = vadd.f32 %v160_v29, %v89_v25 }
  0x2a   :  { %291 = vst.msk [vmem:[%s771_s5 + $0xc8] sm:$0xff] %vm265_vm0, %v258_v26  ;;  %v260_v34 = vmax.f32 %v228_v27, 0.0  ;;  %v230_v35 = vadd.f32 %v355_v5, %v191_v28 }
  0x2b   :  { %292 = vst.msk [vmem:[%s771_s5 + $0xd0] sm:$0xff] %vm265_vm0, %v259_v30  ;;  %v261_v37 = vmax.f32 %v229_v31, 0.0  ;;  %v193_v38 = vadd.f32 %v161_v33, %v90_v32  ;;  %v231_v4 = vadd.f32 %v355_v5, %v192_v36 }
  0x2c   :  { %293 = vst.msk [vmem:[%s771_s5 + $0xd8] sm:$0xff] %vm265_vm0, %v260_v34  ;;  %v262_v1 = vmax.f32 %v230_v35, 0.0 }
  0x2d   :  { %294 = vst.msk [vmem:[%s771_s5 + $0xe0] sm:$0xff] %vm265_vm0, %v261_v37  ;;  %v232_v39 = vadd.f32 %v355_v5, %v193_v38  ;;  %v263_v40 = vmax.f32 %v231_v4, 0.0 }
  0x2e   :  { %295 = vst.msk [vmem:[%s771_s5 + $0xe8] sm:$0xff] %vm265_vm0, %v262_v1 }
  0x2f   :  { %v264_v41 = vmax.f32 %v232_v39, 0.0  ;;  %296 = vst.msk [vmem:[%s771_s5 + $0xf0] sm:$0xff] %vm265_vm0, %v263_v40 }
  0x31   :  { %297 = vst.msk [vmem:[%s771_s5 + $0xf8] sm:$0xff] %vm265_vm0, %v264_v41 }

// kernel: tcn_gcn_unit_forward.10
= control target key start
LH: loop header
LB: loop body
LE: loop exit
PB: predicated region body
PF: predicated region fallthrough
CT: control target
= control target key end

     0   :  { %s2939_s27 = smov 0   ;;  %s2941_s28 = smov 0   ;;  %s3574_s0 = inlined_call_operand.vmem [shape: f32[2,8,16,16], index: 0, kind: input, shape index: {}]   ;;  %s3575_s1 = inlined_call_operand.vmem [shape: f32[9,16,16], index: 1, kind: input, shape index: {}]   ;;  %s3576_s2 = inlined_call_operand.vmem [shape: f32[1,16], index: 2, kind: input, shape index: {}]   ;;  %s3577_s3 = inlined_call_operand.vmem [shape: f32[2,8,1,1], index: 3, kind: input, shape index: {}]   ;;  %s3578_s4 = inlined_call_operand.vmem [shape: f32[2,1,16,1], index: 4, kind: input, shape index: {}]   ;;  %s3579_s5 = inlined_call_operand.vmem [shape: f32[2,1,1,16], index: 5, kind: input, shape index: {}]   ;;  %s3580_s6 = inlined_call_operand.vmem [shape: f32[2,8,16,16], index: 6, kind: output, shape index: {0}]   ;;  %s3581_s7 = inlined_call_operand.vmem [shape: f32[2,1,1,16], index: 7, kind: output, shape index: {1}]   ;;  %s3582_s8 = inlined_call_operand.vmem [shape: f32[2,1,1,16], index: 8, kind: output, shape index: {2}]  }
   0x1   :  { %s2943_s29 = smov 0  }
   0x2 LB: > { %s31_s30 = sadd.s32 1, %s2886_s28  ;;  %p2484_p0 = scmp.ge.s32.totalorder %s2890_s29, 1  ;;  %s2890_s29 = sphi %s2943_s29, %s19_s29   ;;  %s2886_s28 = sphi %s2941_s28, %s3630_s28   ;;  %s2882_s27 = sphi %s2939_s27, %s3629_s27  }
   0x3   : > { %p33_p1 = scmp.ge.s32.totalorder %s31_s30, 2  ;;  %p327_p2 = scmp.lt.s32.totalorder %s2890_s29, 3 }
   0x5   : > { %s3632_s30 = smov (%p33_p1, %s31_s30), 0  ;;  %p328_p3 = pnand %p2484_p0, %p327_p2 }
   0x7   : > { %331 = sbr.rel (%p328_p3) target bundleno = 540 (0x21c), region = 44 }
   0xc   : > { %p400_p4 = scmp.lt.s32.totalorder %s2882_s27, 1  ;;  %v2892_v0 = vmov 0   ;;  %vm628_vm0 = vcmask 125952   ;;  %v2893_v10 = vmov 0.0   ;;  %v2501_v17 = vld [vmem:[%s3575_s1 + $0x10] sm:$0xff]  ;;  %v2502_v18 = vld [vmem:[%s3575_s1 + $0x18] sm:$0xff] }
   0xd   : > { %2867 = vset.pattern.permute.xlu1 %v2892_v0  ;;  %2866 = vset.pattern.permute.xlu0 %v2892_v0  ;;  %633 = vst.msk [vmem:[#allocation2 + $0x60] sm:$0xf] %vm628_vm0, %v2893_v10  ;;  %629 = vst.msk [vmem:[#allocation2] sm:$0xf] %vm628_vm0, %v2893_v10  ;;  %v748_v19 = vpack.c.bf16 %v2502_v18, %v2501_v17  ;;  %v718_v31 = vld [vmem:[%s3575_s1] sm:$0xff]  ;;  %v719_v32 = vld [vmem:[%s3575_s1 + $0x8] sm:$0xff] }
   0xe   : > { %s3634_s27 = smov (!%p400_p4, %s2882_s27), 1  ;;  %630 = vst.msk [vmem:[#allocation2 + $0x18] sm:$0xf] %vm628_vm0, %v2893_v10  ;;  %631 = vst.msk [vmem:[#allocation2 + $0x30] sm:$0xf] %vm628_vm0, %v2893_v10  ;;  %v2519_v33 = vld [vmem:[%s3575_s1 + $0x20] sm:$0xff]  ;;  %v3018_v34 = vpack.c.bf16 %v719_v32, %v718_v31 }
   0xf   : > { %s2487_s9 = sshll.u32 %s3634_s27, 3  ;;  %s2593_s10 = sshll.u32 %s3634_s27, 4  ;;  %632 = vst.msk [vmem:[#allocation2 + $0x48] sm:$0xf] %vm628_vm0, %v2893_v10  ;;  %634 = vst.msk [vmem:[#allocation2 + $0x78] sm:$0xf] %vm628_vm0, %v2893_v10  ;;  %2838 = vmatprep.subr.bf16.mxu1 %v748_v19  ;;  %2676 = vmatprep.subr.bf16.mxu0 %v748_v19 }
  0x10   : > { %s2964_s13 = scalar_lea.vmem %s3577_s3, %s2487_s9  ;;  %s423_s16 = scalar_lea.vmem %s3578_s4, %s2593_s10  ;;  %635 = vst.msk [vmem:[#allocation2 + $0x90] sm:$0xf] %vm628_vm0, %v2893_v10  ;;  %636 = vst.msk [vmem:[#allocation2 + $0xa8] sm:$0xf] %vm628_vm0, %v2893_v10  ;;  %2839 = vmatpush3.bf16.msra.mxu1 %v748_v19  ;;  %2677 = vmatpush3.bf16.msra.mxu0 %v748_v19  ;;  %v2520_v35 = vld [vmem:[%s3575_s1 + $0x28] sm:$0xff]  ;;  %vm677_vm1 = vcmask 130048  }
  0x11   : > { %v2497_v1 = vld [vmem:[%s2964_s13 + $0x5] ss:$0 sm:$0xff]  ;;  %v460_v3 = vld [vmem:[%s423_s16 + $0x8] sm:$0xff]  ;;  %v2496_v5 = vld [vmem:[%s2964_s13 + $0x4] ss:$0 sm:$0xff]  ;;  %v3023_v36 = vpack.c.bf16 %v2520_v35, %v2519_v33  ;;  %2694 = vmatprep.subr.bf16.mxu1 %v3018_v34  ;;  %s2592_s11 = sshll.u32 %s3634_s27, 7  ;;  %s426_s14 = scalar_lea.vmem %s3579_s5, %s3634_s27 }
  0x12   : > { %v2970_v2 = vld [vmem:[%s423_s16] sm:$0xff]  ;;  %v520_v7 = vmul.f32 %v2497_v1, %v460_v3  ;;  %v518_v8 = vmul.f32 %v2496_v5, %v460_v3  ;;  %637 = vst.msk [vmem:[#allocation2 + $0x14] sm:$0xf] %vm628_vm0, %v2893_v10  ;;  %638 = vst.msk [vmem:[#allocation2 + $0x2c] sm:$0xf] %vm628_vm0, %v2893_v10  ;;  %s3037_s17 = scalar_lea.vmem %s3574_s0, %s2592_s11  ;;  %v2540_v35 = vld [vmem:[%s3575_s1 + $0x48] sm:$0xff]  ;;  %s3433_s12 = scalar_lea.vmem %s3580_s6, %s2592_s11 }
  0x13   : > { %v519_v4 = vmul.f32 %v2497_v1, %v2970_v2  ;;  %v517_v6 = vmul.f32 %v2496_v5, %v2970_v2  ;;  %v2492_v9 = vld [vmem:[%s2964_s13] ss:$0 sm:$0xff]  ;;  %639 = vst.msk [vmem:[#allocation2 + $0x44] sm:$0xf] %vm628_vm0, %v2893_v10  ;;  %640 = vst.msk [vmem:[#allocation2 + $0x5c] sm:$0xf] %vm628_vm0, %v2893_v10  ;;  %2712 = vmatprep.subr.bf16.mxu0 %v3023_v36 }
  0x14   : > { %641 = vst.msk [vmem:[#allocation2 + $0x74] sm:$0xf] %vm628_vm0, %v2893_v10  ;;  %642 = vst.msk [vmem:[#allocation2 + $0x8c] sm:$0xf] %vm628_vm0, %v2893_v10  ;;  %v510_v11 = vmul.f32 %v2492_v9, %v460_v3  ;;  %v509_v12 = vmul.f32 %v2492_v9, %v2970_v2  ;;  %v2493_v13 = vld [vmem:[%s2964_s13 + $0x1] ss:$0 sm:$0xff] }
  0x15   : > { %578 = vperm.xlu1 %2867, %v519_v4   ;;  %568 = vperm.xlu0 %2866, %v517_v6   ;;  %643 = vst.msk [vmem:[#allocation2 + $0xa4] sm:$0xf] %vm628_vm0, %v2893_v10  ;;  %644 = vst.msk [vmem:[#allocation2 + $0xbc] sm:$0xf] %vm628_vm0, %v2893_v10  ;;  %v512_v14 = vmul.f32 %v2493_v13, %v460_v3  ;;  %v511_v15 = vmul.f32 %v2493_v13, %v2970_v2  ;;  %v2498_v16 = vld [vmem:[%s2964_s13 + $0x6] ss:$0 sm:$0xff] }
  0x16   : > { %v522_v20 = vmul.f32 %v2498_v16, %v460_v3  ;;  %v521_v21 = vmul.f32 %v2498_v16, %v2970_v2  ;;  %v2499_v22 = vld [vmem:[%s2964_s13 + $0x7] ss:$0 sm:$0xff]  ;;  %v2494_v25 = vld [vmem:[%s2964_s13 + $0x2] ss:$0 sm:$0xff]  ;;  %v2495_v28 = vld [vmem:[%s2964_s13 + $0x3] ss:$0 sm:$0xff] }
  0x17   : > { %v524_v23 = vmul.f32 %v2499_v22, %v460_v3  ;;  %v523_v24 = vmul.f32 %v2499_v22, %v2970_v2  ;;  %v514_v26 = vmul.f32 %v2494_v25, %v460_v3  ;;  %v513_v27 = vmul.f32 %v2494_v25, %v2970_v2  ;;  %v3039_v37 = vld [vmem:[%s426_s14] ss:$0 sm:$0xff]  ;;  %v655_v39 = vld [vmem:[%s3037_s17 + $0x50] sm:$0xff]  ;;  %v656_v47 = vld [vmem:[%s3037_s17 + $0x58] sm:$0xff]  ;;  %s443_s14 = scalar_lea.vmem %s3581_s7, %s3634_s27 }
  0x18   : > { %v516_v29 = vmul.f32 %v2495_v28, %v460_v3  ;;  %v515_v30 = vmul.f32 %v2495_v28, %v2970_v2  ;;  %v653_v42 = vld [vmem:[%s3037_s17 + $0x40] sm:$0xff]  ;;  %v654_v50 = vld [vmem:[%s3037_s17 + $0x48] sm:$0xff]  ;;  %v648_v63 = vld [vmem:[%s3037_s17 + $0x18] sm:$0xff]  ;;  %vm2222_vm2 = vcmask 122880  }
  0x19   : > { %583 = vperm.xlu1 %2867, %v520_v7   ;;  %573 = vperm.xlu0 %2866, %v518_v8   ;;  %v646_v55 = vld [vmem:[%s3037_s17 + $0x8] sm:$0xff]  ;;  %v645_v58 = vld [vmem:[%s3037_s17] sm:$0xff]  ;;  %v647_v2 = vld [vmem:[%s3037_s17 + $0x10] sm:$0xff] }
  0x1a   : > { %v658_v5 = vld [vmem:[%s3037_s17 + $0x68] sm:$0xff]  ;;  %v2529_v6 = vld [vmem:[%s3575_s1 + $0x30] sm:$0xff]  ;;  %v2539_v33 = vld [vmem:[%s3575_s1 + $0x40] sm:$0xff] }
  0x1d   : > { %533 = vperm.xlu1 %2867, %v510_v11   ;;  %528 = vperm.xlu0 %2866, %v509_v12   ;;  %v2530_v11 = vld [vmem:[%s3575_s1 + $0x38] sm:$0xff] }
  0x21   : > { %543 = vperm.xlu1 %2867, %v512_v14   ;;  %538 = vperm.xlu0 %2866, %v511_v15   ;;  %v657_v14 = vld [vmem:[%s3037_s17 + $0x60] sm:$0xff] }
  0x25   : > { %593 = vperm.xlu1 %2867, %v522_v20   ;;  %588 = vperm.xlu0 %2866, %v521_v21   ;;  %v3075_v21 = vpack.c.bf16 %v2530_v11, %v2529_v6 }
  0x29   : > { %603 = vperm.xlu1 %2867, %v524_v23   ;;  %598 = vperm.xlu0 %2866, %v523_v24   ;;  %v660_v24 = vld [vmem:[%s3037_s17 + $0x78] sm:$0xff] }
  0x2d   : > { %553 = vperm.xlu1 %2867, %v514_v26   ;;  %548 = vperm.xlu0 %2866, %v513_v27   ;;  %v659_v27 = vld [vmem:[%s3037_s17 + $0x70] sm:$0xff] }
  0x31   : > { %563 = vperm.xlu1 %2867, %v516_v29   ;;  %558 = vperm.xlu0 %2866, %v515_v30  }
  0x90   : > { %v579_v38 = vpop.permute.xlu1 %578  ;;  %v569_v41 = vpop.permute.xlu0 %568 }
  0x91   : > { %v622_v40 = vmul.f32 %v3039_v37, %v579_v38  ;;  %v620_v43 = vmul.f32 %v3039_v37, %v569_v41 }
  0x93   : > { %v671_v44 = vmul.f32 %v655_v39, %v622_v40  ;;  %v669_v45 = vmul.f32 %v653_v42, %v620_v43  ;;  %v650_v40 = vld [vmem:[%s3037_s17 + $0x28] sm:$0xff]  ;;  %v649_v42 = vld [vmem:[%s3037_s17 + $0x20] sm:$0xff] }
  0x94   : > { %v584_v46 = vpop.permute.xlu1 %583  ;;  %v574_v49 = vpop.permute.xlu0 %573 }
  0x95   : > { %688 = vst.msk [vmem:[#allocation2 + $0x7c] sm:$0xff] %vm677_vm1, %v671_v44  ;;  %v623_v48 = vmul.f32 %v3039_v37, %v584_v46  ;;  %686 = vst.msk [vmem:[#allocation2 + $0x64] sm:$0xff] %vm677_vm1, %v669_v45  ;;  %v621_v51 = vmul.f32 %v3039_v37, %v574_v49 }
  0x97   : > { %v672_v52 = vmul.f32 %v656_v47, %v623_v48  ;;  %v670_v53 = vmul.f32 %v654_v50, %v621_v51  ;;  %v3100_v47 = vpack.c.bf16 %v2540_v35, %v2539_v33  ;;  %v652_v51 = vld [vmem:[%s3037_s17 + $0x38] sm:$0xff] }
  0x98   : > { %v534_v54 = vpop.permute.xlu1 %533  ;;  %v529_v57 = vpop.permute.xlu0 %528 }
  0x99   : > { %689 = vst.msk [vmem:[#allocation2 + $0x84] sm:$0xff] %vm677_vm1, %v672_v52  ;;  %v613_v56 = vmul.f32 %v3039_v37, %v534_v54  ;;  %687 = vst.msk [vmem:[#allocation2 + $0x6c] sm:$0xff] %vm677_vm1, %v670_v53  ;;  %v612_v59 = vmul.f32 %v3039_v37, %v529_v57  ;;  %v651_v54 = vld [vmem:[%s3037_s17 + $0x30] sm:$0xff]  ;;  %s449_s17 = scalar_lea.vmem %s3582_s8, %s3634_s27 }
  0x9b   : > { %v662_v60 = vmul.f32 %v646_v55, %v613_v56  ;;  %v661_v61 = vmul.f32 %v645_v58, %v612_v59 }
  0x9c   : > { %v544_v62 = vpop.permute.xlu1 %543  ;;  %v539_v1 = vpop.permute.xlu0 %538  ;;  %v731_v9 = vld [vmem:[#allocation2 + $0x79] sm:$0xff]  ;;  %v729_v15 = vld [vmem:[#allocation2 + $0x61] sm:$0xff] }
  0x9d   : > { %679 = vst.msk [vmem:[#allocation2 + $0xc] sm:$0xff] %vm677_vm1, %v662_v60  ;;  %v615_v0 = vmul.f32 %v3039_v37, %v544_v62  ;;  %678 = vst.msk [vmem:[#allocation2 + $0x4] sm:$0xff] %vm677_vm1, %v661_v61  ;;  %v614_v3 = vmul.f32 %v3039_v37, %v539_v1 }
  0x9f   : > { %v664_v4 = vmul.f32 %v648_v63, %v615_v0  ;;  %v663_v7 = vmul.f32 %v647_v2, %v614_v3 }
  0xa0   : > { %v594_v8 = vpop.permute.xlu1 %593  ;;  %v732_v10 = vld [vmem:[#allocation2 + $0x81] sm:$0xff]  ;;  %v589_v13 = vpop.permute.xlu0 %588  ;;  %v730_v16 = vld [vmem:[#allocation2 + $0x69] sm:$0xff] }
  0xa1   : > { %681 = vst.msk [vmem:[#allocation2 + $0x24] sm:$0xff] %vm677_vm1, %v664_v4  ;;  %v625_v12 = vmul.f32 %v3039_v37, %v594_v8  ;;  %v742_v17 = vpack.c.bf16 %v732_v10, %v731_v9  ;;  %680 = vst.msk [vmem:[#allocation2 + $0x1c] sm:$0xff] %vm677_vm1, %v663_v7  ;;  %v624_v18 = vmul.f32 %v3039_v37, %v589_v13  ;;  %v2549_v4 = vld [vmem:[%s3575_s1 + $0x50] sm:$0xff]  ;;  %v3160_v35 = vld [vmem:[#allocation2 + $0x80] sm:$0xff] }
  0xa2   : > { %v741_v19 = vpack.c.bf16 %v730_v16, %v729_v15 }
  0xa3   : > { %v674_v20 = vmul.f32 %v658_v5, %v625_v12  ;;  %v673_v22 = vmul.f32 %v657_v14, %v624_v18  ;;  %v2550_v5 = vld [vmem:[%s3575_s1 + $0x58] sm:$0xff] }
  0xa4   : > { %2686 = vmatprep.mubr.msk.bf16.mxu1 %vm677_vm1, %v741_v19  ;;  %v604_v23 = vpop.permute.xlu1 %603  ;;  %v599_v26 = vpop.permute.xlu0 %598  ;;  %v721_v28 = vld [vmem:[#allocation2 + $0x1] sm:$0xff]  ;;  %v722_v29 = vld [vmem:[#allocation2 + $0x9] sm:$0xff]  ;;  %v3132_v18 = vpack.c.bf16 %v2550_v5, %v2549_v4 }
  0xa5   : > { %691 = vst.msk [vmem:[#allocation2 + $0x9c] sm:$0xff] %vm677_vm1, %v674_v20  ;;  %v627_v25 = vmul.f32 %v3039_v37, %v604_v23  ;;  %2687 = vmatmul.mubr.msk.bf16.vlgmr.msra.gmra.mxu1 %vm677_vm1, %v742_v17  ;;  %690 = vst.msk [vmem:[#allocation2 + $0x94] sm:$0xff] %vm677_vm1, %v673_v22  ;;  %v626_v30 = vmul.f32 %v3039_v37, %v599_v26  ;;  %v737_v31 = vpack.c.bf16 %v722_v29, %v721_v28  ;;  %v694_v61 = vld [vmem:[#allocation2] sm:$0xff]  ;;  %v3112_v62 = vld [vmem:[#allocation2 + $0x8] sm:$0xff] }
  0xa6   : > { %2695 = vmatpush3.bf16.msra.mxu1 %v3018_v34  ;;  %v710_v1 = vpack.c.bf16 %v3112_v62, %v694_v61  ;;  %v991_v8 = vld [vmem:[#allocation2 + $0x2] sm:$0xff]  ;;  %v992_v11 = vld [vmem:[#allocation2 + $0xa] sm:$0xff] }
  0xa7   : > { %v676_v32 = vmul.f32 %v660_v24, %v627_v25  ;;  %2730 = vmatprep.subr.bf16.mxu1 %v3075_v21  ;;  %v675_v38 = vmul.f32 %v659_v27, %v626_v30  ;;  %2678 = vmatprep.mubr.msk.bf16.mxu0 %vm677_vm1, %v737_v31  ;;  %v1007_v17 = vpack.c.bf16 %v992_v11, %v991_v8  ;;  %v2559_v20 = vld [vmem:[%s3575_s1 + $0x60] sm:$0xff]  ;;  %v2560_v22 = vld [vmem:[%s3575_s1 + $0x68] sm:$0xff] }
  0xa8   : > { %v554_v39 = vpop.permute.xlu1 %553  ;;  %v549_v41 = vpop.permute.xlu0 %548  ;;  %v723_v43 = vld [vmem:[#allocation2 + $0x19] sm:$0xff]  ;;  %v724_v44 = vld [vmem:[#allocation2 + $0x21] sm:$0xff]  ;;  %v3151_v31 = vpack.c.bf16 %v2560_v22, %v2559_v20  ;;  %v1322_v61 = vld [vmem:[#allocation2 + $0xc] sm:$0xff] }
  0xa9   : > { %693 = vst.msk [vmem:[#allocation2 + $0xb4] sm:$0xff] %vm677_vm1, %v676_v32  ;;  %v617_v34 = vmul.f32 %v3039_v37, %v554_v39  ;;  %692 = vst.msk [vmem:[#allocation2 + $0xac] sm:$0xff] %vm677_vm1, %v675_v38  ;;  %v616_v45 = vmul.f32 %v3039_v37, %v549_v41  ;;  %v738_v46 = vpack.c.bf16 %v724_v44, %v723_v43  ;;  %v696_v6 = vld [vmem:[#allocation2 + $0x18] sm:$0xff]  ;;  %v3125_v7 = vld [vmem:[#allocation2 + $0x20] sm:$0xff] }
  0xaa   : > { %v711_v15 = vpack.c.bf16 %v3125_v7, %v696_v6  ;;  %v993_v19 = vld [vmem:[#allocation2 + $0x1a] sm:$0xff]  ;;  %v994_v25 = vld [vmem:[#allocation2 + $0x22] sm:$0xff]  ;;  %v1000_v41 = vld [vmem:[#allocation2 + $0x6a] sm:$0xff] }
  0xab   : > { %v666_v48 = vmul.f32 %v650_v40, %v617_v34  ;;  %v665_v49 = vmul.f32 %v649_v42, %v616_v45  ;;  %2679 = vmatmul.mubr.msk.bf16.vlgmr.msra.gmra.mxu0 %vm677_vm1, %v738_v46  ;;  %v3148_v26 = vld [vmem:[#allocation2 + $0x68] sm:$0xff]  ;;  %v1008_v29 = vpack.c.bf16 %v994_v25, %v993_v19  ;;  %v702_v30 = vld [vmem:[#allocation2 + $0x60] sm:$0xff]  ;;  %v704_v42 = vld [vmem:[#allocation2 + $0x78] sm:$0xff] }
  0xac   : > { %v564_v50 = vpop.permute.xlu1 %563  ;;  %v559_v53 = vpop.permute.xlu0 %558  ;;  %v733_v55 = vld [vmem:[#allocation2 + $0x91] sm:$0xff]  ;;  %v734_v56 = vld [vmem:[#allocation2 + $0x99] sm:$0xff]  ;;  %2713 = vmatpush3.bf16.msra.mxu0 %v3023_v36  ;;  %v714_v32 = vpack.c.bf16 %v3148_v26, %v702_v30  ;;  %v715_v43 = vpack.c.bf16 %v3160_v35, %v704_v42  ;;  %v999_v45 = vld [vmem:[#allocation2 + $0x62] sm:$0xff] }
  0xad   : > { %683 = vst.msk [vmem:[#allocation2 + $0x3c] sm:$0xff] %vm677_vm1, %v666_v48  ;;  %v619_v52 = vmul.f32 %v3039_v37, %v564_v50  ;;  %682 = vst.msk [vmem:[#allocation2 + $0x34] sm:$0xff] %vm677_vm1, %v665_v49  ;;  %v618_v57 = vmul.f32 %v3039_v37, %v559_v53  ;;  %v743_v58 = vpack.c.bf16 %v734_v56, %v733_v55  ;;  %2748 = vmatprep.subr.bf16.mxu0 %v3100_v47  ;;  %v706_v40 = vld [vmem:[#allocation2 + $0x90] sm:$0xff]  ;;  %v3162_v34 = vld [vmem:[#allocation2 + $0x98] sm:$0xff] }
  0xae   : > { %v716_v46 = vpack.c.bf16 %v3162_v34, %v706_v40  ;;  %v1002_v48 = vld [vmem:[#allocation2 + $0x82] sm:$0xff]  ;;  %v1004_v53 = vld [vmem:[#allocation2 + $0x9a] sm:$0xff]  ;;  %v1165_v19 = vld [vmem:[#allocation2 + $0x6b] sm:$0xff] }
  0xaf   : > { %v668_v59 = vmul.f32 %v652_v51, %v619_v52  ;;  %v667_v60 = vmul.f32 %v651_v54, %v618_v57  ;;  %2690 = vmatprep.mubr.msk.bf16.mxu1 %vm677_vm1, %v743_v58  ;;  %v1156_v51 = vld [vmem:[#allocation2 + $0x3] sm:$0xff]  ;;  %v1003_v52 = vld [vmem:[#allocation2 + $0x92] sm:$0xff]  ;;  %v1001_v55 = vld [vmem:[#allocation2 + $0x7a] sm:$0xff] }
  0xb0   : > { %v735_v63 = vld [vmem:[#allocation2 + $0xa9] sm:$0xff]  ;;  %v736_v0 = vld [vmem:[#allocation2 + $0xb1] sm:$0xff]  ;;  %v1012_v57 = vpack.c.bf16 %v1002_v48, %v1001_v55  ;;  %v1013_v58 = vpack.c.bf16 %v1004_v53, %v1003_v52  ;;  %v1166_v40 = vld [vmem:[#allocation2 + $0x7b] sm:$0xff] }
  0xb1   : > { %685 = vst.msk [vmem:[#allocation2 + $0x54] sm:$0xff] %vm677_vm1, %v668_v59  ;;  %684 = vst.msk [vmem:[#allocation2 + $0x4c] sm:$0xff] %vm677_vm1, %v667_v60  ;;  %v744_v36 = vpack.c.bf16 %v736_v0, %v735_v63  ;;  %v708_v49 = vld [vmem:[#allocation2 + $0xa8] sm:$0xff]  ;;  %v3170_v50 = vld [vmem:[#allocation2 + $0xb0] sm:$0xff] }
  0xb2   : > { %v1157_v54 = vld [vmem:[#allocation2 + $0xb] sm:$0xff]  ;;  %v717_v56 = vpack.c.bf16 %v3170_v50, %v708_v49  ;;  %v1158_v60 = vld [vmem:[#allocation2 + $0x1b] sm:$0xff] }
  0xb3   : > { %2691 = vmatmul.mubr.msk.bf16.gmra.mxu1 %vm677_vm1, %v744_v36  ;;  %v1172_v59 = vpack.c.bf16 %v1157_v54, %v1156_v51  ;;  %v2569_v63 = vld [vmem:[%s3575_s1 + $0x70] sm:$0xff]  ;;  %v2570_v0 = vld [vmem:[%s3575_s1 + $0x78] sm:$0xff]  ;;  %v1321_v4 = vld [vmem:[#allocation2 + $0x4] sm:$0xff] }
  0xb4   : > { %2696 = vmatprep.mubr.msk.bf16.mxu1 %vm677_vm1, %v710_v1  ;;  %v725_v37 = vld [vmem:[#allocation2 + $0x31] sm:$0xff]  ;;  %v726_v2 = vld [vmem:[#allocation2 + $0x39] sm:$0xff]  ;;  %v3183_v11 = vpack.c.bf16 %v2570_v0, %v2569_v63  ;;  %v1486_v52 = vld [vmem:[#allocation2 + $0x5] sm:$0xff] }
  0xb5   : > { %v739_v3 = vpack.c.bf16 %v726_v2, %v725_v37  ;;  %v698_v9 = vld [vmem:[#allocation2 + $0x30] sm:$0xff]  ;;  %v3128_v10 = vld [vmem:[#allocation2 + $0x38] sm:$0xff]  ;;  %v1159_v37 = vld [vmem:[#allocation2 + $0x23] sm:$0xff] }
  0xb6   : > { %v712_v16 = vpack.c.bf16 %v3128_v10, %v698_v9  ;;  %v995_v27 = vld [vmem:[#allocation2 + $0x32] sm:$0xff]  ;;  %v996_v28 = vld [vmem:[#allocation2 + $0x3a] sm:$0xff]  ;;  %v1005_v36 = vld [vmem:[#allocation2 + $0xaa] sm:$0xff]  ;;  %v1173_v6 = vpack.c.bf16 %v1159_v37, %v1158_v60  ;;  %v1337_v9 = vpack.c.bf16 %v1322_v61, %v1321_v4 }
  0xb7   : > { %2682 = vmatprep.mubr.msk.bf16.mxu0 %vm677_vm1, %v739_v3  ;;  %v1009_v33 = vpack.c.bf16 %v996_v28, %v995_v27  ;;  %v1006_v1 = vld [vmem:[#allocation2 + $0xb2] sm:$0xff]  ;;  %v1161_v3 = vld [vmem:[#allocation2 + $0x3b] sm:$0xff] }
  0xb8   : > { %v727_v12 = vld [vmem:[#allocation2 + $0x49] sm:$0xff]  ;;  %v728_v13 = vld [vmem:[#allocation2 + $0x51] sm:$0xff]  ;;  %v1014_v5 = vpack.c.bf16 %v1006_v1, %v1005_v36  ;;  %v1326_v22 = vld [vmem:[#allocation2 + $0x3c] sm:$0xff] }
  0xb9   : > { %v740_v14 = vpack.c.bf16 %v728_v13, %v727_v12  ;;  %v700_v23 = vld [vmem:[#allocation2 + $0x48] sm:$0xff]  ;;  %v3145_v24 = vld [vmem:[#allocation2 + $0x50] sm:$0xff]  ;;  %v2579_v13 = vld [vmem:[%s3575_s1 + $0x80] sm:$0xff] }
  0xba   : > { %v997_v38 = vld [vmem:[#allocation2 + $0x4a] sm:$0xff]  ;;  %v998_v39 = vld [vmem:[#allocation2 + $0x52] sm:$0xff]  ;;  %v1334_v51 = vld [vmem:[#allocation2 + $0x9c] sm:$0xff] }
  0xbb   : > { %2683 = vmatmul.mubr.msk.bf16.gmra.mxu0 %vm677_vm1, %v740_v14  ;;  %2697 = vmatmul.mubr.msk.bf16.vlgmr.msra.gmra.mxu1 %vm677_vm1, %v711_v15  ;;  %v1010_v44 = vpack.c.bf16 %v998_v39, %v997_v38  ;;  %v1160_v2 = vld [vmem:[#allocation2 + $0x33] sm:$0xff]  ;;  %v1324_v12 = vld [vmem:[#allocation2 + $0x24] sm:$0xff]  ;;  %v1169_v38 = vld [vmem:[#allocation2 + $0x9b] sm:$0xff] }
  0xbc   : > { %2700 = vmatprep.mubr.msk.bf16.mxu1 %vm677_vm1, %v712_v16  ;;  %2714 = vmatprep.mubr.msk.bf16.mxu0 %vm677_vm1, %v1007_v17  ;;  %v1174_v8 = vpack.c.bf16 %v1161_v3, %v1160_v2  ;;  %v2580_v14 = vld [vmem:[%s3575_s1 + $0x88] sm:$0xff]  ;;  %v1163_v16 = vld [vmem:[#allocation2 + $0x53] sm:$0xff]  ;;  %v1323_v17 = vld [vmem:[#allocation2 + $0x1c] sm:$0xff] }
  0xbd   : > { %2731 = vmatpush3.bf16.msra.mxu1 %v3075_v21  ;;  %v713_v21 = vpack.c.bf16 %v3145_v24, %v700_v23  ;;  %v1162_v15 = vld [vmem:[#allocation2 + $0x4b] sm:$0xff]  ;;  %v1325_v20 = vld [vmem:[#allocation2 + $0x34] sm:$0xff]  ;;  %v1338_v25 = vpack.c.bf16 %v1324_v12, %v1323_v17  ;;  %v3197_v27 = vpack.c.bf16 %v2580_v14, %v2579_v13  ;;  %v1331_v53 = vld [vmem:[#allocation2 + $0x7c] sm:$0xff] }
  0xbe   : > { %2766 = vmatprep.subr.bf16.mxu1 %v3132_v18  ;;  %v1175_v23 = vpack.c.bf16 %v1163_v16, %v1162_v15  ;;  %v1327_v30 = vld [vmem:[#allocation2 + $0x4c] sm:$0xff]  ;;  %v1333_v49 = vld [vmem:[#allocation2 + $0x94] sm:$0xff]  ;;  %v1488_v63 = vld [vmem:[#allocation2 + $0x1d] sm:$0xff] }
  0xbf   : > { %v1330_v39 = vld [vmem:[#allocation2 + $0x6c] sm:$0xff]  ;;  %v1336_v61 = vld [vmem:[#allocation2 + $0xb4] sm:$0xff]  ;;  %v1491_v36 = vld [vmem:[#allocation2 + $0x3d] sm:$0xff] }
  0xc0   : > { %v1487_v48 = vld [vmem:[#allocation2 + $0xd] sm:$0xff]  ;;  %v1490_v0 = vld [vmem:[#allocation2 + $0x35] sm:$0xff]  ;;  %v1494_v12 = vld [vmem:[#allocation2 + $0x65] sm:$0xff] }
  0xc1   : > { %v1335_v60 = vld [vmem:[#allocation2 + $0xac] sm:$0xff]  ;;  %v1504_v3 = vpack.c.bf16 %v1491_v36, %v1490_v0  ;;  %v1655_v14 = vld [vmem:[#allocation2 + $0x36] sm:$0xff]  ;;  %v1656_v15 = vld [vmem:[#allocation2 + $0x3e] sm:$0xff] }
  0xc2   : > { %v1651_v1 = vld [vmem:[#allocation2 + $0x6] sm:$0xff]  ;;  %v1344_v37 = vpack.c.bf16 %v1336_v61, %v1335_v60  ;;  %v1822_v61 = vld [vmem:[#allocation2 + $0x4f] sm:$0xff] }
  0xc3   : > { %2701 = vmatmul.mubr.msk.bf16.gmra.mxu1 %vm677_vm1, %v713_v21  ;;  %2715 = vmatmul.mubr.msk.bf16.vlgmr.msra.gmra.mxu0 %vm677_vm1, %v1008_v29  ;;  %v1339_v21 = vpack.c.bf16 %v1326_v22, %v1325_v20  ;;  %v1167_v29 = vld [vmem:[#allocation2 + $0x83] sm:$0xff]  ;;  %v1495_v13 = vld [vmem:[#allocation2 + $0x6d] sm:$0xff]  ;;  %v1669_v20 = vpack.c.bf16 %v1656_v15, %v1655_v14 }
  0xc4   : > { %2749 = vmatpush3.bf16.msra.mxu0 %v3100_v47  ;;  %2704 = vmatprep.mubr.msk.bf16.mxu1 %vm677_vm1, %v714_v32  ;;  %v1011_v47 = vpack.c.bf16 %v1000_v41, %v999_v45  ;;  %v1328_v32 = vld [vmem:[#allocation2 + $0x54] sm:$0xff]  ;;  %v1177_v41 = vpack.c.bf16 %v1167_v29, %v1166_v40  ;;  %v1497_v22 = vld [vmem:[#allocation2 + $0x85] sm:$0xff] }
  0xc5   : > { %2718 = vmatprep.mubr.msk.bf16.mxu0 %vm677_vm1, %v1009_v33  ;;  %2784 = vmatprep.subr.bf16.mxu0 %v3151_v31  ;;  %v1168_v33 = vld [vmem:[#allocation2 + $0x93] sm:$0xff]  ;;  %v1340_v42 = vpack.c.bf16 %v1328_v32, %v1327_v30  ;;  %v1661_v40 = vld [vmem:[#allocation2 + $0x7e] sm:$0xff]  ;;  %v1984_v0 = vld [vmem:[#allocation2 + $0x28] sm:$0xff] }
  0xc6   : > { %v1660_v29 = vld [vmem:[#allocation2 + $0x6e] sm:$0xff] }
  0xc7   : > { %v1824_v36 = vld [vmem:[#allocation2 + $0x67] sm:$0xff] }
  0xcb   : > { %2705 = vmatmul.mubr.msk.bf16.gmra.mxu1 %vm677_vm1, %v715_v43  ;;  %2719 = vmatmul.mubr.msk.bf16.gmra.mxu0 %vm677_vm1, %v1010_v44  ;;  %v1329_v43 = vld [vmem:[#allocation2 + $0x64] sm:$0xff]  ;;  %v1178_v44 = vpack.c.bf16 %v1169_v38, %v1168_v33 }
  0xcc   : > { %2708 = vmatprep.mubr.msk.bf16.mxu1 %vm677_vm1, %v716_v46  ;;  %2722 = vmatprep.mubr.msk.bf16.mxu0 %vm677_vm1, %v1011_v47  ;;  %v1341_v45 = vpack.c.bf16 %v1330_v39, %v1329_v43  ;;  %v1170_v46 = vld [vmem:[#allocation2 + $0xab] sm:$0xff]  ;;  %v1171_v47 = vld [vmem:[#allocation2 + $0xb3] sm:$0xff]  ;;  %v1664_v43 = vld [vmem:[#allocation2 + $0x9e] sm:$0xff] }
  0xcd   : > { %v1179_v54 = vpack.c.bf16 %v1171_v47, %v1170_v46  ;;  %v1501_v39 = vld [vmem:[#allocation2 + $0xb5] sm:$0xff] }
  0xd3   : > { %2709 = vmatmul.mubr.msk.bf16.gmra.mxu1 %vm677_vm1, %v717_v56  ;;  %2723 = vmatmul.mubr.msk.bf16.gmra.mxu0 %vm677_vm1, %v1012_v57  ;;  %v1343_v56 = vpack.c.bf16 %v1334_v51, %v1333_v49  ;;  %v1502_v57 = vpack.c.bf16 %v1487_v48, %v1486_v52  ;;  %v1665_v49 = vld [vmem:[#allocation2 + $0xae] sm:$0xff]  ;;  %v1666_v51 = vld [vmem:[#allocation2 + $0xb6] sm:$0xff]  ;;  %v1818_v52 = vld [vmem:[#allocation2 + $0x1f] sm:$0xff] }
  0xd4   : > { %2726 = vmatprep.mubr.msk.bf16.mxu0 %vm677_vm1, %v1013_v58  ;;  %2732 = vmatprep.mubr.msk.bf16.mxu1 %vm677_vm1, %v1172_v59  ;;  %v1489_v58 = vld [vmem:[#allocation2 + $0x25] sm:$0xff]  ;;  %v1652_v59 = vld [vmem:[#allocation2 + $0xe] sm:$0xff] }
  0xd5   : > { %v1503_v2 = vpack.c.bf16 %v1489_v58, %v1488_v63  ;;  %v1667_v4 = vpack.c.bf16 %v1652_v59, %v1651_v1  ;;  %v1823_v63 = vld [vmem:[#allocation2 + $0x57] sm:$0xff]  ;;  %v1825_v1 = vld [vmem:[#allocation2 + $0x6f] sm:$0xff] }
  0xdb   : > { %2727 = vmatmul.mubr.msk.bf16.gmra.mxu0 %vm677_vm1, %v1014_v5  ;;  %2733 = vmatmul.mubr.msk.bf16.vlgmr.msra.gmra.mxu1 %vm677_vm1, %v1173_v6  ;;  %v1653_v5 = vld [vmem:[#allocation2 + $0x1e] sm:$0xff]  ;;  %v1492_v6 = vld [vmem:[#allocation2 + $0x4d] sm:$0xff] }
  0xdc   : > { %2736 = vmatprep.mubr.msk.bf16.mxu1 %vm677_vm1, %v1174_v8  ;;  %2750 = vmatprep.mubr.msk.bf16.mxu0 %vm677_vm1, %v1337_v9  ;;  %v1493_v8 = vld [vmem:[#allocation2 + $0x55] sm:$0xff]  ;;  %v1654_v9 = vld [vmem:[#allocation2 + $0x26] sm:$0xff] }
  0xdd   : > { %2767 = vmatpush3.bf16.msra.mxu1 %v3132_v18  ;;  %v1164_v18 = vld [vmem:[#allocation2 + $0x63] sm:$0xff]  ;;  %v1505_v16 = vpack.c.bf16 %v1493_v8, %v1492_v6  ;;  %v1668_v17 = vpack.c.bf16 %v1654_v9, %v1653_v5  ;;  %v1988_v8 = vld [vmem:[#allocation2 + $0x58] sm:$0xff] }
  0xde   : > { %2802 = vmatprep.subr.bf16.mxu1 %v3183_v11  ;;  %v1176_v28 = vpack.c.bf16 %v1165_v19, %v1164_v18  ;;  %v1506_v19 = vpack.c.bf16 %v1495_v13, %v1494_v12  ;;  %v1498_v18 = vld [vmem:[#allocation2 + $0x95] sm:$0xff]  ;;  %v1826_v5 = vld [vmem:[#allocation2 + $0x7f] sm:$0xff]  ;;  %v1827_v6 = vld [vmem:[#allocation2 + $0x87] sm:$0xff] }
  0xdf   : > { %v1828_v9 = vld [vmem:[#allocation2 + $0x97] sm:$0xff]  ;;  %v1829_v12 = vld [vmem:[#allocation2 + $0x9f] sm:$0xff]  ;;  %v1837_v14 = vpack.c.bf16 %v1827_v6, %v1826_v5 }
  0xe0   : > { %v1990_v13 = vld [vmem:[#allocation2 + $0x70] sm:$0xff]  ;;  %v1838_v15 = vpack.c.bf16 %v1829_v12, %v1828_v9 }
  0xe3   : > { %2737 = vmatmul.mubr.msk.bf16.gmra.mxu1 %vm677_vm1, %v1175_v23  ;;  %2751 = vmatmul.mubr.msk.bf16.vlgmr.msra.gmra.mxu0 %vm677_vm1, %v1338_v25  ;;  %v1657_v23 = vld [vmem:[#allocation2 + $0x4e] sm:$0xff]  ;;  %v1658_v25 = vld [vmem:[#allocation2 + $0x56] sm:$0xff] }
  0xe4   : > { %2785 = vmatpush3.bf16.msra.mxu0 %v3151_v31  ;;  %2740 = vmatprep.mubr.msk.bf16.mxu1 %vm677_vm1, %v1176_v28  ;;  %v1332_v31 = vld [vmem:[#allocation2 + $0x84] sm:$0xff]  ;;  %v1670_v32 = vpack.c.bf16 %v1658_v25, %v1657_v23 }
  0xe5   : > { %2754 = vmatprep.mubr.msk.bf16.mxu0 %vm677_vm1, %v1339_v21  ;;  %2820 = vmatprep.subr.bf16.mxu0 %v3197_v27  ;;  %v1342_v55 = vpack.c.bf16 %v1332_v31, %v1331_v53  ;;  %v1499_v28 = vld [vmem:[#allocation2 + $0x9d] sm:$0xff]  ;;  %v1659_v21 = vld [vmem:[#allocation2 + $0x66] sm:$0xff] }
  0xe6   : > { %v1508_v33 = vpack.c.bf16 %v1499_v28, %v1498_v18  ;;  %v1671_v38 = vpack.c.bf16 %v1660_v29, %v1659_v21  ;;  %v1819_v53 = vld [vmem:[#allocation2 + $0x27] sm:$0xff] }
  0xe7   : > { %v1833_v58 = vpack.c.bf16 %v1819_v53, %v1818_v52 }
  0xeb   : > { %2741 = vmatmul.mubr.msk.bf16.gmra.mxu1 %vm677_vm1, %v1177_v41  ;;  %2755 = vmatmul.mubr.msk.bf16.gmra.mxu0 %vm677_vm1, %v1340_v42  ;;  %v1662_v41 = vld [vmem:[#allocation2 + $0x86] sm:$0xff]  ;;  %v1663_v42 = vld [vmem:[#allocation2 + $0x96] sm:$0xff] }
  0xec   : > { %2744 = vmatprep.mubr.msk.bf16.mxu1 %vm677_vm1, %v1178_v44  ;;  %2758 = vmatprep.mubr.msk.bf16.mxu0 %vm677_vm1, %v1341_v45  ;;  %v1816_v44 = vld [vmem:[#allocation2 + $0x7] sm:$0xff]  ;;  %v1817_v45 = vld [vmem:[#allocation2 + $0xf] sm:$0xff]  ;;  %v1672_v46 = vpack.c.bf16 %v1662_v41, %v1661_v40  ;;  %v1673_v47 = vpack.c.bf16 %v1664_v43, %v1663_v42 }
  0xed   : > { %v1832_v48 = vpack.c.bf16 %v1817_v45, %v1816_v44 }
  0xf3   : > { %2745 = vmatmul.mubr.msk.bf16.gmra.mxu1 %vm677_vm1, %v1179_v54  ;;  %2759 = vmatmul.mubr.msk.bf16.gmra.mxu0 %vm677_vm1, %v1342_v55  ;;  %v1820_v54 = vld [vmem:[#allocation2 + $0x37] sm:$0xff]  ;;  %v1821_v55 = vld [vmem:[#allocation2 + $0x3f] sm:$0xff] }
  0xf4   : > { %2762 = vmatprep.mubr.msk.bf16.mxu0 %vm677_vm1, %v1343_v56  ;;  %2768 = vmatprep.mubr.msk.bf16.mxu1 %vm677_vm1, %v1502_v57  ;;  %v1982_v56 = vld [vmem:[#allocation2 + $0x10] sm:$0xff]  ;;  %v1674_v57 = vpack.c.bf16 %v1666_v51, %v1665_v49  ;;  %v1834_v59 = vpack.c.bf16 %v1821_v55, %v1820_v54 }
  0xf5   : > { %v1997_v60 = vpack.c.bf16 %v1982_v56, %v3112_v62 }
  0xfb   : > { %2763 = vmatmul.mubr.msk.bf16.gmra.mxu0 %vm677_vm1, %v1344_v37  ;;  %2769 = vmatmul.mubr.msk.bf16.vlgmr.msra.gmra.mxu1 %vm677_vm1, %v1503_v2  ;;  %v1986_v37 = vld [vmem:[#allocation2 + $0x40] sm:$0xff]  ;;  %v1835_v2 = vpack.c.bf16 %v1823_v63, %v1822_v61 }
  0xfc   : > { %2772 = vmatprep.mubr.msk.bf16.mxu1 %vm677_vm1, %v1504_v3  ;;  %2786 = vmatprep.mubr.msk.bf16.mxu0 %vm677_vm1, %v1667_v4  ;;  %v1998_v3 = vpack.c.bf16 %v1984_v0, %v3125_v7  ;;  %v1836_v4 = vpack.c.bf16 %v1825_v1, %v1824_v36  ;;  %v1999_v62 = vpack.c.bf16 %v1986_v37, %v3128_v10 }
  0xfd   : > { %2803 = vmatpush3.bf16.msra.mxu1 %v3183_v11  ;;  %v1496_v11 = vld [vmem:[#allocation2 + $0x7d] sm:$0xff]  ;;  %v2000_v7 = vpack.c.bf16 %v1988_v8, %v3145_v24  ;;  %v2001_v10 = vpack.c.bf16 %v1990_v13, %v3148_v26 }
  0xfe   : > { %v1507_v30 = vpack.c.bf16 %v1497_v22, %v1496_v11  ;;  %v1996_v26 = vld [vmem:[#allocation2 + $0xb8] sm:$0xff] }
  0xff   : > { %v2004_v23 = vpack.c.bf16 %v1996_v26, %v3170_v50 }
 0x103   : > { %2773 = vmatmul.mubr.msk.bf16.gmra.mxu1 %vm677_vm1, %v1505_v16  ;;  %2787 = vmatmul.mubr.msk.bf16.vlgmr.msra.gmra.mxu0 %vm677_vm1, %v1668_v17  ;;  %v1830_v16 = vld [vmem:[#allocation2 + $0xaf] sm:$0xff]  ;;  %v1831_v17 = vld [vmem:[#allocation2 + $0xb7] sm:$0xff] }
 0x104   : > { %2821 = vmatpush3.bf16.msra.mxu0 %v3197_v27  ;;  %2776 = vmatprep.mubr.msk.bf16.mxu1 %vm677_vm1, %v1506_v19  ;;  %v1500_v27 = vld [vmem:[#allocation2 + $0xad] sm:$0xff]  ;;  %v1839_v11 = vpack.c.bf16 %v1831_v17, %v1830_v16 }
 0x105   : > { %2790 = vmatprep.mubr.msk.bf16.mxu0 %vm677_vm1, %v1669_v20  ;;  %v1509_v31 = vpack.c.bf16 %v1501_v39, %v1500_v27  ;;  %v1992_v19 = vld [vmem:[#allocation2 + $0x88] sm:$0xff]  ;;  %v1994_v20 = vld [vmem:[#allocation2 + $0xa0] sm:$0xff] }
 0x106   : > { %v2002_v22 = vpack.c.bf16 %v1992_v19, %v3160_v35  ;;  %v2003_v24 = vpack.c.bf16 %v1994_v20, %v3162_v34 }
 0x10b   : > { %2777 = vmatmul.mubr.msk.bf16.gmra.mxu1 %vm677_vm1, %v1507_v30  ;;  %2791 = vmatmul.mubr.msk.bf16.gmra.mxu0 %vm677_vm1, %v1670_v32 }
 0x10c   : > { %2780 = vmatprep.mubr.msk.bf16.mxu1 %vm677_vm1, %v1508_v33  ;;  %2794 = vmatprep.mubr.msk.bf16.mxu0 %vm677_vm1, %v1671_v38 }
 0x113   : > { %2781 = vmatmul.mubr.msk.bf16.gmra.mxu1 %vm677_vm1, %v1509_v31  ;;  %2795 = vmatmul.mubr.msk.bf16.gmra.mxu0 %vm677_vm1, %v1672_v46 }
 0x114   : > { %2798 = vmatprep.mubr.msk.bf16.mxu0 %vm677_vm1, %v1673_v47  ;;  %2804 = vmatprep.mubr.msk.bf16.mxu1 %vm677_vm1, %v1832_v48 }
 0x11b   : > { %2799 = vmatmul.mubr.msk.bf16.gmra.mxu0 %vm677_vm1, %v1674_v57  ;;  %2805 = vmatmul.mubr.msk.bf16.vlgmr.msra.gmra.mxu1 %vm677_vm1, %v1833_v58 }
 0x11c   : > { %2808 = vmatprep.mubr.msk.bf16.mxu1 %vm677_vm1, %v1834_v59  ;;  %2822 = vmatprep.mubr.msk.bf16.mxu0 %vm677_vm1, %v1997_v60 }
 0x123   : > { %2809 = vmatmul.mubr.msk.bf16.gmra.mxu1 %vm677_vm1, %v1835_v2  ;;  %2823 = vmatmul.mubr.msk.bf16.vlgmr.msra.gmra.mxu0 %vm677_vm1, %v1998_v3 }
 0x124   : > { %2812 = vmatprep.mubr.msk.bf16.mxu1 %vm677_vm1, %v1836_v4  ;;  %2826 = vmatprep.mubr.msk.bf16.mxu0 %vm677_vm1, %v1999_v62 }
 0x12b   : > { %2813 = vmatmul.mubr.msk.bf16.gmra.mxu1 %vm677_vm1, %v1837_v14  ;;  %2827 = vmatmul.mubr.msk.bf16.gmra.mxu0 %vm677_vm1, %v2000_v7 }
 0x12c   : > { %2816 = vmatprep.mubr.msk.bf16.mxu1 %vm677_vm1, %v1838_v15  ;;  %2830 = vmatprep.mubr.msk.bf16.mxu0 %vm677_vm1, %v2001_v10 }
 0x133   : > { %2817 = vmatmul.mubr.msk.bf16.gmra.mxu1 %vm677_vm1, %v1839_v11  ;;  %2831 = vmatmul.mubr.msk.bf16.gmra.mxu0 %vm677_vm1, %v2002_v22 }
 0x134   : > { %2834 = vmatprep.mubr.msk.bf16.mxu0 %vm677_vm1, %v2003_v24 }
 0x13b   : > { %2835 = vmatmul.mubr.msk.bf16.gmra.mxu0 %vm677_vm1, %v2004_v23 }
 0x165   : > { %v2688_v25 = vpop.f32.mrf.mxu1 }
 0x167   : > { %v839_v18 = vpop.f32.mrf.mxu1 }
 0x169   : > { %v2689_v28 = vpop.f32.mrf.mxu1 }
 0x16b   : > { %v2680_v21 = vpop.f32.mrf.mxu0  ;;  %v842_v29 = vpop.f32.mrf.mxu1 }
 0x16d   : > { %v807_v30 = vpop.f32.mrf.mxu0 }
 0x16f   : > { %v2681_v32 = vpop.f32.mrf.mxu0 }
 0x171   : > { %v810_v38 = vpop.f32.mrf.mxu0 }
 0x173   : > { %v2692_v35 = vpop.f32.mrf.mxu1 }
 0x175   : > { %v855_v34 = vpop.f32.mrf.mxu1 }
 0x177   : > { %v2693_v33 = vpop.f32.mrf.mxu1 }
 0x179   : > { %v858_v27 = vpop.f32.mrf.mxu1 }
 0x17b   : > { %v2684_v39 = vpop.f32.mrf.mxu0  ;;  %v2698_v40 = vpop.f32.mrf.mxu1 }
 0x17c   : > { %v937_v41 = vadd.f32 %v2698_v40, %v2680_v21 }
 0x17d   : > { %v823_v42 = vpop.f32.mrf.mxu0  ;;  %v928_v43 = vpop.f32.mrf.mxu1 }
 0x17e   : > { %v929_v50 = vadd.f32 %v928_v43, %v807_v30 }
 0x17f   : > { %v2685_v44 = vpop.f32.mrf.mxu0  ;;  %v2699_v45 = vpop.f32.mrf.mxu1 }
 0x180   : > { %v940_v31 = vadd.f32 %v2699_v45, %v2681_v32 }
 0x181   : > { %v826_v46 = vpop.f32.mrf.mxu0  ;;  %v931_v47 = vpop.f32.mrf.mxu1 }
 0x182   : > { %v932_v48 = vadd.f32 %v931_v47, %v810_v38 }
 0x183   : > { %v2702_v49 = vpop.f32.mrf.mxu1  ;;  %v2716_v51 = vpop.f32.mrf.mxu0 }
 0x184   : > { %v953_v52 = vadd.f32 %v2702_v49, %v2684_v39  ;;  %v3255_v53 = vadd.f32 %v2716_v51, %v937_v41 }
 0x185   : > { %v944_v54 = vpop.f32.mrf.mxu1  ;;  %v1077_v55 = vpop.f32.mrf.mxu0 }
 0x186   : > { %v945_v56 = vadd.f32 %v944_v54, %v823_v42  ;;  %v3257_v57 = vadd.f32 %v1077_v55, %v929_v50 }
 0x187   : > { %v2703_v58 = vpop.f32.mrf.mxu1  ;;  %v2717_v59 = vpop.f32.mrf.mxu0 }
 0x188   : > { %v956_v60 = vadd.f32 %v2703_v58, %v2685_v44  ;;  %v3259_v61 = vadd.f32 %v2717_v59, %v940_v31 }
 0x189   : > { %v947_v63 = vpop.f32.mrf.mxu1  ;;  %v1080_v0 = vpop.f32.mrf.mxu0 }
 0x18a   : > { %v948_v36 = vadd.f32 %v947_v63, %v826_v46  ;;  %v3261_v1 = vadd.f32 %v1080_v0, %v932_v48 }
 0x18b   : > { %v2706_v37 = vpop.f32.mrf.mxu1  ;;  %v2720_v2 = vpop.f32.mrf.mxu0 }
 0x18c   : > { %v969_v3 = vadd.f32 %v2706_v37, %v2688_v25  ;;  %v3263_v4 = vadd.f32 %v2720_v2, %v953_v52 }
 0x18d   : > { %v960_v62 = vpop.f32.mrf.mxu1  ;;  %v1093_v5 = vpop.f32.mrf.mxu0 }
 0x18e   : > { %v961_v6 = vadd.f32 %v960_v62, %v839_v18  ;;  %v3265_v8 = vadd.f32 %v1093_v5, %v945_v56 }
 0x18f   : > { %v2707_v9 = vpop.f32.mrf.mxu1  ;;  %v2721_v12 = vpop.f32.mrf.mxu0 }
 0x190   : > { %v972_v13 = vadd.f32 %v2707_v9, %v2689_v28  ;;  %v3267_v14 = vadd.f32 %v2721_v12, %v956_v60 }
 0x191   : > { %v963_v7 = vpop.f32.mrf.mxu1  ;;  %v1096_v15 = vpop.f32.mrf.mxu0 }
 0x192   : > { %v964_v10 = vadd.f32 %v963_v7, %v842_v29  ;;  %v3269_v16 = vadd.f32 %v1096_v15, %v948_v36 }
 0x193   : > { %v2710_v17 = vpop.f32.mrf.mxu1  ;;  %v2724_v19 = vpop.f32.mrf.mxu0 }
 0x194   : > { %v985_v20 = vadd.f32 %v2710_v17, %v2692_v35  ;;  %v3271_v11 = vadd.f32 %v2724_v19, %v969_v3 }
 0x195   : > { %v976_v22 = vpop.f32.mrf.mxu1  ;;  %v1109_v24 = vpop.f32.mrf.mxu0 }
 0x196   : > { %v977_v26 = vadd.f32 %v976_v22, %v855_v34  ;;  %v3273_v23 = vadd.f32 %v1109_v24, %v961_v6 }
 0x197   : > { %v2711_v25 = vpop.f32.mrf.mxu1  ;;  %v2725_v18 = vpop.f32.mrf.mxu0 }
 0x198   : > { %v988_v28 = vadd.f32 %v2711_v25, %v2693_v33  ;;  %v3275_v21 = vadd.f32 %v2725_v18, %v972_v13 }
 0x199   : > { %v979_v30 = vpop.f32.mrf.mxu1  ;;  %v1112_v32 = vpop.f32.mrf.mxu0 }
 0x19a   : > { %v980_v29 = vadd.f32 %v979_v30, %v858_v27  ;;  %v3277_v38 = vadd.f32 %v1112_v32, %v964_v10 }
 0x19b   : > { %v2728_v39 = vpop.f32.mrf.mxu0  ;;  %v3279_v40 = vpop.f32.mrf.mxu1 }
 0x19c   : > { %v3281_v35 = vadd.f32 %v2728_v39, %v985_v20 }
 0x19d   : > { %v1125_v41 = vpop.f32.mrf.mxu0  ;;  %v3283_v42 = vpop.f32.mrf.mxu1 }
 0x19e   : > { %v3285_v34 = vadd.f32 %v1125_v41, %v977_v26 }
 0x19f   : > { %v2729_v43 = vpop.f32.mrf.mxu0  ;;  %v3287_v50 = vpop.f32.mrf.mxu1 }
 0x1a0   : > { %v3289_v33 = vadd.f32 %v2729_v43, %v988_v28 }
 0x1a1   : > { %v1128_v44 = vpop.f32.mrf.mxu0  ;;  %v1245_v45 = vpop.f32.mrf.mxu1 }
 0x1a2   : > { %v3291_v27 = vadd.f32 %v1128_v44, %v980_v29 }
 0x1a3   : > { %v2738_v31 = vpop.f32.mrf.mxu1  ;;  %v2752_v46 = vpop.f32.mrf.mxu0 }
 0x1a5   : > { %v1258_v47 = vpop.f32.mrf.mxu1  ;;  %v1407_v48 = vpop.f32.mrf.mxu0 }
 0x1a7   : > { %v2739_v49 = vpop.f32.mrf.mxu1  ;;  %v2753_v51 = vpop.f32.mrf.mxu0 }
 0x1a9   : > { %v1261_v52 = vpop.f32.mrf.mxu1  ;;  %v1410_v54 = vpop.f32.mrf.mxu0 }
 0x1ab   : > { %v2742_v55 = vpop.f32.mrf.mxu1  ;;  %v2756_v56 = vpop.f32.mrf.mxu0 }
 0x1ad   : > { %v1274_v58 = vpop.f32.mrf.mxu1  ;;  %v3293_v59 = vpop.f32.mrf.mxu0 }
 0x1af   : > { %v3295_v60 = vpop.f32.mrf.mxu1  ;;  %v3297_v63 = vpop.f32.mrf.mxu0 }
 0x1b1   : > { %v3299_v0 = vpop.f32.mrf.mxu1  ;;  %v3301_v36 = vpop.f32.mrf.mxu0 }
 0x1b3   : > { %v3303_v37 = vpop.f32.mrf.mxu1  ;;  %v3305_v2 = vpop.f32.mrf.mxu0 }
 0x1b5   : > { %v3307_v3 = vpop.f32.mrf.mxu1  ;;  %v3309_v62 = vpop.f32.mrf.mxu0 }
 0x1b7   : > { %v3311_v5 = vpop.f32.mrf.mxu1  ;;  %v3313_v6 = vpop.f32.mrf.mxu0 }
 0x1b9   : > { %v3315_v9 = vpop.f32.mrf.mxu1  ;;  %v3317_v12 = vpop.f32.mrf.mxu0 }
 0x1bb   : > { %v3319_v13 = vpop.f32.mrf.mxu0  ;;  %v2770_v7 = vpop.f32.mrf.mxu1 }
 0x1bd   : > { %v3321_v15 = vpop.f32.mrf.mxu0  ;;  %v1572_v10 = vpop.f32.mrf.mxu1 }
 0x1bf   : > { %v3323_v17 = vpop.f32.mrf.mxu0  ;;  %v3325_v19 = vpop.f32.mrf.mxu1 }
 0x1c1   : > { %v3327_v20 = vpop.f32.mrf.mxu0  ;;  %v3329_v22 = vpop.f32.mrf.mxu1 }
 0x1c2   : > { %3583 = vst [vmem:[#allocation3_spill] sm:$0xff] %v3329_v22 }
 0x1c3   : > { %v3331_v24 = vpop.f32.mrf.mxu1  ;;  %v2788_v26 = vpop.f32.mrf.mxu0 }
 0x1c4   : > { %3584 = vst [vmem:[#allocation4_spill] sm:$0xff] %v3331_v24 }
 0x1c5   : > { %v3333_v25 = vpop.f32.mrf.mxu1  ;;  %v1737_v18 = vpop.f32.mrf.mxu0 }
 0x1c6   : > { %3585 = vst [vmem:[#allocation5_spill] sm:$0xff] %v3333_v25 }
 0x1c7   : > { %v3335_v28 = vpop.f32.mrf.mxu1  ;;  %v3337_v30 = vpop.f32.mrf.mxu0 }
 0x1c8   : > { %3586 = vst [vmem:[#allocation6_spill] sm:$0xff] %v3335_v28  ;;  %3587 = vst [vmem:[#allocation7_spill] sm:$0xff] %v3337_v30 }
 0x1c9   : > { %v3339_v32 = vpop.f32.mrf.mxu1  ;;  %v3341_v29 = vpop.f32.mrf.mxu0 }
 0x1ca   : > { %3588 = vst [vmem:[#allocation8_spill] sm:$0xff] %v3339_v32  ;;  %3589 = vst [vmem:[#allocation9_spill] sm:$0xff] %v3341_v29 }
 0x1cb   : > { %v3343_v39 = vpop.f32.mrf.mxu1  ;;  %v3345_v41 = vpop.f32.mrf.mxu0 }
 0x1cc   : > { %3590 = vst [vmem:[#allocation10_spill] sm:$0xff] %v3343_v39  ;;  %3591 = vst [vmem:[#allocation11_spill] sm:$0xff] %v3345_v41 }
 0x1cd   : > { %v3347_v43 = vpop.f32.mrf.mxu1  ;;  %v3349_v44 = vpop.f32.mrf.mxu0 }
 0x1ce   : > { %3592 = vst [vmem:[#allocation12_spill] sm:$0xff] %v3347_v43  ;;  %3593 = vst [vmem:[#allocation13_spill] sm:$0xff] %v3349_v44  ;;  %v1310_v44 = vadd.f32 %v1261_v52, %v3269_v16  ;;  %v1314_v16 = vadd.f32 %v3299_v0, %v3277_v38  ;;  %v1320_v38 = vadd.f32 %v3311_v5, %v3289_v33  ;;  %v3607_v5 = vld [vmem:[#allocation4_spill] sm:$0xff] }
 0x1cf   : > { %v3351_v24 = vpop.f32.mrf.mxu1  ;;  %v3353_v25 = vpop.f32.mrf.mxu0 }
 0x1d0   : > { %3594 = vst [vmem:[#allocation14_spill] sm:$0xff] %v3351_v24  ;;  %3595 = vst [vmem:[#allocation15_spill] sm:$0xff] %v3353_v25  ;;  %v1307_v24 = vadd.f32 %v3279_v40, %v3255_v53  ;;  %v1485_v0 = vadd.f32 %v3323_v17, %v1320_v38  ;;  %v3610_v17 = vld [vmem:[#allocation7_spill] sm:$0xff] }
 0x1d1   : > { %v3355_v22 = vpop.f32.mrf.mxu1  ;;  %v3357_v28 = vpop.f32.mrf.mxu0 }
 0x1d2   : > { %3596 = vst [vmem:[#allocation16_spill] sm:$0xff] %v3355_v22  ;;  %3597 = vst [vmem:[#allocation17_spill] sm:$0xff] %v3357_v28 }
 0x1d3   : > { %v3359_v30 = vpop.f32.mrf.mxu1  ;;  %v3361_v32 = vpop.f32.mrf.mxu0 }
 0x1d4   : > { %3598 = vst [vmem:[#allocation18_spill] sm:$0xff] %v3359_v30  ;;  %3599 = vst [vmem:[#allocation19_spill] sm:$0xff] %v3361_v32  ;;  %v1305_v30 = vadd.f32 %v3283_v42, %v3257_v57  ;;  %v1308_v32 = vadd.f32 %v3287_v50, %v3259_v61  ;;  %v1315_v42 = vadd.f32 %v2742_v55, %v3271_v11 }
 0x1d5   : > { %v3363_v29 = vpop.f32.mrf.mxu1  ;;  %v3365_v39 = vpop.f32.mrf.mxu0  ;;  %v1319_v11 = vadd.f32 %v3303_v37, %v3281_v35  ;;  %v1318_v35 = vadd.f32 %v3315_v9, %v3291_v27  ;;  %v1479_v55 = vadd.f32 %v3317_v12, %v1314_v16  ;;  %v3606_v37 = vld [vmem:[#allocation3_spill] sm:$0xff]  ;;  %v3608_v9 = vld [vmem:[#allocation5_spill] sm:$0xff] }
 0x1d6   : > { %3600 = vst [vmem:[#allocation20_spill] sm:$0xff] %v3363_v29  ;;  %3601 = vst [vmem:[#allocation21_spill] sm:$0xff] %v3365_v39  ;;  %v1306_v29 = vadd.f32 %v1245_v45, %v3261_v1  ;;  %v1311_v39 = vadd.f32 %v2738_v31, %v3263_v4  ;;  %v1470_v40 = vadd.f32 %v1407_v48, %v1305_v30  ;;  %v3613_v30 = vld [vmem:[#allocation10_spill] sm:$0xff] }
 0x1d7   : > { %v3367_v41 = vpop.f32.mrf.mxu1  ;;  %v3369_v43 = vpop.f32.mrf.mxu0  ;;  %v1313_v1 = vadd.f32 %v1274_v58, %v3273_v23  ;;  %v1316_v45 = vadd.f32 %v3295_v60, %v3275_v21  ;;  %v1480_v23 = vadd.f32 %v3305_v2, %v1315_v42  ;;  %v3617_v42 = vld [vmem:[#allocation14_spill] sm:$0xff] }
 0x1d8   : > { %3602 = vst [vmem:[#allocation22_spill] sm:$0xff] %v3367_v41  ;;  %3603 = vst [vmem:[#allocation23_spill] sm:$0xff] %v3369_v43  ;;  %v1472_v41 = vadd.f32 %v2752_v46, %v1307_v24  ;;  %v1309_v43 = vadd.f32 %v1258_v47, %v3265_v8  ;;  %v1471_v57 = vadd.f32 %v1410_v54, %v1306_v29  ;;  %v3612_v24 = vld [vmem:[#allocation9_spill] sm:$0xff]  ;;  %v3614_v29 = vld [vmem:[#allocation11_spill] sm:$0xff] }
 0x1d9   : > { %v3373_v25 = vpop.f32.mrf.mxu1  ;;  %v3375_v22 = vpop.f32.mrf.mxu0  ;;  %v1476_v61 = vadd.f32 %v2756_v56, %v1311_v39  ;;  %v1475_v46 = vadd.f32 %v3301_v36, %v1310_v44  ;;  %v1478_v21 = vadd.f32 %v3309_v62, %v1313_v1  ;;  %v1481_v54 = vadd.f32 %v3313_v6, %v1316_v45  ;;  %v3424_v62 = vld [vmem:[%s3576_s2] ss:$0 sm:$0xff]  ;;  %v3615_v44 = vld [vmem:[#allocation12_spill] sm:$0xff] }
 0x1da   : > { %3604 = vst [vmem:[#allocation24_spill] sm:$0xff] %v3373_v25  ;;  %3605 = vst [vmem:[#allocation25_spill] sm:$0xff] %v3375_v22  ;;  %v1312_v25 = vadd.f32 %v2739_v49, %v3267_v14  ;;  %v1473_v22 = vadd.f32 %v2753_v51, %v1308_v32  ;;  %v1474_v8 = vadd.f32 %v3293_v59, %v1309_v43  ;;  %v3618_v45 = vld [vmem:[#allocation15_spill] sm:$0xff] }
 0x1db   : > { %v3384_v28 = vpop.f32.mrf.mxu0  ;;  %v2806_v53 = vpop.f32.mrf.mxu1  ;;  %v1637_v14 = vadd.f32 %v2770_v7, %v1472_v41  ;;  %v1317_v49 = vadd.f32 %v3307_v3, %v3285_v34  ;;  %v1635_v51 = vadd.f32 %v1572_v10, %v1470_v40  ;;  %v1484_v34 = vadd.f32 %v3319_v13, %v1319_v11  ;;  %v3616_v40 = vld [vmem:[#allocation13_spill] sm:$0xff] }
 0x1dc   : > { %v1477_v31 = vadd.f32 %v3297_v63, %v1312_v25  ;;  %v1638_v33 = vadd.f32 %v3325_v19, %v1473_v22  ;;  %v1483_v36 = vadd.f32 %v3327_v20, %v1318_v35  ;;  %v1636_v27 = vadd.f32 %v3606_v37, %v1471_v57  ;;  %v3611_v20 = vld [vmem:[#allocation8_spill] sm:$0xff] }
 0x1dd   : > { %v3390_v50 = vpop.f32.mrf.mxu0  ;;  %v1902_v4 = vpop.f32.mrf.mxu1  ;;  %v1802_v52 = vadd.f32 %v2788_v26, %v1637_v14  ;;  %v1482_v59 = vadd.f32 %v3321_v15, %v1317_v49  ;;  %v1800_v60 = vadd.f32 %v1737_v18, %v1635_v51  ;;  %v1641_v6 = vadd.f32 %v3607_v5, %v1476_v61  ;;  %v3609_v15 = vld [vmem:[#allocation6_spill] sm:$0xff]  ;;  %v3619_v14 = vld [vmem:[#allocation16_spill] sm:$0xff]  ;;  %v3622_v51 = vld [vmem:[#allocation19_spill] sm:$0xff] }
 0x1de   : > { %v1639_v12 = vadd.f32 %v3608_v9, %v1474_v8  ;;  %v1642_v10 = vadd.f32 %v3609_v15, %v1477_v31  ;;  %v1803_v19 = vadd.f32 %v3610_v17, %v1638_v33  ;;  %v1640_v22 = vadd.f32 %v3611_v20, %v1475_v46  ;;  %v3620_v46 = vld [vmem:[#allocation17_spill] sm:$0xff]  ;;  %v3621_v49 = vld [vmem:[#allocation18_spill] sm:$0xff] }
 0x1df   : > { %v3402_v47 = vpop.f32.mrf.mxu0  ;;  %v2807_v48 = vpop.f32.mrf.mxu1  ;;  %v1967_v63 = vadd.f32 %v2806_v53, %v1802_v52  ;;  %v1965_v13 = vadd.f32 %v1902_v4, %v1800_v60  ;;  %v1801_v26 = vadd.f32 %v3612_v24, %v1636_v27  ;;  %v1645_v32 = vadd.f32 %v3613_v30, %v1480_v23  ;;  %v3623_v60 = vld [vmem:[#allocation20_spill] sm:$0xff]  ;;  %v3624_v33 = vld [vmem:[#allocation21_spill] sm:$0xff]  ;;  %v3625_v27 = vld [vmem:[#allocation22_spill] sm:$0xff] }
 0x1e0   : > { %v1806_v39 = vadd.f32 %v3614_v29, %v1641_v6  ;;  %v1643_v53 = vadd.f32 %v3615_v44, %v1478_v21  ;;  %v1804_v57 = vadd.f32 %v3616_v40, %v1639_v12  ;;  %v1646_v61 = vadd.f32 %v3617_v42, %v1481_v54  ;;  %v3626_v5 = vld [vmem:[#allocation23_spill] sm:$0xff] }
 0x1e1   : > { %v3413_v56 = vpop.f32.mrf.mxu0  ;;  %v1905_v58 = vpop.f32.mrf.mxu1  ;;  %v1968_v1 = vadd.f32 %v2807_v48, %v1803_v19  ;;  %v1807_v31 = vadd.f32 %v3618_v45, %v1642_v10  ;;  %v1644_v16 = vadd.f32 %v3619_v14, %v1479_v55  ;;  %v1805_v11 = vadd.f32 %v3620_v46, %v1640_v22  ;;  %v3628_v15 = vld [vmem:[#allocation25_spill] sm:$0xff] }
 0x1e2   : > { %v1649_v21 = vadd.f32 %v3621_v49, %v1484_v34  ;;  %v1810_v52 = vadd.f32 %v3622_v51, %v1645_v32  ;;  %v1966_v38 = vadd.f32 %v1905_v58, %v1801_v26  ;;  %v1808_v37 = vadd.f32 %v3624_v33, %v1643_v53  ;;  %v3627_v34 = vld [vmem:[#allocation24_spill] sm:$0xff] }
 0x1e3   : > { %v2810_v2 = vpop.f32.mrf.mxu1  ;;  %v2824_v3 = vpop.f32.mrf.mxu0  ;;  %v1650_v55 = vadd.f32 %v3625_v27, %v1485_v0  ;;  %v3459_v6 = vadd.f32 %v3626_v5, %v1646_v61  ;;  %v1648_v9 = vadd.f32 %v3627_v34, %v1483_v36 }
 0x1e4   : > { %v2132_v7 = vadd.f32 %v2824_v3, %v1967_v63  ;;  %v1647_v63 = vadd.f32 %v3623_v60, %v1482_v59  ;;  %v1971_v3 = vadd.f32 %v2810_v2, %v1806_v39  ;;  %v3464_v59 = vadd.f32 %v3628_v15, %v1644_v16 }
 0x1e5   : > { %v1918_v25 = vpop.f32.mrf.mxu1  ;;  %v2067_v18 = vpop.f32.mrf.mxu0  ;;  %v3467_v10 = vadd.f32 %v3384_v28, %v1649_v21  ;;  %v3473_v19 = vadd.f32 %v3402_v47, %v1650_v55  ;;  %v3479_v28 = vadd.f32 %v3413_v56, %v1648_v9 }
 0x1e6   : > { %v2155_v41 = vadd.f32 %v3424_v62, %v2132_v7  ;;  %v2130_v43 = vadd.f32 %v2067_v18, %v1965_v13  ;;  %v1969_v0 = vadd.f32 %v1918_v25, %v1804_v57  ;;  %v3470_v17 = vadd.f32 %v3390_v50, %v1647_v63 }
 0x1e7   : > { %v2811_v4 = vpop.f32.mrf.mxu1  ;;  %v2825_v8 = vpop.f32.mrf.mxu0 }
 0x1e8   : > { %2171 = vst.msk [vmem:[%s3433_s12 + $0x10] sm:$0xff] %vm677_vm1, %v2155_v41  ;;  %v2153_v23 = vadd.f32 %v3424_v62, %v2130_v43  ;;  %v2133_v54 = vadd.f32 %v2825_v8, %v1968_v1  ;;  %v2226_v26 = vmul.f32 %v2155_v41, %v2155_v41  ;;  %v1972_v30 = vadd.f32 %v2811_v4, %v1807_v31 }
 0x1e9   : > { %v1921_v48 = vpop.f32.mrf.mxu1  ;;  %v2070_v35 = vpop.f32.mrf.mxu0  ;;  %v2188_v43 = vsel %vm677_vm1, %v2155_v41, 0.0 }
 0x1ea   : > { %2169 = vst.msk [vmem:[%s3433_s12] sm:$0xff] %vm677_vm1, %v2153_v23  ;;  %v2156_v58 = vadd.f32 %v3424_v62, %v2133_v54  ;;  %v2131_v12 = vadd.f32 %v2070_v35, %v1966_v38  ;;  %v2224_v36 = vmul.f32 %v2153_v23, %v2153_v23  ;;  %v2185_v50 = vsel %vm677_vm1, %v2153_v23, 0.0 }
 0x1eb   : > { %v2814_v13 = vpop.f32.mrf.mxu1  ;;  %v2828_v7 = vpop.f32.mrf.mxu0  ;;  %v1970_v44 = vadd.f32 %v1921_v48, %v1805_v11  ;;  %v2243_v8 = vsel %vm677_vm1, %v2226_v26, 0.0 }
 0x1ec   : > { %v2136_v2 = vadd.f32 %v2828_v7, %v1971_v3  ;;  %2172 = vst.msk [vmem:[%s3433_s12 + $0x18] sm:$0xff] %vm677_vm1, %v2156_v58  ;;  %v2154_v20 = vadd.f32 %v3424_v62, %v2131_v12  ;;  %v2240_v40 = vsel %vm677_vm1, %v2224_v36, 0.0  ;;  %v2227_v57 = vmul.f32 %v2156_v58, %v2156_v58 }
 0x1ed   : > { %v1934_v22 = vpop.f32.mrf.mxu1  ;;  %v2083_v24 = vpop.f32.mrf.mxu0  ;;  %v1975_v41 = vadd.f32 %v2814_v13, %v1810_v52  ;;  %v2190_v14 = vsel %vm677_vm1, %v2156_v58, 0.0 }
 0x1ee   : > { %v2159_v25 = vadd.f32 %v3424_v62, %v2136_v2  ;;  %v2134_v18 = vadd.f32 %v2083_v24, %v1969_v0  ;;  %2170 = vst.msk [vmem:[%s3433_s12 + $0x8] sm:$0xff] %vm677_vm1, %v2154_v20  ;;  %v2186_v47 = vsel %vm677_vm1, %v2154_v20, 0.0  ;;  %v2225_v32 = vmul.f32 %v2154_v20, %v2154_v20 }
 0x1ef   : > { %v2815_v29 = vpop.f32.mrf.mxu1  ;;  %v2829_v39 = vpop.f32.mrf.mxu0  ;;  %v2187_v56 = vadd.f32 %v2186_v47, %v2185_v50  ;;  %v1973_v51 = vadd.f32 %v1934_v22, %v1808_v37  ;;  %v2245_v48 = vsel %vm677_vm1, %v2227_v57, 0.0 }
 0x1f0   : > { %2175 = vst.msk [vmem:[%s3433_s12 + $0x30] sm:$0xff] %vm677_vm1, %v2159_v25  ;;  %v2157_v53 = vadd.f32 %v3424_v62, %v2134_v18  ;;  %v2241_v42 = vsel %vm677_vm1, %v2225_v32, 0.0  ;;  %v2137_v61 = vadd.f32 %v2829_v39, %v1972_v30  ;;  %v2230_v35 = vmul.f32 %v2159_v25, %v2159_v25 }
 0x1f1   : > { %v1937_v1 = vpop.f32.mrf.mxu1  ;;  %v2086_v4 = vpop.f32.mrf.mxu0  ;;  %v2189_v45 = vadd.f32 %v2188_v43, %v2187_v56  ;;  %v2242_v31 = vadd.f32 %v2241_v42, %v2240_v40  ;;  %v1976_v3 = vadd.f32 %v2815_v29, %v3459_v6  ;;  %v2196_v13 = vsel %vm677_vm1, %v2159_v25, 0.0 }
 0x1f2   : > { %2173 = vst.msk [vmem:[%s3433_s12 + $0x20] sm:$0xff] %vm677_vm1, %v2157_v53  ;;  %v2228_v16 = vmul.f32 %v2157_v53, %v2157_v53  ;;  %v2160_v46 = vadd.f32 %v3424_v62, %v2137_v61  ;;  %v2135_v11 = vadd.f32 %v2086_v4, %v1970_v44  ;;  %v2192_v52 = vsel %vm677_vm1, %v2157_v53, 0.0 }
 0x1f3   : > { %v2818_v23 = vpop.f32.mrf.mxu1  ;;  %v2832_v49 = vpop.f32.mrf.mxu0  ;;  %v2244_v21 = vadd.f32 %v2243_v8, %v2242_v31  ;;  %v2191_v38 = vadd.f32 %v2190_v14, %v2189_v45  ;;  %v1974_v15 = vadd.f32 %v1937_v1, %v3464_v59  ;;  %v2251_v26 = vsel %vm677_vm1, %v2230_v35, 0.0 }
 0x1f4   : > { %v2140_v54 = vadd.f32 %v2832_v49, %v1975_v41  ;;  %2176 = vst.msk [vmem:[%s3433_s12 + $0x38] sm:$0xff] %vm677_vm1, %v2160_v46  ;;  %v2158_v60 = vadd.f32 %v3424_v62, %v2135_v11  ;;  %v2247_v5 = vsel %vm677_vm1, %v2228_v16, 0.0  ;;  %v2231_v6 = vmul.f32 %v2160_v46, %v2160_v46 }
 0x1f5   : > { %v1950_v63 = vpop.f32.mrf.mxu1  ;;  %v2099_v33 = vpop.f32.mrf.mxu0  ;;  %v2193_v27 = vadd.f32 %v2192_v52, %v2191_v38  ;;  %v2246_v55 = vadd.f32 %v2245_v48, %v2244_v21  ;;  %v1979_v50 = vadd.f32 %v2818_v23, %v3467_v10  ;;  %v2198_v59 = vsel %vm677_vm1, %v2160_v46, 0.0 }
 0x1f6   : > { %v2163_v37 = vadd.f32 %v3424_v62, %v2140_v54  ;;  %2174 = vst.msk [vmem:[%s3433_s12 + $0x28] sm:$0xff] %vm677_vm1, %v2158_v60  ;;  %v2194_v34 = vsel %vm677_vm1, %v2158_v60, 0.0  ;;  %v2229_v9 = vmul.f32 %v2158_v60, %v2158_v60  ;;  %v2138_v58 = vadd.f32 %v2099_v33, %v1973_v51 }
 0x1f7   : > { %v2833_v12 = vpop.f32.mrf.mxu0  ;;  %v2248_v7 = vadd.f32 %v2247_v5, %v2246_v55  ;;  %v2195_v0 = vadd.f32 %v2194_v34, %v2193_v27  ;;  %v2819_v20 = vpop.f32.mrf.mxu1  ;;  %v1977_v43 = vadd.f32 %v1950_v63, %v3470_v17  ;;  %v2253_v53 = vsel %vm677_vm1, %v2231_v6, 0.0 }
 0x1f8   : > { %2179 = vst.msk [vmem:[%s3433_s12 + $0x50] sm:$0xff] %vm677_vm1, %v2163_v37  ;;  %v2249_v2 = vsel %vm677_vm1, %v2229_v9, 0.0  ;;  %v2161_v36 = vadd.f32 %v3424_v62, %v2138_v58  ;;  %v2141_v22 = vadd.f32 %v2833_v12, %v1976_v3  ;;  %v2234_v40 = vmul.f32 %v2163_v37, %v2163_v37 }
 0x1f9   : > { %v2102_v24 = vpop.f32.mrf.mxu0  ;;  %v2197_v18 = vadd.f32 %v2196_v13, %v2195_v0  ;;  %v2250_v25 = vadd.f32 %v2249_v2, %v2248_v7  ;;  %v1953_v57 = vpop.f32.mrf.mxu1  ;;  %v1980_v31 = vadd.f32 %v2819_v20, %v3473_v19  ;;  %v2204_v46 = vsel %vm677_vm1, %v2163_v37, 0.0 }
 0x1fa   : > { %2177 = vst.msk [vmem:[%s3433_s12 + $0x40] sm:$0xff] %vm677_vm1, %v2161_v36  ;;  %v2232_v30 = vmul.f32 %v2161_v36, %v2161_v36  ;;  %v2164_v47 = vadd.f32 %v3424_v62, %v2141_v22  ;;  %v2139_v32 = vadd.f32 %v2102_v24, %v1974_v15  ;;  %v2200_v10 = vsel %vm677_vm1, %v2161_v36, 0.0 }
 0x1fb   : > { %v2836_v29 = vpop.f32.mrf.mxu0  ;;  %v2252_v39 = vadd.f32 %v2251_v26, %v2250_v25  ;;  %v2199_v44 = vadd.f32 %v2198_v59, %v2197_v18  ;;  %v1978_v23 = vadd.f32 %v1953_v57, %v3479_v28  ;;  %v2259_v60 = vsel %vm677_vm1, %v2234_v40, 0.0 }
 0x1fc   : > { %v2144_v56 = vadd.f32 %v2836_v29, %v1979_v50  ;;  %2180 = vst.msk [vmem:[%s3433_s12 + $0x58] sm:$0xff] %vm677_vm1, %v2164_v47  ;;  %v2162_v42 = vadd.f32 %v3424_v62, %v2139_v32  ;;  %v2255_v45 = vsel %vm677_vm1, %v2232_v30, 0.0  ;;  %v2235_v21 = vmul.f32 %v2164_v47, %v2164_v47 }
 0x1fd   : > { %v2115_v61 = vpop.f32.mrf.mxu0  ;;  %v2201_v1 = vadd.f32 %v2200_v10, %v2199_v44  ;;  %v2254_v4 = vadd.f32 %v2253_v53, %v2252_v39  ;;  %v2206_v63 = vsel %vm677_vm1, %v2164_v47, 0.0 }
 0x1fe   : > { %v2167_v8 = vadd.f32 %v3424_v62, %v2144_v56  ;;  %v2142_v17 = vadd.f32 %v2115_v61, %v1977_v43  ;;  %2178 = vst.msk [vmem:[%s3433_s12 + $0x48] sm:$0xff] %vm677_vm1, %v2162_v42  ;;  %v2202_v41 = vsel %vm677_vm1, %v2162_v42, 0.0  ;;  %v2233_v14 = vmul.f32 %v2162_v42, %v2162_v42 }
 0x1ff   : > { %v2837_v16 = vpop.f32.mrf.mxu0  ;;  %v2256_v11 = vadd.f32 %v2255_v45, %v2254_v4  ;;  %v2203_v49 = vadd.f32 %v2202_v41, %v2201_v1  ;;  %v2261_v37 = vsel %vm677_vm1, %v2235_v21, 0.0 }
 0x200   : > { %2183 = vst.msk [vmem:[%s3433_s12 + $0x70] sm:$0xff] %vm677_vm1, %v2167_v8  ;;  %v2257_v51 = vsel %vm677_vm1, %v2233_v14, 0.0  ;;  %v2165_v19 = vadd.f32 %v3424_v62, %v2142_v17  ;;  %v2145_v38 = vadd.f32 %v2837_v16, %v1980_v31  ;;  %v2238_v13 = vmul.f32 %v2167_v8, %v2167_v8 }
 0x201   : > { %v2118_v54 = vpop.f32.mrf.mxu0  ;;  %v2205_v48 = vadd.f32 %v2204_v46, %v2203_v49  ;;  %v2258_v35 = vadd.f32 %v2257_v51, %v2256_v11  ;;  %v2212_v6 = vsel %vm677_vm1, %v2167_v8, 0.0 }
 0x202   : > { %v2143_v52 = vadd.f32 %v2118_v54, %v1978_v23  ;;  %2181 = vst.msk [vmem:[%s3433_s12 + $0x60] sm:$0xff] %vm677_vm1, %v2165_v19  ;;  %v2236_v28 = vmul.f32 %v2165_v19, %v2165_v19  ;;  %v2168_v33 = vadd.f32 %v3424_v62, %v2145_v38  ;;  %v2208_v5 = vsel %vm677_vm1, %v2165_v19, 0.0 }
 0x203   : > { %v2260_v27 = vadd.f32 %v2259_v60, %v2258_v35  ;;  %v2207_v55 = vadd.f32 %v2206_v63, %v2205_v48  ;;  %v2267_v22 = vsel %vm677_vm1, %v2238_v13, 0.0 }
 0x204   : > { %v2166_v3 = vadd.f32 %v3424_v62, %v2143_v52  ;;  %2184 = vst.msk [vmem:[%s3433_s12 + $0x78] sm:$0xff] %vm677_vm1, %v2168_v33  ;;  %v2263_v7 = vsel %vm677_vm1, %v2236_v28, 0.0  ;;  %v2239_v2 = vmul.f32 %v2168_v33, %v2168_v33  ;;  %v2214_v24 = vsel %vm677_vm1, %v2168_v33, 0.0 }
 0x205   : > { %v2209_v34 = vadd.f32 %v2208_v5, %v2207_v55  ;;  %v2262_v9 = vadd.f32 %v2261_v37, %v2260_v27 }
 0x206   : > { %2182 = vst.msk [vmem:[%s3433_s12 + $0x68] sm:$0xff] %vm677_vm1, %v2166_v3  ;;  %v2210_v58 = vsel %vm677_vm1, %v2166_v3, 0.0  ;;  %v2237_v12 = vmul.f32 %v2166_v3, %v2166_v3  ;;  %v2269_v25 = vsel %vm677_vm1, %v2239_v2, 0.0 }
 0x207   : > { %v2264_v15 = vadd.f32 %v2263_v7, %v2262_v9  ;;  %v2211_v0 = vadd.f32 %v2210_v58, %v2209_v34 }
 0x208   : > { %v2265_v62 = vsel %vm677_vm1, %v2237_v12, 0.0 }
 0x209   : > { %v2213_v36 = vadd.f32 %v2212_v6, %v2211_v0  ;;  %v2266_v20 = vadd.f32 %v2265_v62, %v2264_v15 }
 0x20b   : > { %v2215_v26 = vadd.f32 %v2214_v24, %v2213_v36  ;;  %v2268_v18 = vadd.f32 %v2267_v22, %v2266_v20 }
 0x20d   : > { %v2216_v50 = vrot.slane %v2215_v26, 4  ;;  %v2270_v59 = vadd.f32 %v2269_v25, %v2268_v18 }
 0x20f   : > { %v2217_v30 = vadd.f32 %v2216_v50, %v2215_v26  ;;  %v2271_v47 = vrot.slane %v2270_v59, 4 }
 0x211   : > { %v2218_v32 = vrot.slane %v2217_v30, 2  ;;  %v2272_v29 = vadd.f32 %v2271_v47, %v2270_v59 }
 0x213   : > { %v2219_v39 = vadd.f32 %v2218_v32, %v2217_v30  ;;  %v2273_v43 = vrot.slane %v2272_v29, 2 }
 0x215   : > { %v2220_v44 = vrot.slane %v2219_v39, 1  ;;  %v2274_v56 = vadd.f32 %v2273_v43, %v2272_v29 }
 0x217   : > { %v2221_v53 = vadd.f32 %v2220_v44, %v2219_v39  ;;  %v2275_v40 = vrot.slane %v2274_v56, 1 }
 0x219   : > { %2223 = vst.msk [vmem:[%s443_s14] sm:$0x1] %vm2222_vm2, %v2221_v53  ;;  %v2276_v10 = vadd.f32 %v2275_v40, %v2274_v56 }
 0x21b   : > { %2277 = vst.msk [vmem:[%s449_s17] sm:$0x1] %vm2222_vm2, %v2276_v10 }
 0x21c PF: > { %s19_s29 = sadd.s32 1, %s2890_s29   ;;  %s3629_s27 = smov %s2886_s28 }
 0x21d   : > { %p16_p5 = scmp.ge.s32.totalorder %s19_s29, 4   ;;  %s3630_s28 = smov %s3632_s30 }
 0x21f   :  { %18 = sbr.rel (!%p16_p5) target bundleno = 2 (0x2), region = 115 }

</bundles_post_ra>
